<compile_context>
chip_gen: v5e
topology: v5e:2x2
jax: 0.10.0
libtpu: 0.0.40
codegen_flags: <defaults>
</compile_context>

<pallas_src>
import functools

import jax
import jax.numpy as jnp
from jax.experimental import pallas as pl
from jax.experimental.pallas import tpu as pltpu

INP = 512
OUP = 512
MIP = max(8, INP // 32)   # = 16
H = W = 7
EPS = 1e-5


# ----------------------------- Pallas kernel ------------------------------ #
def coordatt_kernel(x_ref, wh_ref, bh_ref, ww_ref, bw_ref,
                    w1_ref, b1_ref, w2_ref, b2_ref, w3_ref, b3_ref,
                    out_ref):
    # x_ref block: (B, H, W, C) in the I/O dtype (f32 or bf16); params f32.
    f32 = jnp.float32
    b = x_ref.shape[0]

    wh = wh_ref[...]                                    # (W, C)  BN-folded
    ww = ww_ref[...]                                    # (H, C)  BN-folded

    # Linear_h: depthwise (1,7) conv collapses W.  Unrolled lane-parallel MAC
    # (7 multiply-adds over (B, H, C) slices; stays on the VPU, f32 accum).
    xh = x_ref[:, :, 0, :].astype(f32) * wh[0]
    for wpos in range(1, W):
        xh = xh + x_ref[:, :, wpos, :].astype(f32) * wh[wpos]
    xh = xh + bh_ref[...]                               # (B, H, C)

    # Linear_w: depthwise (7,1) conv collapses H.
    xw = x_ref[:, 0, :, :].astype(f32) * ww[0]
    for hpos in range(1, H):
        xw = xw + x_ref[:, hpos, :, :].astype(f32) * ww[hpos]
    xw = xw + bw_ref[...]                               # (B, W, C)

    # Fused squeeze: conv1 (1x1, C -> MIP) + bn1 (folded) + h_swish as ONE
    # (B*(H+W), C) @ (C, MIP) matmul (concat on the leading, untiled dim).
    z = jnp.concatenate([xh, xw], axis=0)               # (2B, 7, C)
    z = z.reshape(2 * b * H, INP)                       # (B*(H+W), C)
    y = jnp.dot(z, w1_ref[...], preferred_element_type=f32) + b1_ref[...]
    y = y * jnp.clip(y + 3.0, 0.0, 6.0) * (1.0 / 6.0)   # h_swish

    yh = y[: b * H]                                     # (B*H, MIP)
    yw = y[b * H:]                                      # (B*W, MIP)

    # Excite: conv2 / conv3 (1x1, MIP -> OUP) + sigmoid (EUP).
    ah = jax.nn.sigmoid(
        jnp.dot(yh, w2_ref[...], preferred_element_type=f32) + b2_ref[...])
    aw = jax.nn.sigmoid(
        jnp.dot(yw, w3_ref[...], preferred_element_type=f32) + b3_ref[...])

    # y = x_w * x_h : outer-product broadcast over the missing spatial axes,
    # stored lane-dense (last dim = 512).
    out_ref[...] = (ah.reshape(b, H, 1, OUP)
                    * aw.reshape(b, 1, W, OUP)).astype(out_ref.dtype)


# ------------------------------- wrappers ---------------------------------- #
def _pick_batch_block(n, itemsize):
    """Batched block size: big enough to amortize per-step overhead, capped so
    double-buffered (x + out) blocks plus f32 temporaries fit comfortably in
    v7x's 64 MiB VMEM, and chosen so the grid has >= 2 steps when possible
    (keeps both v7x TCs busy via the "parallel" batch axis)."""
    if n <= 1:
        return 1
    cap = 64 if itemsize <= 2 else 32      # ~3.7 MiB x-block either way
    return max(1, min(cap, pl.cdiv(n, 2)))


def coordatt_head_nhwc(x_nhwc, kp, *, batch_block=None):
    """Primary, transpose-free entry point.  x_nhwc: (N, 7, 7, 512) in f32 or
    bf16 (bf16 halves HBM traffic; compute still accumulates in f32)."""
    n, h, w, c = x_nhwc.shape
    assert (h, w, c) == (H, W, INP)
    io_dtype = x_nhwc.dtype
    itemsize = jnp.dtype(io_dtype).itemsize
    bb = int(_pick_batch_block(n, itemsize) if batch_block is None
             else batch_block)
    grid = (pl.cdiv(n, bb),)

    def rep(shape):
        # Constant-index (broadcast) parameter block: DMA'd once, reused.
        return pl.BlockSpec(shape, lambda i, _s=len(shape): (0,) * _s)

    cost = pl.CostEstimate(
        flops=int(n * (4 * H * W * INP              # two depthwise convs
                       + 2 * (H + W) * INP * MIP    # fused squeeze matmul
                       + 2 * (H + W) * MIP * OUP    # excite matmuls
                       + 2 * H * W * OUP)),         # outer-product multiply
        transcendentals=int(n * (H + W) * OUP),     # sigmoids
        bytes_accessed=int(n * 2 * H * W * INP * itemsize
                           + 4 * (2 * (H + W) * INP + INP * MIP
                                  + 2 * MIP * OUP + MIP + 2 * OUP)),
    )

    return pl.pallas_call(
        coordatt_kernel,
        out_shape=jax.ShapeDtypeStruct((n, H, W, OUP), io_dtype),
        grid=grid,
        in_specs=[
            pl.BlockSpec((bb, H, W, INP), lambda i: (i, 0, 0, 0)),   # x
            rep((W, INP)),    # wh (BN-folded)
            rep((1, INP)),    # bh
            rep((H, INP)),    # ww (BN-folded)
            rep((1, INP)),    # bw
            rep((INP, MIP)),  # w1 (BN-folded)
            rep((1, MIP)),    # b1
            rep((MIP, OUP)),  # w2
            rep((1, OUP)),    # b2
            rep((MIP, OUP)),  # w3
            rep((1, OUP)),    # b3
        ],
        out_specs=pl.BlockSpec((bb, H, W, OUP), lambda i: (i, 0, 0, 0)),
        compiler_params=pltpu.CompilerParams(
            dimension_semantics=("parallel",),
            vmem_limit_bytes=48 * 1024 * 1024),      # <= v7x 64 MiB physical
        cost_estimate=cost,
    )(x_nhwc, kp["wh"], kp["bh"], kp["ww"], kp["bw"],
      kp["w1"], kp["b1"], kp["w2"], kp["b2"], kp["w3"], kp["b3"])


def coordatt_head(x_nchw, kp, *, batch_block=None):
    """PyTorch-layout (NCHW) convenience shim.  The two transposes are pure
    layout plumbing (each a full HBM read+write); prefer coordatt_head_nhwc
    and keep the surrounding model NHWC so they fuse away / disappear."""
    n, c, h, w = x_nchw.shape
    assert (c, h, w) == (INP, H, W)
    x = jnp.transpose(x_nchw, (0, 2, 3, 1))
    out = coordatt_head_nhwc(x, kp, batch_block=batch_block)
    return jnp.transpose(out, (0, 3, 1, 2))


# ------------------------ parameter construction --------------------------- #
def make_params(key):
    """Deterministic synthetic parameters in PyTorch shape conventions,
    plus the BN-folded / transposed versions consumed by the kernel."""
    ks = jax.random.split(key, 16)

    def bn(k, c):
        k1, k2, k3, k4 = jax.random.split(k, 4)
        gamma = jax.random.uniform(k1, (c,), minval=0.5, maxval=1.5)
        beta = 0.1 * jax.random.normal(k2, (c,))
        mean = 0.1 * jax.random.normal(k3, (c,))
        var = jax.random.uniform(k4, (c,), minval=0.5, maxval=1.5)
        return gamma, beta, mean, var

    # raw (PyTorch-style) weights
    wh = 0.1 * jax.random.normal(ks[0], (INP, W))      # Linear_h depthwise (c, kw)
    ww = 0.1 * jax.random.normal(ks[1], (INP, H))      # Linear_w depthwise (c, kh)
    bn_h = bn(ks[2], INP)
    bn_w = bn(ks[3], INP)
    w1 = 0.05 * jax.random.normal(ks[4], (MIP, INP))   # conv1 (out, in)
    b1 = 0.1 * jax.random.normal(ks[5], (MIP,))
    bn1 = bn(ks[6], MIP)
    w2 = 0.1 * jax.random.normal(ks[7], (OUP, MIP))    # conv2
    b2 = 0.1 * jax.random.normal(ks[8], (OUP,))
    w3 = 0.1 * jax.random.normal(ks[9], (OUP, MIP))    # conv3
    b3 = 0.1 * jax.random.normal(ks[10], (OUP,))

    raw = dict(wh=wh, ww=ww, bn_h=bn_h, bn_w=bn_w, w1=w1, b1=b1, bn1=bn1,
               w2=w2, b2=b2, w3=w3, b3=b3)

    def fold(gamma, beta, mean, var):
        scale = gamma / jnp.sqrt(var + EPS)
        return scale, beta - mean * scale

    sh, bh = fold(*bn_h)
    sw, bw = fold(*bn_w)
    s1, c1 = fold(*bn1)

    kp = dict(
        wh=(wh * sh[:, None]).T.astype(jnp.float32),          # (W, INP)
        bh=bh.reshape(1, INP).astype(jnp.float32),
        ww=(ww * sw[:, None]).T.astype(jnp.float32),          # (H, INP)
        bw=bw.reshape(1, INP).astype(jnp.float32),
        w1=(w1 * s1[:, None]).T.astype(jnp.float32),          # (INP, MIP)
        b1=(b1 * s1 + c1).reshape(1, MIP).astype(jnp.float32),
        w2=w2.T.astype(jnp.float32),                          # (MIP, OUP)
        b2=b2.reshape(1, OUP).astype(jnp.float32),
        w3=w3.T.astype(jnp.float32),                          # (MIP, OUP)
        b3=b3.reshape(1, OUP).astype(jnp.float32),
    )
    return raw, kp


# --------------------- pure-JAX reference (PyTorch math) ------------------- #
def ref_forward(x, raw):
    """Faithful NCHW re-implementation of CoordAtt.forward (inference BN)."""
    def apply_bn(z, bn_p, axis_shape):
        g, b, m, v = bn_p
        sc = g / jnp.sqrt(v + EPS)
        return (z - m.reshape(axis_shape)) * sc.reshape(axis_shape) \
            + b.reshape(axis_shape)

    n, c, h, w = x.shape
    xh = jnp.einsum('ncij,cj->nci', x, raw["wh"])          # depthwise (1,7)
    xh = apply_bn(xh, raw["bn_h"], (1, INP, 1))
    xw = jnp.einsum('ncij,ci->ncj', x, raw["ww"])          # depthwise (7,1)
    xw = apply_bn(xw, raw["bn_w"], (1, INP, 1))

    y = jnp.concatenate([xh, xw], axis=2)                  # (n, c, h+w)
    y1 = jnp.einsum('ncp,mc->nmp', y, raw["w1"]) + raw["b1"][None, :, None]
    y1 = apply_bn(y1, raw["bn1"], (1, MIP, 1))
    y1 = y1 * jnp.clip(y1 + 3.0, 0.0, 6.0) / 6.0           # h_swish

    yh, yw = y1[:, :, :h], y1[:, :, h:]
    ah = jax.nn.sigmoid(jnp.einsum('nmp,om->nop', yh, raw["w2"])
                        + raw["b2"][None, :, None])        # (n, oup, h)
    aw = jax.nn.sigmoid(jnp.einsum('nmp,om->nop', yw, raw["w3"])
                        + raw["b3"][None, :, None])        # (n, oup, w)
    return ah[:, :, :, None] * aw[:, :, None, :]           # (n, oup, h, w)


# --------------------------------- main ------------------------------------ #
if __name__ == "__main__":
    key = jax.random.PRNGKey(0)
    k_par, k_x = jax.random.split(key)
    raw, kp = make_params(k_par)

    N = 5   # odd on purpose: exercises batched blocks AND a ragged last block
    x_nhwc = jax.random.normal(k_x, (N, H, W, INP), dtype=jnp.float32)
    x_nchw = jnp.transpose(x_nhwc, (0, 3, 1, 2))   # only for the reference

    ref_nchw = ref_forward(x_nchw, raw)
    ref_nhwc = jnp.transpose(ref_nchw, (0, 2, 3, 1))

    fwd = jax.jit(functools.partial(coordatt_head_nhwc, kp=kp))

    # f32 path (tight tolerance)
    out = jax.block_until_ready(fwd(x_nhwc))
    assert out.shape == (N, H, W, OUP)
    assert jnp.allclose(out, ref_nhwc, atol=1e-4, rtol=1e-4), \
        f"f32 max abs err {jnp.max(jnp.abs(out - ref_nhwc))}"

    # bf16-at-the-HBM-boundary path (halves DMA volume on v6e/v7x); f32 accum.
    out_bf16 = jax.block_until_ready(fwd(x_nhwc.astype(jnp.bfloat16)))
    out_bf16 = out_bf16.astype(jnp.float32)
    assert jnp.allclose(out_bf16, ref_nhwc, atol=5e-2, rtol=5e-2), \
        f"bf16 max abs err {jnp.max(jnp.abs(out_bf16 - ref_nhwc))}"

    # NCHW (PyTorch-layout) shim still matches the reference.
    out_nchw = jax.block_until_ready(
        jax.jit(functools.partial(coordatt_head, kp=kp))(x_nchw))
    assert jnp.allclose(out_nchw, ref_nchw, atol=1e-4, rtol=1e-4), \
        f"nchw max abs err {jnp.max(jnp.abs(out_nchw - ref_nchw))}"

    print("KERNEL_OK")
</pallas_src>

<mosaic_0001>
module attributes {stable_mosaic.version = 11 : i64} {
  func.func @coordatt_kernel(%arg0: i32, %arg1: memref<3x7x7x512xf32, #tpu.memory_space<vmem>>, %arg2: memref<7x512xf32, #tpu.memory_space<vmem>>, %arg3: memref<1x512xf32, #tpu.memory_space<vmem>>, %arg4: memref<7x512xf32, #tpu.memory_space<vmem>>, %arg5: memref<1x512xf32, #tpu.memory_space<vmem>>, %arg6: memref<512x16xf32, #tpu.memory_space<vmem>>, %arg7: memref<1x16xf32, #tpu.memory_space<vmem>>, %arg8: memref<16x512xf32, #tpu.memory_space<vmem>>, %arg9: memref<1x512xf32, #tpu.memory_space<vmem>>, %arg10: memref<16x512xf32, #tpu.memory_space<vmem>>, %arg11: memref<1x512xf32, #tpu.memory_space<vmem>>, %arg12: memref<3x7x7x512xf32, #tpu.memory_space<vmem>>) attributes {dimension_semantics = [#tpu.dimension_semantics<parallel>], iteration_bounds = array<i64: 2>, scalar_prefetch = 0 : i64, scratch_operands = 0 : i64, tpu.core_type = #tpu.core_type<tc>, window_params = [{transform_indices = @transform_0, window_bounds = array<i64: 3, 7, 7, 512>}, {pipeline_mode = #tpu.pipeline_mode<synchronous>, transform_indices = @transform_1, window_bounds = array<i64: 7, 512>}, {pipeline_mode = #tpu.pipeline_mode<synchronous>, transform_indices = @transform_2, window_bounds = array<i64: 1, 512>}, {pipeline_mode = #tpu.pipeline_mode<synchronous>, transform_indices = @transform_3, window_bounds = array<i64: 7, 512>}, {pipeline_mode = #tpu.pipeline_mode<synchronous>, transform_indices = @transform_4, window_bounds = array<i64: 1, 512>}, {pipeline_mode = #tpu.pipeline_mode<synchronous>, transform_indices = @transform_5, window_bounds = array<i64: 512, 16>}, {pipeline_mode = #tpu.pipeline_mode<synchronous>, transform_indices = @transform_6, window_bounds = array<i64: 1, 16>}, {pipeline_mode = #tpu.pipeline_mode<synchronous>, transform_indices = @transform_7, window_bounds = array<i64: 16, 512>}, {pipeline_mode = #tpu.pipeline_mode<synchronous>, transform_indices = @transform_8, window_bounds = array<i64: 1, 512>}, {pipeline_mode = #tpu.pipeline_mode<synchronous>, transform_indices = @transform_9, window_bounds = array<i64: 16, 512>}, {pipeline_mode = #tpu.pipeline_mode<synchronous>, transform_indices = @transform_10, window_bounds = array<i64: 1, 512>}, {transform_indices = @transform_11, window_bounds = array<i64: 3, 7, 7, 512>}]} {
    %c0 = arith.constant 0 : index
    %c0_0 = arith.constant 0 : index
    %0 = vector.load %arg2[%c0, %c0_0] : memref<7x512xf32, #tpu.memory_space<vmem>>, vector<7x512xf32>
    %c0_1 = arith.constant 0 : index
    %c0_2 = arith.constant 0 : index
    %1 = vector.load %arg4[%c0_1, %c0_2] : memref<7x512xf32, #tpu.memory_space<vmem>>, vector<7x512xf32>
    %c0_3 = arith.constant 0 : index
    %c0_4 = arith.constant 0 : index
    %c0_5 = arith.constant 0 : index
    %c0_6 = arith.constant 0 : index
    %2 = vector.load %arg1[%c0_3, %c0_4, %c0_5, %c0_6] : memref<3x7x7x512xf32, #tpu.memory_space<vmem>>, vector<3x7x1x512xf32>
    %3 = vector.shape_cast %2 : vector<3x7x1x512xf32> to vector<3x7x512xf32>
    %4 = vector.extract_strided_slice %0 {offsets = [0, 0], sizes = [1, 512], strides = [1, 1]} : vector<7x512xf32> to vector<1x512xf32>
    %5 = vector.shape_cast %4 : vector<1x512xf32> to vector<512xf32>
    %6 = vector.shape_cast %5 : vector<512xf32> to vector<1x1x512xf32>
    %7 = vector.broadcast %6 : vector<1x1x512xf32> to vector<3x7x512xf32>
    %8 = arith.mulf %3, %7 : vector<3x7x512xf32>
    %c0_7 = arith.constant 0 : index
    %c0_8 = arith.constant 0 : index
    %c1 = arith.constant 1 : index
    %c0_9 = arith.constant 0 : index
    %9 = vector.load %arg1[%c0_7, %c0_8, %c1, %c0_9] : memref<3x7x7x512xf32, #tpu.memory_space<vmem>>, vector<3x7x1x512xf32>
    %10 = vector.shape_cast %9 : vector<3x7x1x512xf32> to vector<3x7x512xf32>
    %11 = vector.extract_strided_slice %0 {offsets = [1, 0], sizes = [1, 512], strides = [1, 1]} : vector<7x512xf32> to vector<1x512xf32>
    %12 = vector.shape_cast %11 : vector<1x512xf32> to vector<512xf32>
    %13 = vector.shape_cast %12 : vector<512xf32> to vector<1x1x512xf32>
    %14 = vector.broadcast %13 : vector<1x1x512xf32> to vector<3x7x512xf32>
    %15 = arith.mulf %10, %14 : vector<3x7x512xf32>
    %16 = arith.addf %8, %15 : vector<3x7x512xf32>
    %c0_10 = arith.constant 0 : index
    %c0_11 = arith.constant 0 : index
    %c2 = arith.constant 2 : index
    %c0_12 = arith.constant 0 : index
    %17 = vector.load %arg1[%c0_10, %c0_11, %c2, %c0_12] : memref<3x7x7x512xf32, #tpu.memory_space<vmem>>, vector<3x7x1x512xf32>
    %18 = vector.shape_cast %17 : vector<3x7x1x512xf32> to vector<3x7x512xf32>
    %19 = vector.extract_strided_slice %0 {offsets = [2, 0], sizes = [1, 512], strides = [1, 1]} : vector<7x512xf32> to vector<1x512xf32>
    %20 = vector.shape_cast %19 : vector<1x512xf32> to vector<512xf32>
    %21 = vector.shape_cast %20 : vector<512xf32> to vector<1x1x512xf32>
    %22 = vector.broadcast %21 : vector<1x1x512xf32> to vector<3x7x512xf32>
    %23 = arith.mulf %18, %22 : vector<3x7x512xf32>
    %24 = arith.addf %16, %23 : vector<3x7x512xf32>
    %c0_13 = arith.constant 0 : index
    %c0_14 = arith.constant 0 : index
    %c3 = arith.constant 3 : index
    %c0_15 = arith.constant 0 : index
    %25 = vector.load %arg1[%c0_13, %c0_14, %c3, %c0_15] : memref<3x7x7x512xf32, #tpu.memory_space<vmem>>, vector<3x7x1x512xf32>
    %26 = vector.shape_cast %25 : vector<3x7x1x512xf32> to vector<3x7x512xf32>
    %27 = vector.extract_strided_slice %0 {offsets = [3, 0], sizes = [1, 512], strides = [1, 1]} : vector<7x512xf32> to vector<1x512xf32>
    %28 = vector.shape_cast %27 : vector<1x512xf32> to vector<512xf32>
    %29 = vector.shape_cast %28 : vector<512xf32> to vector<1x1x512xf32>
    %30 = vector.broadcast %29 : vector<1x1x512xf32> to vector<3x7x512xf32>
    %31 = arith.mulf %26, %30 : vector<3x7x512xf32>
    %32 = arith.addf %24, %31 : vector<3x7x512xf32>
    %c0_16 = arith.constant 0 : index
    %c0_17 = arith.constant 0 : index
    %c4 = arith.constant 4 : index
    %c0_18 = arith.constant 0 : index
    %33 = vector.load %arg1[%c0_16, %c0_17, %c4, %c0_18] : memref<3x7x7x512xf32, #tpu.memory_space<vmem>>, vector<3x7x1x512xf32>
    %34 = vector.shape_cast %33 : vector<3x7x1x512xf32> to vector<3x7x512xf32>
    %35 = vector.extract_strided_slice %0 {offsets = [4, 0], sizes = [1, 512], strides = [1, 1]} : vector<7x512xf32> to vector<1x512xf32>
    %36 = vector.shape_cast %35 : vector<1x512xf32> to vector<512xf32>
    %37 = vector.shape_cast %36 : vector<512xf32> to vector<1x1x512xf32>
    %38 = vector.broadcast %37 : vector<1x1x512xf32> to vector<3x7x512xf32>
    %39 = arith.mulf %34, %38 : vector<3x7x512xf32>
    %40 = arith.addf %32, %39 : vector<3x7x512xf32>
    %c0_19 = arith.constant 0 : index
    %c0_20 = arith.constant 0 : index
    %c5 = arith.constant 5 : index
    %c0_21 = arith.constant 0 : index
    %41 = vector.load %arg1[%c0_19, %c0_20, %c5, %c0_21] : memref<3x7x7x512xf32, #tpu.memory_space<vmem>>, vector<3x7x1x512xf32>
    %42 = vector.shape_cast %41 : vector<3x7x1x512xf32> to vector<3x7x512xf32>
    %43 = vector.extract_strided_slice %0 {offsets = [5, 0], sizes = [1, 512], strides = [1, 1]} : vector<7x512xf32> to vector<1x512xf32>
    %44 = vector.shape_cast %43 : vector<1x512xf32> to vector<512xf32>
    %45 = vector.shape_cast %44 : vector<512xf32> to vector<1x1x512xf32>
    %46 = vector.broadcast %45 : vector<1x1x512xf32> to vector<3x7x512xf32>
    %47 = arith.mulf %42, %46 : vector<3x7x512xf32>
    %48 = arith.addf %40, %47 : vector<3x7x512xf32>
    %c0_22 = arith.constant 0 : index
    %c0_23 = arith.constant 0 : index
    %c6 = arith.constant 6 : index
    %c0_24 = arith.constant 0 : index
    %49 = vector.load %arg1[%c0_22, %c0_23, %c6, %c0_24] : memref<3x7x7x512xf32, #tpu.memory_space<vmem>>, vector<3x7x1x512xf32>
    %50 = vector.shape_cast %49 : vector<3x7x1x512xf32> to vector<3x7x512xf32>
    %51 = vector.extract_strided_slice %0 {offsets = [6, 0], sizes = [1, 512], strides = [1, 1]} : vector<7x512xf32> to vector<1x512xf32>
    %52 = vector.shape_cast %51 : vector<1x512xf32> to vector<512xf32>
    %53 = vector.shape_cast %52 : vector<512xf32> to vector<1x1x512xf32>
    %54 = vector.broadcast %53 : vector<1x1x512xf32> to vector<3x7x512xf32>
    %55 = arith.mulf %50, %54 : vector<3x7x512xf32>
    %56 = arith.addf %48, %55 : vector<3x7x512xf32>
    %c0_25 = arith.constant 0 : index
    %c0_26 = arith.constant 0 : index
    %57 = vector.load %arg3[%c0_25, %c0_26] : memref<1x512xf32, #tpu.memory_space<vmem>>, vector<1x512xf32>
    %58 = vector.shape_cast %57 : vector<1x512xf32> to vector<1x1x512xf32>
    %59 = vector.broadcast %58 : vector<1x1x512xf32> to vector<3x7x512xf32>
    %60 = arith.addf %56, %59 : vector<3x7x512xf32>
    %c0_27 = arith.constant 0 : index
    %c0_28 = arith.constant 0 : index
    %c0_29 = arith.constant 0 : index
    %c0_30 = arith.constant 0 : index
    %61 = vector.load %arg1[%c0_27, %c0_28, %c0_29, %c0_30] : memref<3x7x7x512xf32, #tpu.memory_space<vmem>>, vector<3x1x7x512xf32>
    %62 = vector.shape_cast %61 : vector<3x1x7x512xf32> to vector<3x7x512xf32>
    %63 = vector.extract_strided_slice %1 {offsets = [0, 0], sizes = [1, 512], strides = [1, 1]} : vector<7x512xf32> to vector<1x512xf32>
    %64 = vector.shape_cast %63 : vector<1x512xf32> to vector<512xf32>
    %65 = vector.shape_cast %64 : vector<512xf32> to vector<1x1x512xf32>
    %66 = vector.broadcast %65 : vector<1x1x512xf32> to vector<3x7x512xf32>
    %67 = arith.mulf %62, %66 : vector<3x7x512xf32>
    %c0_31 = arith.constant 0 : index
    %c1_32 = arith.constant 1 : index
    %c0_33 = arith.constant 0 : index
    %c0_34 = arith.constant 0 : index
    %68 = vector.load %arg1[%c0_31, %c1_32, %c0_33, %c0_34] : memref<3x7x7x512xf32, #tpu.memory_space<vmem>>, vector<3x1x7x512xf32>
    %69 = vector.shape_cast %68 : vector<3x1x7x512xf32> to vector<3x7x512xf32>
    %70 = vector.extract_strided_slice %1 {offsets = [1, 0], sizes = [1, 512], strides = [1, 1]} : vector<7x512xf32> to vector<1x512xf32>
    %71 = vector.shape_cast %70 : vector<1x512xf32> to vector<512xf32>
    %72 = vector.shape_cast %71 : vector<512xf32> to vector<1x1x512xf32>
    %73 = vector.broadcast %72 : vector<1x1x512xf32> to vector<3x7x512xf32>
    %74 = arith.mulf %69, %73 : vector<3x7x512xf32>
    %75 = arith.addf %67, %74 : vector<3x7x512xf32>
    %c0_35 = arith.constant 0 : index
    %c2_36 = arith.constant 2 : index
    %c0_37 = arith.constant 0 : index
    %c0_38 = arith.constant 0 : index
    %76 = vector.load %arg1[%c0_35, %c2_36, %c0_37, %c0_38] : memref<3x7x7x512xf32, #tpu.memory_space<vmem>>, vector<3x1x7x512xf32>
    %77 = vector.shape_cast %76 : vector<3x1x7x512xf32> to vector<3x7x512xf32>
    %78 = vector.extract_strided_slice %1 {offsets = [2, 0], sizes = [1, 512], strides = [1, 1]} : vector<7x512xf32> to vector<1x512xf32>
    %79 = vector.shape_cast %78 : vector<1x512xf32> to vector<512xf32>
    %80 = vector.shape_cast %79 : vector<512xf32> to vector<1x1x512xf32>
    %81 = vector.broadcast %80 : vector<1x1x512xf32> to vector<3x7x512xf32>
    %82 = arith.mulf %77, %81 : vector<3x7x512xf32>
    %83 = arith.addf %75, %82 : vector<3x7x512xf32>
    %c0_39 = arith.constant 0 : index
    %c3_40 = arith.constant 3 : index
    %c0_41 = arith.constant 0 : index
    %c0_42 = arith.constant 0 : index
    %84 = vector.load %arg1[%c0_39, %c3_40, %c0_41, %c0_42] : memref<3x7x7x512xf32, #tpu.memory_space<vmem>>, vector<3x1x7x512xf32>
    %85 = vector.shape_cast %84 : vector<3x1x7x512xf32> to vector<3x7x512xf32>
    %86 = vector.extract_strided_slice %1 {offsets = [3, 0], sizes = [1, 512], strides = [1, 1]} : vector<7x512xf32> to vector<1x512xf32>
    %87 = vector.shape_cast %86 : vector<1x512xf32> to vector<512xf32>
    %88 = vector.shape_cast %87 : vector<512xf32> to vector<1x1x512xf32>
    %89 = vector.broadcast %88 : vector<1x1x512xf32> to vector<3x7x512xf32>
    %90 = arith.mulf %85, %89 : vector<3x7x512xf32>
    %91 = arith.addf %83, %90 : vector<3x7x512xf32>
    %c0_43 = arith.constant 0 : index
    %c4_44 = arith.constant 4 : index
    %c0_45 = arith.constant 0 : index
    %c0_46 = arith.constant 0 : index
    %92 = vector.load %arg1[%c0_43, %c4_44, %c0_45, %c0_46] : memref<3x7x7x512xf32, #tpu.memory_space<vmem>>, vector<3x1x7x512xf32>
    %93 = vector.shape_cast %92 : vector<3x1x7x512xf32> to vector<3x7x512xf32>
    %94 = vector.extract_strided_slice %1 {offsets = [4, 0], sizes = [1, 512], strides = [1, 1]} : vector<7x512xf32> to vector<1x512xf32>
    %95 = vector.shape_cast %94 : vector<1x512xf32> to vector<512xf32>
    %96 = vector.shape_cast %95 : vector<512xf32> to vector<1x1x512xf32>
    %97 = vector.broadcast %96 : vector<1x1x512xf32> to vector<3x7x512xf32>
    %98 = arith.mulf %93, %97 : vector<3x7x512xf32>
    %99 = arith.addf %91, %98 : vector<3x7x512xf32>
    %c0_47 = arith.constant 0 : index
    %c5_48 = arith.constant 5 : index
    %c0_49 = arith.constant 0 : index
    %c0_50 = arith.constant 0 : index
    %100 = vector.load %arg1[%c0_47, %c5_48, %c0_49, %c0_50] : memref<3x7x7x512xf32, #tpu.memory_space<vmem>>, vector<3x1x7x512xf32>
    %101 = vector.shape_cast %100 : vector<3x1x7x512xf32> to vector<3x7x512xf32>
    %102 = vector.extract_strided_slice %1 {offsets = [5, 0], sizes = [1, 512], strides = [1, 1]} : vector<7x512xf32> to vector<1x512xf32>
    %103 = vector.shape_cast %102 : vector<1x512xf32> to vector<512xf32>
    %104 = vector.shape_cast %103 : vector<512xf32> to vector<1x1x512xf32>
    %105 = vector.broadcast %104 : vector<1x1x512xf32> to vector<3x7x512xf32>
    %106 = arith.mulf %101, %105 : vector<3x7x512xf32>
    %107 = arith.addf %99, %106 : vector<3x7x512xf32>
    %c0_51 = arith.constant 0 : index
    %c6_52 = arith.constant 6 : index
    %c0_53 = arith.constant 0 : index
    %c0_54 = arith.constant 0 : index
    %108 = vector.load %arg1[%c0_51, %c6_52, %c0_53, %c0_54] : memref<3x7x7x512xf32, #tpu.memory_space<vmem>>, vector<3x1x7x512xf32>
    %109 = vector.shape_cast %108 : vector<3x1x7x512xf32> to vector<3x7x512xf32>
    %110 = vector.extract_strided_slice %1 {offsets = [6, 0], sizes = [1, 512], strides = [1, 1]} : vector<7x512xf32> to vector<1x512xf32>
    %111 = vector.shape_cast %110 : vector<1x512xf32> to vector<512xf32>
    %112 = vector.shape_cast %111 : vector<512xf32> to vector<1x1x512xf32>
    %113 = vector.broadcast %112 : vector<1x1x512xf32> to vector<3x7x512xf32>
    %114 = arith.mulf %109, %113 : vector<3x7x512xf32>
    %115 = arith.addf %107, %114 : vector<3x7x512xf32>
    %c0_55 = arith.constant 0 : index
    %c0_56 = arith.constant 0 : index
    %116 = vector.load %arg5[%c0_55, %c0_56] : memref<1x512xf32, #tpu.memory_space<vmem>>, vector<1x512xf32>
    %117 = vector.shape_cast %116 : vector<1x512xf32> to vector<1x1x512xf32>
    %118 = vector.broadcast %117 : vector<1x1x512xf32> to vector<3x7x512xf32>
    %119 = arith.addf %115, %118 : vector<3x7x512xf32>
    %120 = tpu.concatenate %60, %119 in 0 : vector<3x7x512xf32>, vector<3x7x512xf32> -> vector<6x7x512xf32>
    %121 = vector.shape_cast %120 : vector<6x7x512xf32> to vector<42x512xf32>
    %c0_57 = arith.constant 0 : index
    %c0_58 = arith.constant 0 : index
    %122 = vector.load %arg6[%c0_57, %c0_58] : memref<512x16xf32, #tpu.memory_space<vmem>>, vector<512x16xf32>
    %cst = arith.constant dense<0.000000e+00> : vector<42x16xf32>
    %123 = tpu.matmul %121, %122, %cst {dimension_numbers = #tpu.dot_dimension_numbers<[1], [0], [0], [1], [0, 0, 1, 1], [], []>} : vector<42x512xf32>, vector<512x16xf32>, vector<42x16xf32> -> vector<42x16xf32>
    %c0_59 = arith.constant 0 : index
    %c0_60 = arith.constant 0 : index
    %124 = vector.load %arg7[%c0_59, %c0_60] : memref<1x16xf32, #tpu.memory_space<vmem>>, vector<1x16xf32>
    %125 = vector.broadcast %124 : vector<1x16xf32> to vector<42x16xf32>
    %126 = arith.addf %123, %125 : vector<42x16xf32>
    %cst_61 = arith.constant 3.000000e+00 : f32
    %127 = vector.broadcast %cst_61 : f32 to vector<42x16xf32>
    %128 = arith.addf %126, %127 : vector<42x16xf32>
    %cst_62 = arith.constant 0.000000e+00 : f32
    %cst_63 = arith.constant 6.000000e+00 : f32
    %129 = vector.broadcast %cst_62 : f32 to vector<42x16xf32>
    %130 = arith.maximumf %129, %128 : vector<42x16xf32>
    %131 = vector.broadcast %cst_63 : f32 to vector<42x16xf32>
    %132 = arith.minimumf %131, %130 : vector<42x16xf32>
    %133 = arith.mulf %126, %132 : vector<42x16xf32>
    %cst_64 = arith.constant 0.166666672 : f32
    %134 = vector.broadcast %cst_64 : f32 to vector<42x16xf32>
    %135 = arith.mulf %133, %134 : vector<42x16xf32>
    %136 = vector.extract_strided_slice %135 {offsets = [0, 0], sizes = [21, 16], strides = [1, 1]} : vector<42x16xf32> to vector<21x16xf32>
    %137 = vector.extract_strided_slice %135 {offsets = [21, 0], sizes = [21, 16], strides = [1, 1]} : vector<42x16xf32> to vector<21x16xf32>
    %c0_65 = arith.constant 0 : index
    %c0_66 = arith.constant 0 : index
    %138 = vector.load %arg8[%c0_65, %c0_66] : memref<16x512xf32, #tpu.memory_space<vmem>>, vector<16x512xf32>
    %cst_67 = arith.constant dense<0.000000e+00> : vector<21x512xf32>
    %139 = tpu.matmul %136, %138, %cst_67 {dimension_numbers = #tpu.dot_dimension_numbers<[1], [0], [0], [1], [0, 0, 1, 1], [], []>} : vector<21x16xf32>, vector<16x512xf32>, vector<21x512xf32> -> vector<21x512xf32>
    %c0_68 = arith.constant 0 : index
    %c0_69 = arith.constant 0 : index
    %140 = vector.load %arg9[%c0_68, %c0_69] : memref<1x512xf32, #tpu.memory_space<vmem>>, vector<1x512xf32>
    %141 = vector.broadcast %140 : vector<1x512xf32> to vector<21x512xf32>
    %142 = arith.addf %139, %141 : vector<21x512xf32>
    %143 = arith.negf %142 : vector<21x512xf32>
    %144 = math.exp %143 : vector<21x512xf32>
    %cst_70 = arith.constant 1.000000e+00 : f32
    %145 = vector.broadcast %cst_70 : f32 to vector<21x512xf32>
    %146 = arith.addf %145, %144 : vector<21x512xf32>
    %147 = arith.divf %145, %146 : vector<21x512xf32>
    %c0_71 = arith.constant 0 : index
    %c0_72 = arith.constant 0 : index
    %148 = vector.load %arg10[%c0_71, %c0_72] : memref<16x512xf32, #tpu.memory_space<vmem>>, vector<16x512xf32>
    %cst_73 = arith.constant dense<0.000000e+00> : vector<21x512xf32>
    %149 = tpu.matmul %137, %148, %cst_73 {dimension_numbers = #tpu.dot_dimension_numbers<[1], [0], [0], [1], [0, 0, 1, 1], [], []>} : vector<21x16xf32>, vector<16x512xf32>, vector<21x512xf32> -> vector<21x512xf32>
    %c0_74 = arith.constant 0 : index
    %c0_75 = arith.constant 0 : index
    %150 = vector.load %arg11[%c0_74, %c0_75] : memref<1x512xf32, #tpu.memory_space<vmem>>, vector<1x512xf32>
    %151 = vector.broadcast %150 : vector<1x512xf32> to vector<21x512xf32>
    %152 = arith.addf %149, %151 : vector<21x512xf32>
    %153 = arith.negf %152 : vector<21x512xf32>
    %154 = math.exp %153 : vector<21x512xf32>
    %cst_76 = arith.constant 1.000000e+00 : f32
    %155 = vector.broadcast %cst_76 : f32 to vector<21x512xf32>
    %156 = arith.addf %155, %154 : vector<21x512xf32>
    %157 = arith.divf %155, %156 : vector<21x512xf32>
    %158 = vector.shape_cast %147 : vector<21x512xf32> to vector<3x7x1x512xf32>
    %159 = vector.shape_cast %157 : vector<21x512xf32> to vector<3x1x7x512xf32>
    %160 = vector.broadcast %158 : vector<3x7x1x512xf32> to vector<3x7x7x512xf32>
    %161 = vector.broadcast %159 : vector<3x1x7x512xf32> to vector<3x7x7x512xf32>
    %162 = arith.mulf %160, %161 : vector<3x7x7x512xf32>
    %c0_77 = arith.constant 0 : index
    %c0_78 = arith.constant 0 : index
    %c0_79 = arith.constant 0 : index
    %c0_80 = arith.constant 0 : index
    %163 = vector.load %arg12[%c0_77, %c0_78, %c0_79, %c0_80] : memref<3x7x7x512xf32, #tpu.memory_space<vmem>>, vector<3x7x7x512xf32>
    tpu.vector_store %arg12[%c0_77, %c0_78, %c0_79, %c0_80], %162 {strides = array<i32>} : memref<3x7x7x512xf32, #tpu.memory_space<vmem>>, vector<3x7x7x512xf32>,
    return
  }
  func.func @transform_0(%arg0: i32) -> (i32, i32, i32, i32) {
    %c0_i32 = arith.constant 0 : i32
    %c0_i32_0 = arith.constant 0 : i32
    %c0_i32_1 = arith.constant 0 : i32
    %c0_i32_2 = arith.constant 0 : i32
    return %arg0, %c0_i32, %c0_i32_0, %c0_i32_1 : i32, i32, i32, i32
  }
  func.func @transform_1(%arg0: i32) -> (i32, i32) {
    %c0_i32 = arith.constant 0 : i32
    %c0_i32_0 = arith.constant 0 : i32
    %c0_i32_1 = arith.constant 0 : i32
    return %c0_i32, %c0_i32_0 : i32, i32
  }
  func.func @transform_2(%arg0: i32) -> (i32, i32) {
    %c0_i32 = arith.constant 0 : i32
    %c0_i32_0 = arith.constant 0 : i32
    %c0_i32_1 = arith.constant 0 : i32
    return %c0_i32, %c0_i32_0 : i32, i32
  }
  func.func @transform_3(%arg0: i32) -> (i32, i32) {
    %c0_i32 = arith.constant 0 : i32
    %c0_i32_0 = arith.constant 0 : i32
    %c0_i32_1 = arith.constant 0 : i32
    return %c0_i32, %c0_i32_0 : i32, i32
  }
  func.func @transform_4(%arg0: i32) -> (i32, i32) {
    %c0_i32 = arith.constant 0 : i32
    %c0_i32_0 = arith.constant 0 : i32
    %c0_i32_1 = arith.constant 0 : i32
    return %c0_i32, %c0_i32_0 : i32, i32
  }
  func.func @transform_5(%arg0: i32) -> (i32, i32) {
    %c0_i32 = arith.constant 0 : i32
    %c0_i32_0 = arith.constant 0 : i32
    %c0_i32_1 = arith.constant 0 : i32
    return %c0_i32, %c0_i32_0 : i32, i32
  }
  func.func @transform_6(%arg0: i32) -> (i32, i32) {
    %c0_i32 = arith.constant 0 : i32
    %c0_i32_0 = arith.constant 0 : i32
    %c0_i32_1 = arith.constant 0 : i32
    return %c0_i32, %c0_i32_0 : i32, i32
  }
  func.func @transform_7(%arg0: i32) -> (i32, i32) {
    %c0_i32 = arith.constant 0 : i32
    %c0_i32_0 = arith.constant 0 : i32
    %c0_i32_1 = arith.constant 0 : i32
    return %c0_i32, %c0_i32_0 : i32, i32
  }
  func.func @transform_8(%arg0: i32) -> (i32, i32) {
    %c0_i32 = arith.constant 0 : i32
    %c0_i32_0 = arith.constant 0 : i32
    %c0_i32_1 = arith.constant 0 : i32
    return %c0_i32, %c0_i32_0 : i32, i32
  }
  func.func @transform_9(%arg0: i32) -> (i32, i32) {
    %c0_i32 = arith.constant 0 : i32
    %c0_i32_0 = arith.constant 0 : i32
    %c0_i32_1 = arith.constant 0 : i32
    return %c0_i32, %c0_i32_0 : i32, i32
  }
  func.func @transform_10(%arg0: i32) -> (i32, i32) {
    %c0_i32 = arith.constant 0 : i32
    %c0_i32_0 = arith.constant 0 : i32
    %c0_i32_1 = arith.constant 0 : i32
    return %c0_i32, %c0_i32_0 : i32, i32
  }
  func.func @transform_11(%arg0: i32) -> (i32, i32, i32, i32) {
    %c0_i32 = arith.constant 0 : i32
    %c0_i32_0 = arith.constant 0 : i32
    %c0_i32_1 = arith.constant 0 : i32
    %c0_i32_2 = arith.constant 0 : i32
    return %arg0, %c0_i32, %c0_i32_0, %c0_i32_1 : i32, i32, i32, i32
  }
}

</mosaic_0001>

<bundles_post_ra>
// kernel: coordatt_head_nhwc.1
= control target key start
LH: loop header
LB: loop body
LE: loop exit
PB: predicated region body
PF: predicated region fallthrough
CT: control target
= control target key end

     0   :  { %s7436_s0 = inlined_call_operand.hbm [shape: f32[5,7,7,512], index: 0, kind: input, shape index: {}]   ;;  %s7437_s1 = inlined_call_operand.hbm [shape: f32[7,512], index: 1, kind: input, shape index: {}]   ;;  %s7438_s2 = inlined_call_operand.hbm [shape: f32[1,512], index: 2, kind: input, shape index: {}]   ;;  %s7439_s3 = inlined_call_operand.hbm [shape: f32[7,512], index: 3, kind: input, shape index: {}]   ;;  %s7440_s4 = inlined_call_operand.hbm [shape: f32[1,512], index: 4, kind: input, shape index: {}]   ;;  %s7441_s5 = inlined_call_operand.hbm [shape: f32[512,16], index: 5, kind: input, shape index: {}]   ;;  %s7442_s6 = inlined_call_operand.vmem [shape: f32[1,16], index: 6, kind: input, shape index: {}]   ;;  %s7443_s7 = inlined_call_operand.hbm [shape: f32[16,512], index: 7, kind: input, shape index: {}]   ;;  %s7444_s8 = inlined_call_operand.hbm [shape: f32[1,512], index: 8, kind: input, shape index: {}]   ;;  %s7445_s9 = inlined_call_operand.hbm [shape: f32[16,512], index: 9, kind: input, shape index: {}]   ;;  %s7446_s10 = inlined_call_operand.vmem [shape: f32[1,512], index: 10, kind: input, shape index: {}]   ;;  %s7447_s11 = inlined_call_operand.hbm [shape: f32[5,7,7,512], index: 11, kind: output, shape index: {}]  }
   0x1   :  { %7509 = sst [smem:[#allocation54_spill]] %s7437_s1 }
   0x2   :  { %7510 = sst [smem:[#allocation55_spill]] %s7439_s3 }
   0x3   :  { %7511 = sst [smem:[#allocation56_spill]] %s7441_s5 }
   0x4   :  { %7512 = sst [smem:[#allocation57_spill]] %s7447_s11 }
   0x5   :  { %16 = vsyncpa [#allocation3], 0 }
   0x6   :  { %18 = vsyncpa [#allocation3 + $0x1], 0 }
   0x7   :  { %19 = vsyncpa [#allocation6], 0 }
   0x8   :  { %20 = vsyncpa [#allocation9], 0 }
   0x9   :  { %21 = vsyncpa [#allocation12], 0 }
   0xa   :  { %22 = vsyncpa [#allocation15], 0 }
   0xb   :  { %23 = vsyncpa [#allocation4], 0 }
   0xc   :  { %25 = vsyncpa [#allocation4 + $0x1], 0  ;;  %s5026_s17 = smov 0   ;;  %s5028_s18 = smov 0  }
   0xd   :  { %s5030_s19 = smov 0   ;;  %s5032_s20 = smov 0  }
   0xe LB: > { %7513 = sst [smem:[#allocation24_spill]] %s4934_s17  ;;  %s5047_s21 = sadd.s32 4294967295, %s4946_s20   ;;  %s4946_s20 = sphi %s5032_s20, %s7704_s20   ;;  %s4942_s19 = sphi %s5030_s19, %s7708_s19   ;;  %s4938_s18 = sphi %s5028_s18, %s7707_s18   ;;  %s4934_s17 = sphi %s5026_s17, %s7706_s17  }
   0xf   : > { %s4041_s22 = sadd.s32 4294967294, %s4946_s20   ;;  %s5051_s23 = sadd.s32 1, %s4946_s20  }
  0x10   : > { %7514 = sst [smem:[#allocation25_spill]] %s5051_s23  ;;  %s38_s24 = sadd.s32 1, %s4942_s19 }
  0x11   : > { %s35_s25 = ssub.s32 %s4946_s20, %s5051_s23  ;;  %p45_p0 = scmp.ne.s32.totalorder %s4942_s19, %s4938_s18 }
  0x12   : > { %p36_p1 = scmp.eq.s32.totalorder %s35_s25, 0  ;;  %p46_p2 = scmp.eq.s32.totalorder %s4946_s20, 0 }
  0x13   : > { %p51_p3 = scmp.ne.s32.totalorder %s4938_s18, %s4934_s17  ;;  %p7455_p4 = scmp.eq.s32.totalorder %s5047_s21, 0 }
  0x14   : > { %s5063_s26 = scalar_select %p36_p1, %s4942_s19, %s38_s24  }
  0x15   : > { %p5065_p5 = por %p46_p2, %p45_p0  ;;  %p5071_p6 = por %p7455_p4, %p51_p3 }
  0x16   : > { %7515 = sst [smem:[#allocation26_spill]] %s5063_s26  ;;  %p285_p7 = scmp.eq.s32.totalorder %s5047_s21, 1 }
  0x17   : > { %p291_p8 = scmp.eq.s32.totalorder %s4041_s22, 1  ;;  %p4042_p9 = scmp.ge.s32.totalorder %s4946_s20, 1 }
  0x18   : > { %p298_p10 = scmp.lt.s32.totalorder %s4946_s20, 3  ;;  %p5078_p11 = por %p285_p7, %p45_p0 }
  0x19   : > { %p5082_p12 = por %p291_p8, %p51_p3  ;;  %s7523_s1 = sld [smem:[#allocation54_spill]] }
  0x1a   : > { %s7518_s29 = scalar_select %p5078_p11, 1, 0 }
  0x1b   : > { %s7520_s30 = scalar_select %p5082_p12, 1, 0 }
  0x1c   : > { %7519 = sst [smem:[#allocation27_spill]] %s7518_s29  ;;  %p5086_p13 = pnand %p4042_p9, %p298_p10 }
  0x1d   : > { %7521 = sst [smem:[#allocation28_spill]] %s7520_s30  ;;  %s4948_s16 = smov [#allocation5]  }
  0x1e   : > { %p4381_p1 = pneg %p5086_p13  ;;  %s312_s22 = sshll.u32 %s4948_s16, 4  ;;  %s313_s22 = int_to_ptr.vmem [resolvable:$true] %s312_s22 }
  0x1f   : > { %s310_s15 = sshll.u32 %s7523_s1, 4  ;;  %s7524_s3 = sld [smem:[#allocation55_spill]]  ;;  %s311_s15 = int_to_ptr.hbm [resolvable:$true] %s310_s15 }
  0x20   : > { %p5100_p0 = pnand %p4381_p1, %p7455_p4  ;;  %s4949_s13 = smov [#allocation8]  }
  0x21   : > { %s336_s14 = sshll.u32 %s4949_s13, 4  ;;  %s7526_s5 = sld [smem:[#allocation56_spill]]  ;;  %s337_s14 = int_to_ptr.vmem [resolvable:$true] %s336_s14 }
  0x22   : > { %4384 = dma.hbm_to_vmem [thread:$0]  (!%p5100_p0), %s311_s15, 512, %s313_s22, [#allocation6]  }
  0x23   : > { %s4950_s25 = smov [#allocation11]   ;;  %s4951_s30 = smov 128  }
  0x24   : > { %s4952_s17 = smov 8   ;;  %s389_s15 = sshll.u32 %s7444_s8, 4  ;;  %s390_s15 = int_to_ptr.hbm [resolvable:$true] %s389_s15 }
  0x25   : > { %s334_s26 = sshll.u32 %s7524_s3, 4  ;;  %s359_s3 = sshll.u32 %s4950_s25, 4  ;;  %s335_s26 = int_to_ptr.hbm [resolvable:$true] %s334_s26  ;;  %s360_s3 = int_to_ptr.vmem [resolvable:$true] %s359_s3 }
  0x26   : > { %4390 = dma.hbm_to_vmem [thread:$0]  (!%p5100_p0), %s335_s26, 512, %s337_s14, [#allocation9]  }
  0x27   : > { %s357_s24 = sshll.u32 %s7526_s5, 4  ;;  %s4953_s22 = smov [#allocation14]   ;;  %s358_s24 = int_to_ptr.hbm [resolvable:$true] %s357_s24 }
  0x28   : > { %4396 = dma.hbm_to_vmem [thread:$0]  (!%p5100_p0), %s358_s24, 8192, %s360_s3, [#allocation12], %s4951_s30, %s4951_s30, %s4952_s17  }
  0x29   : > { %s391_s1 = sshll.u32 %s4953_s22, 4  ;;  %s322_s14 = sshll.u32 %s7438_s2, 4  ;;  %s392_s1 = int_to_ptr.vmem [resolvable:$true] %s391_s1  ;;  %s323_s14 = int_to_ptr.hbm [resolvable:$true] %s322_s14 }
  0x2a   : > { %4402 = dma.hbm_to_vmem [thread:$0]  (!%p5100_p0), %s390_s15, 64, %s392_s1, [#allocation15]  }
  0x2b   : > { %s4954_s25 = smov [#allocation7]   ;;  %s346_s11 = sshll.u32 %s7440_s4, 4  ;;  %s347_s11 = int_to_ptr.hbm [resolvable:$true] %s346_s11 }
  0x2c   : > { %s324_s5 = sshll.u32 %s4954_s25, 4  ;;  %s374_s24 = sshll.u32 %s7443_s7, 4  ;;  %s325_s5 = int_to_ptr.vmem [resolvable:$true] %s324_s5  ;;  %s375_s24 = int_to_ptr.hbm [resolvable:$true] %s374_s24 }
  0x2d   : > { %4387 = dma.hbm_to_vmem [thread:$0]  (!%p5100_p0), %s323_s14, 64, %s325_s5, [#allocation6]  }
  0x2e   : > { %s4955_s13 = smov [#allocation10]   ;;  %s4956_s15 = smov [#allocation13]  }
  0x2f   : > { %s348_s22 = sshll.u32 %s4955_s13, 4  ;;  %s376_s1 = sshll.u32 %s4956_s15, 4  ;;  %s349_s22 = int_to_ptr.vmem [resolvable:$true] %s348_s22  ;;  %s377_s1 = int_to_ptr.vmem [resolvable:$true] %s376_s1 }
  0x30   : > { %4393 = dma.hbm_to_vmem [thread:$0]  (!%p5100_p0), %s347_s11, 64, %s349_s22, [#allocation9]  }
  0x31   : > { %s4957_s29 = smov 512   ;;  %s4958_s16 = smov 32  }
  0x32   : > { %4399 = dma.hbm_to_vmem [thread:$0]  (!%p5100_p0), %s375_s24, 1024, %s377_s1, [#allocation12], %s4957_s29, %s4957_s29, %s4958_s16  }
  0x33   : > { %s400_s14 = sshll.u32 %s7445_s9, 4  ;;  %s4959_s25 = smov [#allocation16]   ;;  %s401_s14 = int_to_ptr.hbm [resolvable:$true] %s400_s14 }
  0x34   : > { %s402_s3 = sshll.u32 %s4959_s25, 4  ;;  %p7454_p2 = scmp.ge.s32.totalorder %s4946_s20, 2  ;;  %s403_s3 = int_to_ptr.vmem [resolvable:$true] %s402_s3 }
  0x35   : > { %4405 = dma.hbm_to_vmem [thread:$0]  (!%p5100_p0), %s401_s14, 1024, %s403_s3, [#allocation15], %s4957_s29, %s4957_s29, %s4958_s16  }
  0x36   : > { %415 = sbr.rel (%p7454_p2) target bundleno = 101 (0x65), region = 56 }
  0x3b   : > { %418 = sbr.rel (!%p5065_p5) target bundleno = 101 (0x65), region = 60  ;;  %s419_s11 = sand.u32 (%p5065_p5), 1, %s4942_s19  }
  0x3c   : > { %s424_s17 = smul.u32 (%p5065_p5), 3, %s4946_s20  ;;  %s5145_s15 = scalar_lea.sflag (%p5065_p5), [#allocation3], %s419_s11 }
  0x3d   : > { %s4343_s30 = smul.u32 (%p5065_p5), 672, %s419_s11 }
  0x3e   : > { %s425_s24 = ssub.s32 (%p5065_p5), 5, %s424_s17 }
  0x3f   : > { %p426_p3 = scmp.lt.s32.totalorder (%p5065_p5), %s425_s24, 3  ;;  %s423_s1 = scalar_lea.vmem (%p5065_p5), [#allocation2], %s4343_s30 }
  0x41   : > { %s7710_s24 = smov (!%p426_p3, %s425_s24), 3 }
  0x42   : > { %s4054_s13 = smul.u32 224, %s7710_s24 }
  0x44   : > { %s431_s22 = ssub.s32 672, %s4054_s13 }
  0x45   : > { %s432_s23 = sshll.u32 %s431_s22, 4 }
  0x46   : > { %433 = vsyncadd %s5145_s15, %s432_s23  ;;  %p5148_p7 = scmp.ne.s32.totalorder %s4054_s13, 0  ;;  %s4418_s29 = smul.u32 672, %s4946_s20 }
  0x47   : > { %s5153_s16 = sshll.u32 %s423_s1, 4  ;;  %s5155_s26 = smul.u32 3584, %s7710_s24  ;;  %s443_s16 = int_to_ptr.vmem [resolvable:$true] %s5153_s16 }
  0x48   : > { %s437_s25 = scalar_lea.hbm %s7436_s0, %s4418_s29  ;;  %s4825_s1 = scalar_lea.hbm %s7436_s0, 1120 }
  0x49   : > { %s440_s3 = sshll.u32 %s437_s25, 4  ;;  %s4816_s17 = sshrl.u32 %s5155_s26, 4  ;;  %s5161_s3 = int_to_ptr.hbm [resolvable:$true] %s440_s3 }
  0x4a   : > { %s4814_s11 = sshra.s32 %s5161_s3, 4  ;;  %s4852_s30 = sshll.u32 %s4816_s17, 4  ;;  %s4815_s11 = int_to_ptr.hbm [resolvable:$true] %s4814_s11 }
  0x4b   : > { %p4818_p5 = scmp.ne.s32.totalorder %s4852_s30, %s5155_s26  ;;  %s4819_s13 = sadd.s32 1, %s4816_s17 }
  0x4c   : > { %p4826_p1 = scmp.lt.s32.totalorder %s4815_s11, %s7436_s0 }
  0x4d   : > { %s7712_s13 = smov (!%p4818_p5, %s4819_s13), %s4816_s17 }
  0x4e   : > { %s4821_s24 = scalar_lea.hbm %s4815_s11, %s7712_s13 }
  0x4f   : > { %p4822_p8 = scmp.ne.s32.totalorder %s4815_s11, %s4821_s24  ;;  %p4827_p0 = scmp.lt.s32.totalorder %s4825_s1, %s4821_s24 }
  0x51   : > { %p4823_p9 = pnand %p4822_p8, %p5148_p7  ;;  %p4828_p3 = por %p4827_p0, %p4826_p1 }
  0x53   : > { %p4824_p10 = pneg %p4823_p9 }
  0x55   : > { %p4829_p2 = pnand %p4828_p3, %p4824_p10 }
  0x57   : > { %4832 = shalt.err (!%p4829_p2)
}
  0x58   : > { %s4833_s14 = sshra.s32 %s443_s16, 4  ;;  %s4960_s17 = smov [#allocation2]   ;;  %s4834_s14 = int_to_ptr.vmem [resolvable:$true] %s4833_s14 }
  0x59   : > { %s4840_s25 = scalar_lea.vmem %s4834_s14, %s7712_s13  ;;  %s4844_s30 = scalar_lea.vmem %s4960_s17, 1344 }
  0x5a   : > { %p4841_p5 = scmp.ne.s32.totalorder %s4834_s14, %s4840_s25  ;;  %p4846_p4 = scmp.lt.s32.totalorder %s4844_s30, %s4840_s25 }
  0x5c   : > { %p4842_p8 = pnand %p4841_p5, %p5148_p7 }
  0x5e   : > { %p4843_p9 = pneg %p4842_p8 }
  0x60   : > { %p4848_p12 = pnand %p4846_p4, %p4843_p9 }
  0x62   : > { %4851 = shalt.err (!%p4848_p12)
}
  0x63   : > { %s4961_s11 = smov 512   ;;  %s4962_s24 = smov 32  }
  0x64   : > { %448 = dma.hbm_to_vmem [thread:$0]  (%p5148_p7), %s5161_s3, %s5155_s26, %s443_s16, %s5145_s15, %s4961_s11, %s4961_s11, %s4962_s24  }
  0x65 PF: > { %454 = sbr.rel (%p5086_p13) target bundleno = 1062 (0x426), region = 64 }
  0x6a   : > { %s5188_s13 = sand.u32 1, %s4938_s18  }
  0x6b   : > { %s4345_s22 = smul.u32 672, %s5188_s13  ;;  %s457_s23 = scalar_lea.sflag [#allocation3], %s5188_s13 }
  0x6d   : > { %s5194_s1 = scalar_lea.vmem [#allocation2], %s4345_s22 }
  0x6e   : > { %4909 = dma.done.wait (%p5071_p6), %s457_s23, 10752  }
  0x6f   : > { %4911 = vsyncadd (%p5071_p6), %s457_s23, 4294956544  ;;  %p7528_p4 = scmp.eq.s32.totalorder %s5047_s21, 0 }
  0x71   : > { %4913 = dma.done.wait (%p7528_p4), [#allocation6], 576   ;;  %p7529_p12 = pmov %p7528_p4 }
  0x72   : > { %p7530_p13 = pmov %p7528_p4 }
  0x73   : > { %4915 = vsyncadd (%p7529_p12), [#allocation6], 4294966720 }
  0x74   : > { %4917 = dma.done.wait (%p7530_p13), [#allocation9], 576   ;;  %p7531_p2 = pmov %p7528_p4 }
  0x76   : > { %4919 = vsyncadd (%p7531_p2), [#allocation9], 4294966720  ;;  %p7532_p7 = pmov %p7531_p2 }
  0x77   : > { %p7533_p10 = pmov %p7531_p2 }
  0x78   : > { %4921 = dma.done.wait (%p7532_p7), [#allocation12], 9216  }
  0x79   : > { %4923 = vsyncadd (%p7533_p10), [#allocation12], 4294958080  ;;  %p7534_p6 = pmov %p7531_p2 }
  0x7a   : > { %p7535_p1 = pmov %p7531_p2 }
  0x7b   : > { %4925 = dma.done.wait (%p7534_p6), [#allocation15], 1088  }
  0x7c   : > { %4927 = vsyncadd (%p7535_p1), [#allocation15], 4294966208  ;;  %v1967_v0 = vld [vmem:[#allocation11 + $0x178] sm:$0xff]  ;;  %v1966_v2 = vld [vmem:[#allocation11 + $0x170] sm:$0xff]  ;;  %vm614_vm0 = vcmask 1040384   ;;  %vm7503_vm1 = vcmask 1042434  }
  0x7d   : > { %v1935_v1 = vld [vmem:[#allocation11 + $0x78] sm:$0xff]  ;;  %2176 = vmatpush.msra.mxu2 %v1967_v0  ;;  %v1934_v4 = vld [vmem:[#allocation11 + $0x70] sm:$0xff]  ;;  %v1965_v6 = vld [vmem:[#allocation11 + $0x168] sm:$0xff]  ;;  %vm620_vm2 = vcmask 1041409   ;;  %vm7502_vm3 = vcmask 1043459   ;;  %vm7501_vm4 = vcmask 1044484  }
  0x7e   : > { %2106 = vmatpush.msra.mxu0 %v1935_v1  ;;  %v1983_v3 = vld [vmem:[#allocation11 + $0x1f8] sm:$0xff]  ;;  %v1982_v7 = vld [vmem:[#allocation11 + $0x1f0] sm:$0xff]  ;;  %v1933_v8 = vld [vmem:[#allocation11 + $0x68] sm:$0xff]  ;;  %vm7500_vm5 = vcmask 1041408   ;;  %vm7499_vm6 = vcmask 1042433   ;;  %vm7498_vm7 = vcmask 1043458  }
  0x7f   : > { %v1951_v5 = vld [vmem:[#allocation11 + $0xf8] sm:$0xff]  ;;  %2211 = vmatpush.msra.mxu3 %v1983_v3  ;;  %2177 = vmatpush.msra.mxu2 %v1966_v2  ;;  %v1950_v9 = vld [vmem:[#allocation11 + $0xf0] sm:$0xff]  ;;  %v1981_v10 = vld [vmem:[#allocation11 + $0x1e8] sm:$0xff]  ;;  %vm7508_vm8 = vcmask 1045509   ;;  %vm7497_vm9 = vcmask 1044483   ;;  %vm7507_vm10 = vcmask 1046534  }
  0x80   : > { %2141 = vmatpush.msra.mxu1 %v1951_v5  ;;  %2107 = vmatpush.msra.mxu0 %v1934_v4  ;;  %v1964_v11 = vld [vmem:[#allocation11 + $0x160] sm:$0xff]  ;;  %v1949_v13 = vld [vmem:[#allocation11 + $0xe8] sm:$0xff]  ;;  %v1963_v16 = vld [vmem:[#allocation11 + $0x158] sm:$0xff]  ;;  %vm7496_vm11 = vcmask 1045508   ;;  %vm646_vm12 = vcmask 1046528   ;;  %vm7506_vm13 = vcmask 1046533  }
  0x81   : > { %2212 = vmatpush.msra.mxu3 %v1982_v7  ;;  %v1932_v12 = vld [vmem:[#allocation11 + $0x60] sm:$0xff]  ;;  %2178 = vmatpush.msra.mxu2 %v1965_v6  ;;  %v1931_v17 = vld [vmem:[#allocation11 + $0x58] sm:$0xff]  ;;  %v1962_v20 = vld [vmem:[#allocation11 + $0x150] sm:$0xff]  ;;  %vm7505_vm14 = vcmask 1045504   ;;  %vm2294_vm15 = vcmask 130048   ;;  %s6884_s16 = scalar_lea.vmem [#allocation17], %s4345_s22 }
  0x82   : > { %2142 = vmatpush.msra.mxu1 %v1950_v9  ;;  %2108 = vmatpush.msra.mxu0 %v1933_v8  ;;  %v1980_v14 = vld [vmem:[#allocation11 + $0x1e0] sm:$0xff]  ;;  %v1979_v18 = vld [vmem:[#allocation11 + $0x1d8] sm:$0xff]  ;;  %v1930_v21 = vld [vmem:[#allocation11 + $0x50] sm:$0xff]  ;;  %s3866_s26 = scalar_lea.sflag [#allocation4], %s5188_s13  ;;  %s3873_s29 = smul.u32 (%p5078_p11), 3, %s5047_s21 }
  0x83   : > { %v1948_v15 = vld [vmem:[#allocation11 + $0xe0] sm:$0xff]  ;;  %2213 = vmatpush.msra.mxu3 %v1981_v10  ;;  %2179 = vmatpush.msra.mxu2 %v1964_v11  ;;  %v1947_v19 = vld [vmem:[#allocation11 + $0xd8] sm:$0xff]  ;;  %v1978_v22 = vld [vmem:[#allocation11 + $0x1d0] sm:$0xff] }
  0x84   : > { %2143 = vmatpush.msra.mxu1 %v1949_v13  ;;  %2109 = vmatpush.msra.mxu0 %v1932_v12  ;;  %v1946_v23 = vld [vmem:[#allocation11 + $0xd0] sm:$0xff]  ;;  %v1961_v24 = vld [vmem:[#allocation11 + $0x148] sm:$0xff]  ;;  %v1960_v28 = vld [vmem:[#allocation11 + $0x140] sm:$0xff]  ;;  %s3874_s5 = ssub.s32 (%p5078_p11), 5, %s3873_s29 }
  0x85   : > { %2214 = vmatpush.msra.mxu3 %v1980_v14  ;;  %2180 = vmatpush.msra.mxu2 %v1963_v16  ;;  %v1929_v25 = vld [vmem:[#allocation11 + $0x48] sm:$0xff]  ;;  %v1928_v29 = vld [vmem:[#allocation11 + $0x40] sm:$0xff]  ;;  %v1959_v32 = vld [vmem:[#allocation11 + $0x138] sm:$0xff]  ;;  %p3875_p0 = scmp.lt.s32.totalorder (%p5078_p11), %s3874_s5, 3 }
  0x86   : > { %2144 = vmatpush.msra.mxu1 %v1948_v15  ;;  %2110 = vmatpush.msra.mxu0 %v1931_v17  ;;  %v1977_v26 = vld [vmem:[#allocation11 + $0x1c8] sm:$0xff]  ;;  %v1976_v30 = vld [vmem:[#allocation11 + $0x1c0] sm:$0xff]  ;;  %v1927_v33 = vld [vmem:[#allocation11 + $0x38] sm:$0xff] }
  0x87   : > { %2215 = vmatpush.msra.mxu3 %v1979_v18  ;;  %2181 = vmatpush.msra.mxu2 %v1962_v20  ;;  %v1945_v27 = vld [vmem:[#allocation11 + $0xc8] sm:$0xff]  ;;  %v1944_v31 = vld [vmem:[#allocation11 + $0xc0] sm:$0xff]  ;;  %v1975_v34 = vld [vmem:[#allocation11 + $0x1b8] sm:$0xff] }
  0x88   : > { %2145 = vmatpush.msra.mxu1 %v1947_v19  ;;  %2111 = vmatpush.msra.mxu0 %v1930_v21  ;;  %v1943_v35 = vld [vmem:[#allocation11 + $0xb8] sm:$0xff]  ;;  %v1958_v36 = vld [vmem:[#allocation11 + $0x130] sm:$0xff]  ;;  %v1957_v40 = vld [vmem:[#allocation11 + $0x128] sm:$0xff] }
  0x89   : > { %2216 = vmatpush.msra.mxu3 %v1978_v22  ;;  %2182 = vmatpush.msra.mxu2 %v1961_v24  ;;  %v1926_v37 = vld [vmem:[#allocation11 + $0x30] sm:$0xff]  ;;  %v1925_v41 = vld [vmem:[#allocation11 + $0x28] sm:$0xff]  ;;  %v1956_v42 = vld [vmem:[#allocation11 + $0x120] sm:$0xff] }
  0x8a   : > { %2146 = vmatpush.msra.mxu1 %v1946_v23  ;;  %2112 = vmatpush.msra.mxu0 %v1929_v25  ;;  %v1974_v38 = vld [vmem:[#allocation11 + $0x1b0] sm:$0xff]  ;;  %v1973_v43 = vld [vmem:[#allocation11 + $0x1a8] sm:$0xff]  ;;  %v1924_v45 = vld [vmem:[#allocation11 + $0x20] sm:$0xff] }
  0x8b   : > { %2217 = vmatpush.msra.mxu3 %v1977_v26  ;;  %2183 = vmatpush.msra.mxu2 %v1960_v28  ;;  %v1942_v39 = vld [vmem:[#allocation11 + $0xb0] sm:$0xff]  ;;  %v1941_v44 = vld [vmem:[#allocation11 + $0xa8] sm:$0xff]  ;;  %v1955_v46 = vld [vmem:[#allocation11 + $0x118] sm:$0xff] }
  0x8c   : > { %2147 = vmatpush.msra.mxu1 %v1945_v27  ;;  %2113 = vmatpush.msra.mxu0 %v1928_v29  ;;  %v1972_v47 = vld [vmem:[#allocation11 + $0x1a0] sm:$0xff]  ;;  %v1923_v48 = vld [vmem:[#allocation11 + $0x18] sm:$0xff]  ;;  %v5220_v52 = vld [vmem:[#allocation5 + $0x10] sm:$0x7f] }
  0x8d   : > { %2218 = vmatpush.msra.mxu3 %v1976_v30  ;;  %2184 = vmatpush.msra.mxu2 %v1959_v32  ;;  %v1940_v49 = vld [vmem:[#allocation11 + $0xa0] sm:$0xff]  ;;  %v5216_v50 = vld [vmem:[#allocation5] sm:$0x7f]  ;;  %v5222_v53 = vld [vmem:[#allocation5 + $0x18] sm:$0x7f]  ;;  %v605_v62 = vperm.slane %v5220_v52, 0 }
  0x8e   : > { %2148 = vmatpush.msra.mxu1 %v1944_v31  ;;  %2114 = vmatpush.msra.mxu0 %v1927_v33  ;;  %v5218_v51 = vld [vmem:[#allocation5 + $0x8] sm:$0x7f]  ;;  %v1971_v54 = vld [vmem:[#allocation11 + $0x198] sm:$0xff]  ;;  %v1954_v56 = vld [vmem:[#allocation11 + $0x110] sm:$0xff]  ;;  %v603_v60 = vperm.slane %v5216_v50, 0  ;;  %v606_v63 = vperm.slane %v5222_v53, 0 }
  0x8f   : > { %2219 = vmatpush.msra.mxu3 %v1975_v34  ;;  %2185 = vmatpush.msra.mxu2 %v1958_v36  ;;  %v1939_v55 = vld [vmem:[#allocation11 + $0x98] sm:$0xff]  ;;  %v1922_v57 = vld [vmem:[#allocation11 + $0x10] sm:$0xff]  ;;  %v604_v61 = vperm.slane %v5218_v51, 0  ;;  %v1953_v0 = vld [vmem:[#allocation11 + $0x108] sm:$0xff]  ;;  %v612_v4 = vrot.slane %v605_v62, 6 }
  0x90   : > { %2149 = vmatpush.msra.mxu1 %v1943_v35  ;;  %2115 = vmatpush.msra.mxu0 %v1926_v37  ;;  %v1970_v58 = vld [vmem:[#allocation11 + $0x190] sm:$0xff]  ;;  %v1921_v1 = vld [vmem:[#allocation11 + $0x8] sm:$0xff]  ;;  %v613_v5 = vrot.slane %v606_v63, 5  ;;  %v1952_v6 = vld [vmem:[#allocation11 + $0x100] sm:$0xff] }
  0x91   : > { %2220 = vmatpush.msra.mxu3 %v1974_v38  ;;  %2186 = vmatpush.msra.mxu2 %v1957_v40  ;;  %v1938_v59 = vld [vmem:[#allocation11 + $0x90] sm:$0xff]  ;;  %v1969_v2 = vld [vmem:[#allocation11 + $0x188] sm:$0xff]  ;;  %v611_v3 = vrot.slane %v604_v61, 7 }
  0x92   : > { %2150 = vmatpush.msra.mxu1 %v1942_v39  ;;  %2116 = vmatpush.msra.mxu0 %v1925_v41  ;;  %v617_v8 = vsel %vm7503_vm1, %v612_v4, %v613_v5  ;;  %v623_v11 = vsel %vm7502_vm3, %v612_v4, %v613_v5  ;;  %v629_v13 = vsel %vm7501_vm4, %v612_v4, %v613_v5  ;;  %v562_v14 = vld [vmem:[%s5194_s1] ss:$8 sm:$0xf] }
  0x93   : > { %2221 = vmatpush.msra.mxu3 %v1973_v43  ;;  %2187 = vmatpush.msra.mxu2 %v1956_v42  ;;  %v615_v7 = vsel %vm614_vm0, %v603_v60, %v611_v3  ;;  %v621_v9 = vsel %vm620_vm2, %v603_v60, %v611_v3  ;;  %v627_v12 = vsel %vm7503_vm1, %v603_v60, %v611_v3  ;;  %v4068_v15 = vld [vmem:[%s5194_s1 + $0x20] ss:$8 sm:$0xf] }
  0x94   : > { %2151 = vmatpush.msra.mxu1 %v1941_v44  ;;  %2117 = vmatpush.msra.mxu0 %v1924_v45  ;;  %v5232_v10 = vsel %vm7500_vm5, %v615_v7, %v617_v8  ;;  %v625_v16 = vsel %vm7499_vm6, %v621_v9, %v623_v11  ;;  %v631_v17 = vsel %vm7498_vm7, %v627_v12, %v629_v13  ;;  %v4069_v20 = vld [vmem:[%s5194_s1 + $0x40] ss:$8 sm:$0xf]  ;;  %v4088_v8 = vld [vmem:[%s5194_s1 + $0x1] ss:$8 sm:$0xf] }
  0x95   : > { %2222 = vmatpush.msra.mxu3 %v1972_v47  ;;  %2188 = vmatpush.msra.mxu2 %v1955_v46  ;;  %v633_v18 = vsel %vm7502_vm3, %v603_v60, %v611_v3  ;;  %v635_v19 = vsel %vm7508_vm8, %v612_v4, %v613_v5  ;;  %v5244_v21 = vrot.slane %v625_v16, 1  ;;  %v5246_v22 = vrot.slane %v631_v17, 2  ;;  %v4070_v25 = vld [vmem:[%s5194_s1 + $0x60] ss:$8 sm:$0xf] }
  0x96   : > { %2152 = vmatpush.msra.mxu1 %v1940_v49  ;;  %2118 = vmatpush.msra.mxu0 %v1923_v48  ;;  %v637_v23 = vsel %vm7497_vm9, %v633_v18, %v635_v19  ;;  %v639_v24 = vsel %vm7501_vm4, %v603_v60, %v611_v3  ;;  %v641_v27 = vsel %vm7507_vm10, %v612_v4, %v613_v5  ;;  %v4071_v30 = vld [vmem:[%s5194_s1 + $0x80] ss:$8 sm:$0xf]  ;;  %v726_v48 = vperm.slane %v5216_v50, 1 }
  0x97   : > { %2223 = vmatpush.msra.mxu3 %v1971_v54  ;;  %2189 = vmatpush.msra.mxu2 %v1954_v56  ;;  %7536 = vst [vmem:[#allocation29_spill] sm:$0xff] %v5246_v22  ;;  %v5251_v26 = vrot.slane %v637_v23, 3  ;;  %v645_v28 = vsel %vm7508_vm8, %v603_v60, %v611_v3  ;;  %v647_v29 = vsel %vm646_vm12, %v613_v5, %v612_v4  ;;  %v4072_v31 = vld [vmem:[%s5194_s1 + $0xa0] ss:$8 sm:$0xf]  ;;  %v727_v49 = vperm.slane %v5218_v51, 1 }
  0x98   : > { %2153 = vmatpush.msra.mxu1 %v1939_v55  ;;  %2119 = vmatpush.msra.mxu0 %v1922_v57  ;;  %v643_v32 = vsel %vm7496_vm11, %v639_v24, %v641_v27  ;;  %v649_v33 = vsel %vm7506_vm13, %v645_v28, %v647_v29  ;;  %v651_v34 = vsel %vm7507_vm10, %v603_v60, %v611_v3  ;;  %v4074_v39 = vld [vmem:[%s5194_s1 + $0xe0] ss:$8 sm:$0xf]  ;;  %v728_v54 = vperm.slane %v5220_v52, 1 }
  0x99   : > { %2224 = vmatpush.msra.mxu3 %v1970_v58  ;;  %2190 = vmatpush.msra.mxu2 %v1953_v0  ;;  %7537 = vst [vmem:[#allocation30_spill] sm:$0xff] %v5251_v26  ;;  %v652_v35 = vsel %vm614_vm0, %v612_v4, %v613_v5  ;;  %v5262_v36 = vrot.slane %v643_v32, 4  ;;  %v5264_v37 = vrot.slane %v649_v33, 5  ;;  %v5271_v41 = vmul.f32 %v5232_v10, %v562_v14  ;;  %v4073_v43 = vld [vmem:[%s5194_s1 + $0xc0] ss:$8 sm:$0xf] }
  0x9a   : > { %2154 = vmatpush.msra.mxu1 %v1938_v59  ;;  %2120 = vmatpush.msra.mxu0 %v1921_v1  ;;  %v654_v38 = vsel %vm7505_vm14, %v652_v35, %v651_v34  ;;  %v5274_v42 = vmul.f32 %v4068_v15, %v5244_v21  ;;  %v5278_v44 = vmul.f32 %v4069_v20, %v5246_v22  ;;  %v729_v55 = vperm.slane %v5222_v53, 1  ;;  %v4089_v9 = vld [vmem:[%s5194_s1 + $0x21] ss:$8 sm:$0xf] }
  0x9b   : > { %2225 = vmatpush.msra.mxu3 %v1969_v2  ;;  %2191 = vmatpush.msra.mxu2 %v1952_v6  ;;  %7538 = vst [vmem:[#allocation31_spill] sm:$0xff] %v5262_v36  ;;  %v5268_v40 = vrot.slane %v654_v38, 6  ;;  %v5281_v45 = vmul.f32 %v4070_v25, %v5251_v26  ;;  %v5284_v46 = vmul.f32 %v4071_v30, %v5262_v36  ;;  %v856_v57 = vperm.slane %v5218_v51, 2  ;;  %v4090_v15 = vld [vmem:[%s5194_s1 + $0x41] ss:$8 sm:$0xf] }
  0x9c   : > { %7539 = vst [vmem:[#allocation32_spill] sm:$0xff] %v5264_v37  ;;  %v5287_v47 = vmul.f32 %v4072_v31, %v5264_v37  ;;  %v670_v56 = vmul.f32 %v4074_v39, %v5232_v10  ;;  %v857_v58 = vperm.slane %v5220_v52, 2  ;;  %v858_v59 = vperm.slane %v5222_v53, 2  ;;  %v4091_v16 = vld [vmem:[%s5194_s1 + $0x61] ss:$8 sm:$0xf] }
  0x9d   : > { %7540 = vst [vmem:[#allocation33_spill] sm:$0xff] %v5268_v40  ;;  %v669_v60 = vmul.f32 %v4073_v43, %v5268_v40  ;;  %v734_v61 = vrot.slane %v727_v49, 7  ;;  %v735_v62 = vrot.slane %v728_v54, 6  ;;  %v736_v63 = vrot.slane %v729_v55, 5 }
  0x9e   : > { %v5299_v0 = vperm.slane %v5216_v50, 2  ;;  %v5301_v1 = vrot.slane %v856_v57, 7  ;;  %v5303_v2 = vrot.slane %v857_v58, 6  ;;  %v5305_v3 = vrot.slane %v858_v59, 5 }
  0x9f   : > { %v737_v4 = vsel %vm614_vm0, %v726_v48, %v734_v61  ;;  %v738_v5 = vsel %vm7503_vm1, %v735_v62, %v736_v63  ;;  %v740_v6 = vsel %vm620_vm2, %v726_v48, %v734_v61  ;;  %v741_v7 = vsel %vm7502_vm3, %v735_v62, %v736_v63  ;;  %v4092_v23 = vld [vmem:[%s5194_s1 + $0x81] ss:$8 sm:$0xf] }
  0xa0   : > { %v5314_v11 = vsel %vm7500_vm5, %v737_v4, %v738_v5  ;;  %v742_v12 = vsel %vm7499_vm6, %v740_v6, %v741_v7  ;;  %v744_v13 = vsel %vm7503_vm1, %v726_v48, %v734_v61  ;;  %v745_v14 = vsel %vm7501_vm4, %v735_v62, %v736_v63  ;;  %v4093_v29 = vld [vmem:[%s5194_s1 + $0xa1] ss:$8 sm:$0xf] }
  0xa1   : > { %v5321_v17 = vrot.slane %v742_v12, 1  ;;  %v746_v18 = vsel %vm7498_vm7, %v744_v13, %v745_v14  ;;  %v748_v19 = vsel %vm7502_vm3, %v726_v48, %v734_v61  ;;  %v749_v20 = vsel %vm7508_vm8, %v735_v62, %v736_v63  ;;  %v4095_v34 = vld [vmem:[%s5194_s1 + $0xe1] ss:$8 sm:$0xf] }
  0xa2   : > { %v5327_v24 = vrot.slane %v746_v18, 2  ;;  %v750_v25 = vsel %vm7497_vm9, %v748_v19, %v749_v20  ;;  %v752_v27 = vsel %vm7501_vm4, %v726_v48, %v734_v61  ;;  %v753_v28 = vsel %vm7507_vm10, %v735_v62, %v736_v63  ;;  %v4094_v49 = vld [vmem:[%s5194_s1 + $0xc1] ss:$8 sm:$0xf] }
  0xa3   : > { %v5333_v30 = vrot.slane %v750_v25, 3  ;;  %v754_v31 = vsel %vm7496_vm11, %v752_v27, %v753_v28  ;;  %v756_v32 = vsel %vm7508_vm8, %v726_v48, %v734_v61  ;;  %v757_v33 = vsel %vm646_vm12, %v736_v63, %v735_v62 }
  0xa4   : > { %v5339_v35 = vrot.slane %v754_v31, 4  ;;  %v758_v38 = vsel %vm7506_vm13, %v756_v32, %v757_v33  ;;  %v760_v39 = vsel %vm7507_vm10, %v726_v48, %v734_v61  ;;  %v761_v43 = vsel %vm614_vm0, %v735_v62, %v736_v63  ;;  %v4113_v31 = vld [vmem:[%s5194_s1 + $0x82] ss:$8 sm:$0xf] }
  0xa5   : > { %v5345_v54 = vrot.slane %v758_v38, 5  ;;  %v762_v55 = vsel %vm7505_vm14, %v761_v43, %v760_v39  ;;  %v771_v57 = vmul.f32 %v4088_v8, %v5314_v11  ;;  %v772_v58 = vmul.f32 %v4089_v9, %v5321_v17  ;;  %v4116_v39 = vld [vmem:[%s5194_s1 + $0xe2] ss:$8 sm:$0xf] }
  0xa6   : > { %v5350_v59 = vrot.slane %v762_v55, 6  ;;  %v773_v4 = vmul.f32 %v4090_v15, %v5327_v24  ;;  %v774_v5 = vmul.f32 %v4091_v16, %v5333_v30  ;;  %v775_v48 = vmul.f32 %v4092_v23, %v5339_v35  ;;  %v4109_v16 = vld [vmem:[%s5194_s1 + $0x2] ss:$8 sm:$0xf] }
  0xa7   : > { %v776_v61 = vmul.f32 %v4093_v29, %v5345_v54  ;;  %v778_v62 = vmul.f32 %v4095_v34, %v5314_v11  ;;  %v792_v63 = vadd.f32 %v771_v57, %v5271_v41  ;;  %v793_v6 = vadd.f32 %v772_v58, %v5274_v42  ;;  %v4112_v23 = vld [vmem:[%s5194_s1 + $0x62] ss:$8 sm:$0xf] }
  0xa8   : > { %v777_v7 = vmul.f32 %v4094_v49, %v5350_v59  ;;  %v794_v8 = vadd.f32 %v773_v4, %v5278_v44  ;;  %v795_v9 = vadd.f32 %v774_v5, %v5281_v45  ;;  %v796_v12 = vadd.f32 %v775_v48, %v5284_v46  ;;  %v4114_v58 = vld [vmem:[%s5194_s1 + $0xa2] ss:$8 sm:$0xf] }
  0xa9   : > { %v797_v13 = vadd.f32 %v776_v61, %v5287_v47  ;;  %v799_v14 = vadd.f32 %v778_v62, %v670_v56  ;;  %v866_v15 = vsel %vm614_vm0, %v5299_v0, %v5301_v1  ;;  %v867_v41 = vsel %vm7503_vm1, %v5303_v2, %v5305_v3  ;;  %v4110_v47 = vld [vmem:[%s5194_s1 + $0x22] ss:$8 sm:$0xf] }
  0xaa   : > { %v798_v42 = vadd.f32 %v777_v7, %v669_v60  ;;  %v5372_v44 = vsel %vm7500_vm5, %v866_v15, %v867_v41  ;;  %v869_v45 = vsel %vm620_vm2, %v5299_v0, %v5301_v1  ;;  %v870_v46 = vsel %vm7502_vm3, %v5303_v2, %v5305_v3  ;;  %v4111_v56 = vld [vmem:[%s5194_s1 + $0x42] ss:$8 sm:$0xf] }
  0xab   : > { %7541 = vst [vmem:[#allocation34_spill] sm:$0xff] %v5372_v44  ;;  %v871_v18 = vsel %vm7499_vm6, %v869_v45, %v870_v46  ;;  %v873_v60 = vsel %vm7503_vm1, %v5299_v0, %v5301_v1  ;;  %v874_v19 = vsel %vm7501_vm4, %v5303_v2, %v5305_v3  ;;  %v877_v20 = vsel %vm7502_vm3, %v5299_v0, %v5301_v1  ;;  %v4115_v62 = vld [vmem:[%s5194_s1 + $0xc2] ss:$8 sm:$0xf] }
  0xac   : > { %v5393_v25 = vrot.slane %v871_v18, 1  ;;  %v875_v27 = vsel %vm7498_vm7, %v873_v60, %v874_v19  ;;  %v878_v28 = vsel %vm7508_vm8, %v5303_v2, %v5305_v3  ;;  %v881_v29 = vsel %vm7501_vm4, %v5299_v0, %v5301_v1 }
  0xad   : > { %v5403_v32 = vrot.slane %v875_v27, 2  ;;  %v879_v33 = vsel %vm7497_vm9, %v877_v20, %v878_v28  ;;  %v882_v34 = vsel %vm7507_vm10, %v5303_v2, %v5305_v3  ;;  %v885_v38 = vsel %vm7508_vm8, %v5299_v0, %v5301_v1 }
  0xae   : > { %v5413_v43 = vrot.slane %v879_v33, 3  ;;  %v883_v49 = vsel %vm7496_vm11, %v881_v29, %v882_v34  ;;  %v886_v55 = vsel %vm646_vm12, %v5305_v3, %v5303_v2  ;;  %v889_v57 = vsel %vm7507_vm10, %v5299_v0, %v5301_v1 }
  0xaf   : > { %v5423_v4 = vrot.slane %v883_v49, 4  ;;  %v887_v5 = vsel %vm7506_vm13, %v885_v38, %v886_v55  ;;  %v890_v48 = vsel %vm614_vm0, %v5303_v2, %v5305_v3  ;;  %v900_v61 = vmul.f32 %v4109_v16, %v5372_v44 }
  0xb0   : > { %v5431_v7 = vrot.slane %v887_v5, 5  ;;  %v891_v15 = vsel %vm7505_vm14, %v890_v48, %v889_v57  ;;  %v901_v41 = vmul.f32 %v4110_v47, %v5393_v25  ;;  %v902_v0 = vmul.f32 %v4111_v56, %v5403_v32 }
  0xb1   : > { %v5436_v1 = vrot.slane %v891_v15, 6  ;;  %v903_v45 = vmul.f32 %v4112_v23, %v5413_v43  ;;  %v904_v46 = vmul.f32 %v4113_v31, %v5423_v4  ;;  %v907_v18 = vmul.f32 %v4116_v39, %v5372_v44  ;;  %v4131_v15 = vld [vmem:[%s5194_s1 + $0x23] ss:$8 sm:$0xf] }
  0xb2   : > { %7542 = vst [vmem:[#allocation35_spill] sm:$0xff] %v5431_v7  ;;  %v905_v2 = vmul.f32 %v4114_v58, %v5431_v7  ;;  %v5442_v3 = vadd.f32 %v900_v61, %v792_v63  ;;  %v5444_v16 = vadd.f32 %v901_v41, %v793_v6  ;;  %v5446_v60 = vadd.f32 %v902_v0, %v794_v8 }
  0xb3   : > { %7543 = vst [vmem:[#allocation36_spill] sm:$0xff] %v5436_v1  ;;  %v906_v47 = vmul.f32 %v4115_v62, %v5436_v1  ;;  %v5449_v19 = vadd.f32 %v903_v45, %v795_v9  ;;  %v5451_v56 = vadd.f32 %v904_v46, %v796_v12  ;;  %v5453_v20 = vadd.f32 %v907_v18, %v799_v14  ;;  %v4130_v62 = vld [vmem:[%s5194_s1 + $0x3] ss:$8 sm:$0xf] }
  0xb4   : > { %v5455_v23 = vadd.f32 %v905_v2, %v797_v13  ;;  %v984_v27 = vperm.slane %v5216_v50, 3  ;;  %v985_v28 = vperm.slane %v5218_v51, 3  ;;  %v986_v63 = vperm.slane %v5220_v52, 3  ;;  %v4132_v18 = vld [vmem:[%s5194_s1 + $0x43] ss:$8 sm:$0xf] }
  0xb5   : > { %v5460_v6 = vadd.f32 %v906_v47, %v798_v42  ;;  %v987_v8 = vperm.slane %v5222_v53, 3  ;;  %v5464_v29 = vperm.slane %v5216_v50, 4  ;;  %v1114_v9 = vperm.slane %v5218_v51, 4 }
  0xb6   : > { %v992_v12 = vrot.slane %v985_v28, 7  ;;  %v993_v14 = vrot.slane %v986_v63, 6  ;;  %v1115_v13 = vperm.slane %v5220_v52, 4  ;;  %v1116_v31 = vperm.slane %v5222_v53, 4 }
  0xb7   : > { %v994_v33 = vrot.slane %v987_v8, 5  ;;  %v5469_v34 = vrot.slane %v1114_v9, 7  ;;  %v5472_v42 = vperm.slane %v5216_v50, 5  ;;  %v4133_v8 = vld [vmem:[%s5194_s1 + $0x63] ss:$8 sm:$0xf] }
  0xb8   : > { %v995_v39 = vsel %vm614_vm0, %v984_v27, %v992_v12  ;;  %v998_v49 = vsel %vm620_vm2, %v984_v27, %v992_v12  ;;  %v1002_v55 = vsel %vm7503_vm1, %v984_v27, %v992_v12  ;;  %v1006_v57 = vsel %vm7502_vm3, %v984_v27, %v992_v12  ;;  %v4137_v9 = vld [vmem:[%s5194_s1 + $0xe3] ss:$8 sm:$0xf] }
  0xb9   : > { %v996_v58 = vsel %vm7503_vm1, %v993_v14, %v994_v33  ;;  %v999_v5 = vsel %vm7502_vm3, %v993_v14, %v994_v33  ;;  %v1003_v48 = vsel %vm7501_vm4, %v993_v14, %v994_v33  ;;  %v1007_v61 = vsel %vm7508_vm8, %v993_v14, %v994_v33 }
  0xba   : > { %v5486_v41 = vsel %vm7500_vm5, %v995_v39, %v996_v58  ;;  %v1000_v0 = vsel %vm7499_vm6, %v998_v49, %v999_v5  ;;  %v1004_v45 = vsel %vm7498_vm7, %v1002_v55, %v1003_v48  ;;  %v1008_v46 = vsel %vm7497_vm9, %v1006_v57, %v1007_v61  ;;  %v4134_v58 = vld [vmem:[%s5194_s1 + $0x83] ss:$8 sm:$0xf] }
  0xbb   : > { %7544 = vst [vmem:[#allocation37_spill] sm:$0xff] %v5486_v41  ;;  %v5492_v2 = vrot.slane %v1000_v0, 1  ;;  %v5494_v47 = vrot.slane %v1004_v45, 2  ;;  %v5496_v28 = vrot.slane %v1008_v46, 3  ;;  %v1010_v63 = vsel %vm7501_vm4, %v984_v27, %v992_v12 }
  0xbc   : > { %v1011_v39 = vsel %vm7507_vm10, %v993_v14, %v994_v33  ;;  %v1014_v49 = vsel %vm7508_vm8, %v984_v27, %v992_v12  ;;  %v1015_v55 = vsel %vm646_vm12, %v994_v33, %v993_v14  ;;  %v1018_v57 = vsel %vm7507_vm10, %v984_v27, %v992_v12  ;;  %v4135_v5 = vld [vmem:[%s5194_s1 + $0xa3] ss:$8 sm:$0xf] }
  0xbd   : > { %v1012_v48 = vsel %vm7496_vm11, %v1010_v63, %v1011_v39  ;;  %v1016_v61 = vsel %vm7506_vm13, %v1014_v49, %v1015_v55  ;;  %v1019_v0 = vsel %vm614_vm0, %v993_v14, %v994_v33  ;;  %v1029_v45 = vmul.f32 %v4130_v62, %v5486_v41  ;;  %v4136_v46 = vld [vmem:[%s5194_s1 + $0xc3] ss:$8 sm:$0xf] }
  0xbe   : > { %v5512_v38 = vrot.slane %v1012_v48, 4  ;;  %v5514_v44 = vrot.slane %v1016_v61, 5  ;;  %v1020_v1 = vsel %vm7505_vm14, %v1019_v0, %v1018_v57  ;;  %v1030_v7 = vmul.f32 %v4131_v15, %v5492_v2 }
  0xbf   : > { %v5518_v27 = vrot.slane %v1020_v1, 6  ;;  %v1031_v12 = vmul.f32 %v4132_v18, %v5494_v47  ;;  %v1032_v63 = vmul.f32 %v4133_v8, %v5496_v28  ;;  %v1036_v39 = vmul.f32 %v4137_v9, %v5486_v41 }
  0xc0   : > { %7545 = vst [vmem:[#allocation38_spill] sm:$0xff] %v5514_v44  ;;  %v1033_v14 = vmul.f32 %v4134_v58, %v5512_v38  ;;  %v1034_v33 = vmul.f32 %v4135_v5, %v5514_v44  ;;  %v1050_v62 = vadd.f32 %v1029_v45, %v5442_v3  ;;  %v1051_v49 = vadd.f32 %v1030_v7, %v5444_v16  ;;  %v4154_v45 = vld [vmem:[%s5194_s1 + $0x64] ss:$8 sm:$0xf] }
  0xc1   : > { %7546 = vst [vmem:[#allocation39_spill] sm:$0xff] %v5518_v27  ;;  %v1035_v55 = vmul.f32 %v4136_v46, %v5518_v27  ;;  %v1052_v1 = vadd.f32 %v1031_v12, %v5446_v60  ;;  %v1053_v15 = vadd.f32 %v1032_v63, %v5449_v19  ;;  %v1057_v18 = vadd.f32 %v1036_v39, %v5453_v20  ;;  %v4151_v19 = vld [vmem:[%s5194_s1 + $0x4] ss:$8 sm:$0xf] }
  0xc2   : > { %v1054_v8 = vadd.f32 %v1033_v14, %v5451_v56  ;;  %v1055_v9 = vadd.f32 %v1034_v33, %v5455_v23  ;;  %v1122_v57 = vrot.slane %v1115_v13, 6  ;;  %v1123_v58 = vrot.slane %v1116_v31, 5  ;;  %v4152_v13 = vld [vmem:[%s5194_s1 + $0x24] ss:$8 sm:$0xf] }
  0xc3   : > { %v1056_v3 = vadd.f32 %v1035_v55, %v5460_v6  ;;  %v1124_v7 = vsel %vm614_vm0, %v5464_v29, %v5469_v34  ;;  %v1127_v16 = vsel %vm620_vm2, %v5464_v29, %v5469_v34  ;;  %v1131_v60 = vsel %vm7503_vm1, %v5464_v29, %v5469_v34  ;;  %v4153_v31 = vld [vmem:[%s5194_s1 + $0x44] ss:$8 sm:$0xf] }
  0xc4   : > { %v1125_v56 = vsel %vm7503_vm1, %v1122_v57, %v1123_v58  ;;  %v1128_v20 = vsel %vm7502_vm3, %v1122_v57, %v1123_v58  ;;  %v1132_v23 = vsel %vm7501_vm4, %v1122_v57, %v1123_v58  ;;  %v1135_v6 = vsel %vm7502_vm3, %v5464_v29, %v5469_v34  ;;  %v4155_v14 = vld [vmem:[%s5194_s1 + $0x84] ss:$8 sm:$0xf] }
  0xc5   : > { %v5553_v5 = vsel %vm7500_vm5, %v1124_v7, %v1125_v56  ;;  %v1129_v48 = vsel %vm7499_vm6, %v1127_v16, %v1128_v20  ;;  %v1133_v61 = vsel %vm7498_vm7, %v1131_v60, %v1132_v23  ;;  %v1136_v0 = vsel %vm7508_vm8, %v1122_v57, %v1123_v58  ;;  %v4156_v60 = vld [vmem:[%s5194_s1 + $0xa4] ss:$8 sm:$0xf] }
  0xc6   : > { %7547 = vst [vmem:[#allocation40_spill] sm:$0xff] %v5553_v5  ;;  %v5559_v46 = vrot.slane %v1129_v48, 1  ;;  %v5561_v12 = vrot.slane %v1133_v61, 2  ;;  %v1137_v63 = vsel %vm7497_vm9, %v1135_v6, %v1136_v0  ;;  %v1139_v39 = vsel %vm7501_vm4, %v5464_v29, %v5469_v34  ;;  %v4158_v56 = vld [vmem:[%s5194_s1 + $0xe4] ss:$8 sm:$0xf] }
  0xc7   : > { %v5568_v33 = vrot.slane %v1137_v63, 3  ;;  %v1140_v55 = vsel %vm7507_vm10, %v1122_v57, %v1123_v58  ;;  %v1143_v7 = vsel %vm7508_vm8, %v5464_v29, %v5469_v34  ;;  %v1144_v16 = vsel %vm646_vm12, %v1123_v58, %v1122_v57  ;;  %v4157_v61 = vld [vmem:[%s5194_s1 + $0xc4] ss:$8 sm:$0xf] }
  0xc8   : > { %7548 = vst [vmem:[#allocation41_spill] sm:$0xff] %v5561_v12  ;;  %v1141_v20 = vsel %vm7496_vm11, %v1139_v39, %v1140_v55  ;;  %v1145_v23 = vsel %vm7506_vm13, %v1143_v7, %v1144_v16  ;;  %v1147_v6 = vsel %vm7507_vm10, %v5464_v29, %v5469_v34  ;;  %v1148_v48 = vsel %vm614_vm0, %v1122_v57, %v1123_v58 }
  0xc9   : > { %7549 = vst [vmem:[#allocation42_spill] sm:$0xff] %v5568_v33  ;;  %v5584_v0 = vrot.slane %v1141_v20, 4  ;;  %v5586_v63 = vrot.slane %v1145_v23, 5  ;;  %v1149_v41 = vsel %vm7505_vm14, %v1148_v48, %v1147_v6  ;;  %v1158_v27 = vmul.f32 %v4151_v19, %v5553_v5 }
  0xca   : > { %v5590_v44 = vrot.slane %v1149_v41, 6  ;;  %v1159_v39 = vmul.f32 %v4152_v13, %v5559_v46  ;;  %v1160_v55 = vmul.f32 %v4153_v31, %v5561_v12  ;;  %v1161_v7 = vmul.f32 %v4154_v45, %v5568_v33  ;;  %v4179_v33 = vld [vmem:[%s5194_s1 + $0xe5] ss:$8 sm:$0xf] }
  0xcb   : > { %7550 = vst [vmem:[#allocation43_spill] sm:$0xff] %v5584_v0  ;;  %v1162_v29 = vmul.f32 %v4155_v14, %v5584_v0  ;;  %v1163_v34 = vmul.f32 %v4156_v60, %v5586_v63  ;;  %v1165_v57 = vmul.f32 %v4158_v56, %v5553_v5  ;;  %v1179_v58 = vadd.f32 %v1158_v27, %v1050_v62  ;;  %v4172_v56 = vld [vmem:[%s5194_s1 + $0x5] ss:$8 sm:$0xf] }
  0xcc   : > { %7551 = vst [vmem:[#allocation44_spill] sm:$0xff] %v5586_v63  ;;  %v1164_v16 = vmul.f32 %v4157_v61, %v5590_v44  ;;  %v1180_v20 = vadd.f32 %v1159_v39, %v1051_v49  ;;  %v1181_v23 = vadd.f32 %v1160_v55, %v1052_v1  ;;  %v1182_v19 = vadd.f32 %v1161_v7, %v1053_v15  ;;  %v4173_v61 = vld [vmem:[%s5194_s1 + $0x25] ss:$8 sm:$0xf] }
  0xcd   : > { %7552 = vst [vmem:[#allocation45_spill] sm:$0xff] %v5590_v44  ;;  %v1183_v41 = vadd.f32 %v1162_v29, %v1054_v8  ;;  %v5599_v6 = vadd.f32 %v1163_v34, %v1055_v9  ;;  %v1186_v13 = vadd.f32 %v1165_v57, %v1057_v18  ;;  %v1244_v31 = vperm.slane %v5220_v52, 5  ;;  %v4174_v34 = vld [vmem:[%s5194_s1 + $0x45] ss:$8 sm:$0xf] }
  0xce   : > { %v1185_v48 = vadd.f32 %v1164_v16, %v1056_v3  ;;  %v1245_v45 = vperm.slane %v5222_v53, 5  ;;  %v7553_v14 = vperm.slane %v5218_v51, 5  ;;  %v5606_v27 = vperm.slane %v5216_v50, 6  ;;  %v4175_v57 = vld [vmem:[%s5194_s1 + $0x65] ss:$8 sm:$0xf] }
  0xcf   : > { %v1251_v62 = vrot.slane %v1244_v31, 6  ;;  %v1372_v49 = vperm.slane %v5218_v51, 6  ;;  %v1373_v1 = vperm.slane %v5220_v52, 6  ;;  %v1374_v15 = vperm.slane %v5222_v53, 6 }
  0xd0   : > { %v1250_v60 = vrot.slane %v7553_v14, 7  ;;  %v1252_v18 = vrot.slane %v1245_v45, 5  ;;  %v4176_v14 = vld [vmem:[%s5194_s1 + $0x85] ss:$8 sm:$0xf] }
  0xd1   : > { %v4177_v0 = vld [vmem:[%s5194_s1 + $0xa5] ss:$8 sm:$0xf] }
  0xd2   : > { %v1253_v8 = vsel %vm614_vm0, %v5472_v42, %v1250_v60  ;;  %v1256_v9 = vsel %vm620_vm2, %v5472_v42, %v1250_v60  ;;  %v1260_v50 = vsel %vm7503_vm1, %v5472_v42, %v1250_v60  ;;  %v1264_v3 = vsel %vm7502_vm3, %v5472_v42, %v1250_v60 }
  0xd3   : > { %v1268_v51 = vsel %vm7501_vm4, %v5472_v42, %v1250_v60  ;;  %v1272_v52 = vsel %vm7508_vm8, %v5472_v42, %v1250_v60  ;;  %v1276_v53 = vsel %vm7507_vm10, %v5472_v42, %v1250_v60  ;;  %v1254_v39 = vsel %vm7503_vm1, %v1251_v62, %v1252_v18 }
  0xd4   : > { %v1257_v55 = vsel %vm7502_vm3, %v1251_v62, %v1252_v18  ;;  %v1261_v7 = vsel %vm7501_vm4, %v1251_v62, %v1252_v18  ;;  %v1265_v29 = vsel %vm7508_vm8, %v1251_v62, %v1252_v18  ;;  %v5634_v16 = vsel %vm7500_vm5, %v1253_v8, %v1254_v39 }
  0xd5   : > { %7554 = vst [vmem:[#allocation46_spill] sm:$0xff] %v5634_v16  ;;  %v1258_v42 = vsel %vm7499_vm6, %v1256_v9, %v1257_v55  ;;  %v1262_v31 = vsel %vm7498_vm7, %v1260_v50, %v1261_v7  ;;  %v1266_v45 = vsel %vm7497_vm9, %v1264_v3, %v1265_v29  ;;  %v1269_v63 = vsel %vm7507_vm10, %v1251_v62, %v1252_v18  ;;  %v4178_v3 = vld [vmem:[%s5194_s1 + $0xc5] ss:$8 sm:$0xf] }
  0xd6   : > { %v5640_v60 = vrot.slane %v1258_v42, 1  ;;  %v5642_v5 = vrot.slane %v1262_v31, 2  ;;  %v5644_v44 = vrot.slane %v1266_v45, 3  ;;  %v1270_v8 = vsel %vm7496_vm11, %v1268_v51, %v1269_v63 }
  0xd7   : > { %v1273_v39 = vsel %vm646_vm12, %v1252_v18, %v1251_v62  ;;  %v1277_v9 = vsel %vm614_vm0, %v1251_v62, %v1252_v18  ;;  %v1287_v50 = vmul.f32 %v4172_v56, %v5634_v16  ;;  %v5654_v55 = vrot.slane %v1270_v8, 4 }
  0xd8   : > { %7555 = vst [vmem:[#allocation47_spill] sm:$0xff] %v5640_v60  ;;  %v1274_v7 = vsel %vm7506_vm13, %v1272_v52, %v1273_v39  ;;  %v1278_v29 = vsel %vm7505_vm14, %v1277_v9, %v1276_v53  ;;  %v1288_v42 = vmul.f32 %v4173_v61, %v5640_v60  ;;  %v1289_v63 = vmul.f32 %v4174_v34, %v5642_v5 }
  0xd9   : > { %7556 = vst [vmem:[#allocation48_spill] sm:$0xff] %v5642_v5  ;;  %v5659_v31 = vrot.slane %v1274_v7, 5  ;;  %v5661_v45 = vrot.slane %v1278_v29, 6  ;;  %v1290_v51 = vmul.f32 %v4175_v57, %v5644_v44  ;;  %v1291_v62 = vmul.f32 %v4176_v14, %v5654_v55  ;;  %v4195_v7 = vld [vmem:[%s5194_s1 + $0x46] ss:$8 sm:$0xf] }
  0xda   : > { %7557 = vst [vmem:[#allocation49_spill] sm:$0xff] %v5644_v44  ;;  %v1294_v18 = vmul.f32 %v4179_v33, %v5634_v16  ;;  %v5667_v56 = vadd.f32 %v1287_v50, %v1179_v58  ;;  %v5669_v8 = vadd.f32 %v1288_v42, %v1180_v20  ;;  %v5673_v61 = vadd.f32 %v1289_v63, %v1181_v23  ;;  %v5681_v58 = vld [vmem:[#allocation7] sm:$0xf]  ;;  %v4196_v29 = vld [vmem:[%s5194_s1 + $0x66] ss:$8 sm:$0xf] }
  0xdb   : > { %7558 = vst [vmem:[#allocation50_spill] sm:$0xff] %v5654_v55  ;;  %v1292_v52 = vmul.f32 %v4177_v0, %v5659_v31  ;;  %v1293_v53 = vmul.f32 %v4178_v3, %v5661_v45  ;;  %v5675_v39 = vadd.f32 %v1290_v51, %v1182_v19  ;;  %v5677_v34 = vadd.f32 %v1291_v62, %v1183_v41  ;;  %v1936_v5 = vld [vmem:[#allocation11 + $0x80] sm:$0xff] }
  0xdc   : > { %7559 = vst [vmem:[#allocation51_spill] sm:$0xff] %v5659_v31  ;;  %v5679_v57 = vadd.f32 %v1294_v18, %v1186_v13  ;;  %v1379_v14 = vrot.slane %v1372_v49, 7  ;;  %v1380_v33 = vrot.slane %v1373_v1, 6  ;;  %v1381_v23 = vrot.slane %v1374_v15, 5 }
  0xdd   : > { %7560 = vst [vmem:[#allocation52_spill] sm:$0xff] %v5661_v45  ;;  %v5684_v0 = vadd.f32 %v1292_v52, %v5599_v6  ;;  %v5686_v20 = vadd.f32 %v1293_v53, %v1185_v48  ;;  %v5689_v9 = vperm.slane %v5681_v58, 0  ;;  %v4193_v48 = vld [vmem:[%s5194_s1 + $0x6] ss:$8 sm:$0xf] }
  0xde   : > { %v1382_v19 = vsel %vm614_vm0, %v5606_v27, %v1379_v14  ;;  %v1385_v41 = vsel %vm620_vm2, %v5606_v27, %v1379_v14  ;;  %v1389_v13 = vsel %vm7503_vm1, %v5606_v27, %v1379_v14  ;;  %v1393_v6 = vsel %vm7502_vm3, %v5606_v27, %v1379_v14  ;;  %v4194_v49 = vld [vmem:[%s5194_s1 + $0x26] ss:$8 sm:$0xf] }
  0xdf   : > { %v1383_v1 = vsel %vm7503_vm1, %v1380_v33, %v1381_v23  ;;  %v1386_v15 = vsel %vm7502_vm3, %v1380_v33, %v1381_v23  ;;  %v1390_v50 = vsel %vm7501_vm4, %v1380_v33, %v1381_v23  ;;  %v1394_v3 = vsel %vm7508_vm8, %v1380_v33, %v1381_v23  ;;  %v4197_v18 = vld [vmem:[%s5194_s1 + $0x86] ss:$8 sm:$0xf] }
  0xe0   : > { %v5708_v42 = vsel %vm7500_vm5, %v1382_v19, %v1383_v1  ;;  %v1387_v63 = vsel %vm7499_vm6, %v1385_v41, %v1386_v15  ;;  %v1391_v51 = vsel %vm7498_vm7, %v1389_v13, %v1390_v50  ;;  %v1395_v62 = vsel %vm7497_vm9, %v1393_v6, %v1394_v3  ;;  %v4198_v52 = vld [vmem:[%s5194_s1 + $0xa6] ss:$8 sm:$0xf] }
  0xe1   : > { %7561 = vst [vmem:[#allocation53_spill] sm:$0xff] %v5708_v42  ;;  %v4200_v53 = vld [vmem:[%s5194_s1 + $0xe6] ss:$8 sm:$0xf]  ;;  %v5716_v16 = vrot.slane %v1387_v63, 1  ;;  %v5718_v45 = vrot.slane %v1391_v51, 2  ;;  %v1397_v19 = vsel %vm7501_vm4, %v5606_v27, %v1379_v14  ;;  %v1398_v1 = vsel %vm7507_vm10, %v1380_v33, %v1381_v23 }
  0xe2   : > { %v5720_v31 = vrot.slane %v1395_v62, 3  ;;  %v1401_v41 = vsel %vm7508_vm8, %v5606_v27, %v1379_v14  ;;  %v1402_v13 = vsel %vm646_vm12, %v1381_v23, %v1380_v33  ;;  %v1405_v6 = vsel %vm7507_vm10, %v5606_v27, %v1379_v14  ;;  %v1920_v15 = vld [vmem:[#allocation11] sm:$0xff]  ;;  %v1937_v50 = vld [vmem:[#allocation11 + $0x88] sm:$0xff] }
  0xe3   : > { %v1968_v3 = vld [vmem:[#allocation11 + $0x180] sm:$0xff]  ;;  %v1399_v51 = vsel %vm7496_vm11, %v1397_v19, %v1398_v1  ;;  %v1403_v62 = vsel %vm7506_vm13, %v1401_v41, %v1402_v13  ;;  %v1406_v55 = vsel %vm614_vm0, %v1380_v33, %v1381_v23  ;;  %v1416_v44 = vmul.f32 %v4193_v48, %v5708_v42  ;;  %2121 = vmatpush.msra.mxu0 %v1920_v15 }
  0xe4   : > { %v4199_v63 = vld [vmem:[%s5194_s1 + $0xc6] ss:$8 sm:$0xf]  ;;  %v5735_v60 = vrot.slane %v1399_v51, 4  ;;  %v5737_v12 = vrot.slane %v1403_v62, 5  ;;  %v1407_v27 = vsel %vm7505_vm14, %v1406_v55, %v1405_v6  ;;  %v1417_v14 = vmul.f32 %v4194_v49, %v5716_v16  ;;  %2155 = vmatpush.msra.mxu1 %v1937_v50  ;;  %2226 = vmatpush.msra.mxu3 %v1968_v3 }
  0xe5   : > { %v4075_v19 = vld [vmem:[%s5194_s1 + $0x100] ss:$8 sm:$0xf]  ;;  %v5742_v1 = vrot.slane %v1407_v27, 6  ;;  %v1418_v33 = vmul.f32 %v4195_v7, %v5718_v45  ;;  %v1419_v23 = vmul.f32 %v4196_v29, %v5720_v31  ;;  %v1423_v48 = vmul.f32 %v4200_v53, %v5708_v42 }
  0xe6   : > { %v4076_v41 = vld [vmem:[%s5194_s1 + $0x120] ss:$8 sm:$0xf]  ;;  %v1420_v13 = vmul.f32 %v4197_v18, %v5735_v60  ;;  %v1421_v55 = vmul.f32 %v4198_v52, %v5737_v12  ;;  %v1437_v49 = vadd.f32 %v1416_v44, %v5667_v56  ;;  %v1438_v6 = vadd.f32 %v1417_v14, %v5669_v8  ;;  %2156 = vmatpush.msra.mxu1 %v1936_v5 }
  0xe7   : > { %v4077_v15 = vld [vmem:[%s5194_s1 + $0x140] ss:$8 sm:$0xf]  ;;  %v1422_v7 = vmul.f32 %v4199_v63, %v5742_v1  ;;  %v1439_v3 = vadd.f32 %v1418_v33, %v5673_v61  ;;  %v1440_v29 = vadd.f32 %v1419_v23, %v5675_v39  ;;  %v1444_v53 = vadd.f32 %v1423_v48, %v5679_v57 }
  0xe8   : > { %v4078_v50 = vld [vmem:[%s5194_s1 + $0x160] ss:$8 sm:$0xf]  ;;  %v1441_v52 = vadd.f32 %v1420_v13, %v5677_v34  ;;  %v1442_v62 = vadd.f32 %v1421_v55, %v5684_v0  ;;  %v1461_v44 = vperm.slane %v5681_v58, 1  ;;  %v1462_v5 = vperm.slane %v5681_v58, 2 }
  0xe9   : > { %v4079_v51 = vld [vmem:[%s5194_s1 + $0x180] ss:$8 sm:$0xf]  ;;  %v5766_v8 = vadd.f32 %v1422_v7, %v5686_v20  ;;  %v1463_v61 = vperm.slane %v5681_v58, 3  ;;  %v5770_v39 = vmul.f32 %v4075_v19, %v5244_v21  ;;  %v5773_v57 = vmul.f32 %v4076_v41, %v5246_v22 }
  0xea   : > { %v4080_v18 = vld [vmem:[%s5194_s1 + $0x1a0] ss:$8 sm:$0xf]  ;;  %v1464_v63 = vrot.slane %v1461_v44, 7  ;;  %v1465_v34 = vrot.slane %v1462_v5, 6  ;;  %v5776_v0 = vmul.f32 %v4077_v15, %v5251_v26  ;;  %v5779_v27 = vmul.f32 %v4078_v50, %v5262_v36 }
  0xeb   : > { %v4081_v56 = vld [vmem:[%s5194_s1 + $0x1c0] ss:$8 sm:$0xf]  ;;  %v1466_v14 = vrot.slane %v1463_v61, 5  ;;  %v5782_v20 = vmul.f32 %v4079_v51, %v5264_v37  ;;  %v5785_v58 = vmul.f32 %v4080_v18, %v5268_v40 }
  0xec   : > { %v5788_v19 = vmul.f32 %v4081_v56, %v5232_v10  ;;  %v1467_v33 = vsel %vm614_vm0, %v5689_v9, %v1464_v63  ;;  %v1470_v23 = vsel %vm620_vm2, %v5689_v9, %v1464_v63  ;;  %v1474_v48 = vsel %vm7503_vm1, %v5689_v9, %v1464_v63  ;;  %v4100_v36 = vld [vmem:[%s5194_s1 + $0x181] ss:$8 sm:$0xf] }
  0xed   : > { %v1478_v41 = vsel %vm7502_vm3, %v5689_v9, %v1464_v63  ;;  %v1468_v13 = vsel %vm7503_vm1, %v1465_v34, %v1466_v14  ;;  %v1471_v55 = vsel %vm7502_vm3, %v1465_v34, %v1466_v14  ;;  %v1475_v10 = vsel %vm7501_vm4, %v1465_v34, %v1466_v14  ;;  %v4101_v26 = vld [vmem:[%s5194_s1 + $0x1a1] ss:$8 sm:$0xf] }
  0xee   : > { %v1479_v15 = vsel %vm7508_vm8, %v1465_v34, %v1466_v14  ;;  %v5803_v50 = vsel %vm7500_vm5, %v1467_v33, %v1468_v13  ;;  %v1472_v7 = vsel %vm7499_vm6, %v1470_v23, %v1471_v55  ;;  %v1476_v51 = vsel %vm7498_vm7, %v1474_v48, %v1475_v10  ;;  %v4082_v33 = vld [vmem:[%s5194_s1 + $0x1e0] ss:$8 sm:$0xf]  ;;  %v4096_v13 = vld [vmem:[%s5194_s1 + $0x101] ss:$8 sm:$0xf] }
  0xef   : > { %v1480_v18 = vsel %vm7497_vm9, %v1478_v41, %v1479_v15  ;;  %v5808_v44 = vrot.slane %v1472_v7, 1  ;;  %v5810_v5 = vrot.slane %v1476_v51, 2  ;;  %v1482_v61 = vsel %vm7501_vm4, %v5689_v9, %v1464_v63  ;;  %v4097_v55 = vld [vmem:[%s5194_s1 + $0x121] ss:$8 sm:$0xf] }
  0xf0   : > { %v5812_v56 = vrot.slane %v1480_v18, 3  ;;  %v1483_v40 = vsel %vm7507_vm10, %v1465_v34, %v1466_v14  ;;  %v1486_v23 = vsel %vm7508_vm8, %v5689_v9, %v1464_v63  ;;  %v1487_v48 = vsel %vm646_vm12, %v1466_v14, %v1465_v34  ;;  %v4098_v10 = vld [vmem:[%s5194_s1 + $0x141] ss:$8 sm:$0xf] }
  0xf1   : > { %v1490_v41 = vsel %vm7507_vm10, %v5689_v9, %v1464_v63  ;;  %v4099_v15 = vld [vmem:[%s5194_s1 + $0x161] ss:$8 sm:$0xf]  ;;  %v1484_v7 = vsel %vm7496_vm11, %v1482_v61, %v1483_v40  ;;  %v1488_v51 = vsel %vm7506_vm13, %v1486_v23, %v1487_v48  ;;  %v1491_v18 = vsel %vm614_vm0, %v1465_v34, %v1466_v14 }
  0xf2   : > { %v1501_v37 = vadd.f32 %v5803_v50, %v1437_v49  ;;  %v5833_v22 = vrot.slane %v1484_v7, 4  ;;  %v5835_v42 = vrot.slane %v1488_v51, 5  ;;  %v1492_v9 = vsel %vm7505_vm14, %v1491_v18, %v1490_v41  ;;  %v4102_v63 = vld [vmem:[%s5194_s1 + $0x1c1] ss:$8 sm:$0xf] }
  0xf3   : > { %v1502_v40 = vadd.f32 %v5808_v44, %v1438_v6  ;;  %v5840_v61 = vrot.slane %v1492_v9, 6  ;;  %v1503_v34 = vadd.f32 %v5810_v5, %v1439_v3  ;;  %v1504_v49 = vadd.f32 %v5812_v56, %v1440_v29  ;;  %v4103_v23 = vld [vmem:[%s5194_s1 + $0x1e1] ss:$8 sm:$0xf] }
  0xf4   : > { %v1508_v14 = vadd.f32 %v5803_v50, %v1444_v53  ;;  %2009 = vst [vmem:[#allocation1] ss:$9 sm:$0xff] %v1501_v37  ;;  %v1505_v48 = vadd.f32 %v5833_v22, %v1441_v52  ;;  %v1506_v41 = vadd.f32 %v5835_v42, %v1442_v62  ;;  %v678_v6 = vmul.f32 %v4082_v33, %v5244_v21  ;;  %v4117_v51 = vld [vmem:[%s5194_s1 + $0x102] ss:$8 sm:$0xf] }
  0xf5   : > { %2011 = vst [vmem:[#allocation1 + $0x1] ss:$9 sm:$0xff] %v1502_v40  ;;  %v779_v7 = vmul.f32 %v4096_v13, %v5321_v17  ;;  %v4118_v3 = vld [vmem:[%s5194_s1 + $0x122] ss:$8 sm:$0xf]  ;;  %v1507_v37 = vadd.f32 %v5840_v61, %v5766_v8  ;;  %v780_v53 = vmul.f32 %v4097_v55, %v5327_v24  ;;  %v781_v52 = vmul.f32 %v4098_v10, %v5333_v30 }
  0xf6   : > { %v4119_v18 = vld [vmem:[%s5194_s1 + $0x142] ss:$8 sm:$0xf]  ;;  %2013 = vst [vmem:[#allocation1 + $0x2] ss:$9 sm:$0xff] %v1503_v34  ;;  %v782_v62 = vmul.f32 %v4099_v15, %v5339_v35  ;;  %v783_v33 = vmul.f32 %v4100_v36, %v5345_v54  ;;  %v784_v13 = vmul.f32 %v4101_v26, %v5350_v59  ;;  %v785_v40 = vmul.f32 %v4102_v63, %v5314_v11 }
  0xf7   : > { %v4120_v29 = vld [vmem:[%s5194_s1 + $0x162] ss:$8 sm:$0xf]  ;;  %2015 = vst [vmem:[#allocation1 + $0x3] ss:$9 sm:$0xff] %v1504_v49  ;;  %v786_v8 = vmul.f32 %v4103_v23, %v5321_v17  ;;  %v800_v10 = vadd.f32 %v779_v7, %v5770_v39  ;;  %v801_v15 = vadd.f32 %v780_v53, %v5773_v57  ;;  %v802_v34 = vadd.f32 %v781_v52, %v5776_v0 }
  0xf8   : > { %v4121_v9 = vld [vmem:[%s5194_s1 + $0x182] ss:$8 sm:$0xf]  ;;  %2017 = vst [vmem:[#allocation1 + $0x4] ss:$9 sm:$0xff] %v1505_v48  ;;  %v803_v36 = vadd.f32 %v782_v62, %v5779_v27  ;;  %v804_v26 = vadd.f32 %v783_v33, %v5782_v20  ;;  %v805_v11 = vadd.f32 %v784_v13, %v5785_v58  ;;  %v806_v17 = vadd.f32 %v785_v40, %v5788_v19 }
  0xf9   : > { %v4122_v21 = vld [vmem:[%s5194_s1 + $0x1a2] ss:$8 sm:$0xf]  ;;  %2019 = vst [vmem:[#allocation1 + $0x5] ss:$9 sm:$0xff] %v1506_v41  ;;  %v807_v63 = vadd.f32 %v786_v8, %v678_v6  ;;  %v908_v57 = vmul.f32 %v4117_v51, %v5393_v25  ;;  %v909_v0 = vmul.f32 %v4118_v3, %v5403_v32  ;;  %v910_v27 = vmul.f32 %v4119_v18, %v5413_v43 }
  0xfa   : > { %v4123_v55 = vld [vmem:[%s5194_s1 + $0x1c2] ss:$8 sm:$0xf]  ;;  %v4138_v23 = vld [vmem:[%s5194_s1 + $0x103] ss:$8 sm:$0xf]  ;;  %v911_v20 = vmul.f32 %v4120_v29, %v5423_v4 }
  0xfb   : > { %v4124_v49 = vld [vmem:[%s5194_s1 + $0x1e2] ss:$8 sm:$0xf]  ;;  %v4139_v48 = vld [vmem:[%s5194_s1 + $0x123] ss:$8 sm:$0xf]  ;;  %v929_v33 = vadd.f32 %v908_v57, %v800_v10  ;;  %v930_v3 = vadd.f32 %v909_v0, %v801_v15  ;;  %v931_v18 = vadd.f32 %v910_v27, %v802_v34 }
  0xfc   : > { %v4140_v39 = vld [vmem:[%s5194_s1 + $0x143] ss:$8 sm:$0xf]  ;;  %2021 = vst [vmem:[#allocation1 + $0x6] ss:$9 sm:$0xff] %v1507_v37  ;;  %v915_v62 = vmul.f32 %v4124_v49, %v5393_v25  ;;  %v932_v13 = vadd.f32 %v911_v20, %v803_v36  ;;  %v1038_v25 = vmul.f32 %v4139_v48, %v5494_v47 }
  0xfd   : > { %v4141_v7 = vld [vmem:[%s5194_s1 + $0x163] ss:$8 sm:$0xf]  ;;  %2023 = vst [vmem:[#allocation1 + $0x7] ss:$9 sm:$0xff] %v1508_v14  ;;  %v1039_v10 = vmul.f32 %v4140_v39, %v5496_v28 }
  0xfe   : > { %v4142_v58 = vld [vmem:[%s5194_s1 + $0x183] ss:$8 sm:$0xf]  ;;  %v1040_v15 = vmul.f32 %v4141_v7, %v5512_v38  ;;  %v4161_v34 = vld [vmem:[%s5194_s1 + $0x144] ss:$8 sm:$0xf]  ;;  %v1059_v20 = vadd.f32 %v1038_v25, %v930_v3 }
  0xff   : > { %v7562_v19 = vld [vmem:[#allocation35_spill] sm:$0xff]  ;;  %v7563_v6 = vld [vmem:[#allocation36_spill] sm:$0xff]  ;;  %v7564_v52 = vld [vmem:[#allocation34_spill] sm:$0xff] }
 0x100   : > { %v912_v41 = vmul.f32 %v4121_v9, %v7562_v19  ;;  %v913_v53 = vmul.f32 %v4122_v21, %v7563_v6  ;;  %v914_v37 = vmul.f32 %v4123_v55, %v7564_v52  ;;  %v4143_v51 = vld [vmem:[%s5194_s1 + $0x1a3] ss:$8 sm:$0xf]  ;;  %v936_v19 = vadd.f32 %v915_v62, %v807_v63  ;;  %v4159_v21 = vld [vmem:[%s5194_s1 + $0x104] ss:$8 sm:$0xf] }
 0x101   : > { %v4144_v29 = vld [vmem:[%s5194_s1 + $0x1c3] ss:$8 sm:$0xf]  ;;  %v4160_v6 = vld [vmem:[%s5194_s1 + $0x124] ss:$8 sm:$0xf]  ;;  %v1037_v55 = vmul.f32 %v4138_v23, %v5492_v2  ;;  %v1061_v39 = vadd.f32 %v1040_v15, %v932_v13 }
 0x102   : > { %v4145_v40 = vld [vmem:[%s5194_s1 + $0x1e3] ss:$8 sm:$0xf]  ;;  %v933_v14 = vadd.f32 %v912_v41, %v804_v26  ;;  %v934_v8 = vadd.f32 %v913_v53, %v805_v11  ;;  %v935_v9 = vadd.f32 %v914_v37, %v806_v17  ;;  %v4162_v36 = vld [vmem:[%s5194_s1 + $0x164] ss:$8 sm:$0xf]  ;;  %v1060_v41 = vadd.f32 %v1039_v10, %v931_v18 }
 0x103   : > { %v7565_v49 = vld [vmem:[#allocation38_spill] sm:$0xff]  ;;  %v7566_v11 = vld [vmem:[#allocation39_spill] sm:$0xff]  ;;  %v7567_v63 = vld [vmem:[#allocation37_spill] sm:$0xff]  ;;  %v1044_v23 = vmul.f32 %v4145_v40, %v5492_v2  ;;  %v1058_v48 = vadd.f32 %v1037_v55, %v929_v33  ;;  %v1166_v2 = vmul.f32 %v4159_v21, %v5559_v46 }
 0x104   : > { %v1041_v26 = vmul.f32 %v4142_v58, %v7565_v49  ;;  %v1042_v17 = vmul.f32 %v4143_v51, %v7566_v11  ;;  %v1043_v57 = vmul.f32 %v4144_v29, %v7567_v63  ;;  %v4163_v0 = vld [vmem:[%s5194_s1 + $0x184] ss:$8 sm:$0xf]  ;;  %v4180_v49 = vld [vmem:[%s5194_s1 + $0x105] ss:$8 sm:$0xf] }
 0x105   : > { %v4164_v27 = vld [vmem:[%s5194_s1 + $0x1a4] ss:$8 sm:$0xf]  ;;  %v1065_v62 = vadd.f32 %v1044_v23, %v936_v19  ;;  %v4181_v51 = vld [vmem:[%s5194_s1 + $0x125] ss:$8 sm:$0xf] }
 0x106   : > { %v4165_v7 = vld [vmem:[%s5194_s1 + $0x1c4] ss:$8 sm:$0xf]  ;;  %v1062_v52 = vadd.f32 %v1041_v26, %v933_v14  ;;  %v1063_v37 = vadd.f32 %v1042_v17, %v934_v8  ;;  %v1064_v58 = vadd.f32 %v1043_v57, %v935_v9  ;;  %v4182_v55 = vld [vmem:[%s5194_s1 + $0x145] ss:$8 sm:$0xf] }
 0x107   : > { %v4166_v53 = vld [vmem:[%s5194_s1 + $0x1e4] ss:$8 sm:$0xf]  ;;  %v4185_v17 = vld [vmem:[%s5194_s1 + $0x1a5] ss:$8 sm:$0xf] }
 0x108   : > { %v2026_v11 = vld [vmem:[#allocation1 + $0x12] sm:$0xff]  ;;  %v2024_v29 = vld [vmem:[#allocation1] sm:$0xff]  ;;  %v2025_v19 = vld [vmem:[#allocation1 + $0x9] sm:$0xff] }
 0x109   : > { %v7568_v40 = vld [vmem:[#allocation41_spill] sm:$0xff]  ;;  %v7569_v33 = vld [vmem:[#allocation42_spill] sm:$0xff]  ;;  %v7570_v18 = vld [vmem:[#allocation43_spill] sm:$0xff]  ;;  %2192 = vmatmul.f32.vlgmr.msra.gmra.mxu2 %v2026_v11  ;;  %2122 = vmatmul.f32.vlgmr.msra.gmra.mxu0 %v2024_v29 }
 0x10a   : > { %v1167_v63 = vmul.f32 %v4160_v6, %v7568_v40  ;;  %v1168_v3 = vmul.f32 %v4161_v34, %v7569_v33  ;;  %v1169_v13 = vmul.f32 %v4162_v36, %v7570_v18  ;;  %v2027_v14 = vld [vmem:[#allocation1 + $0x1b] sm:$0xff]  ;;  %v7571_v8 = vld [vmem:[#allocation44_spill] sm:$0xff]  ;;  %2157 = vmatmul.f32.vlgmr.msra.gmra.mxu1 %v2025_v19  ;;  %v1173_v34 = vmul.f32 %v4166_v53, %v5559_v46  ;;  %v7574_v19 = vld [vmem:[#allocation47_spill] sm:$0xff] }
 0x10b   : > { %v1170_v9 = vmul.f32 %v4163_v0, %v7571_v8  ;;  %v7572_v25 = vld [vmem:[#allocation45_spill] sm:$0xff]  ;;  %v7573_v21 = vld [vmem:[#allocation40_spill] sm:$0xff]  ;;  %2227 = vmatmul.f32.vlgmr.msra.gmra.mxu3 %v2027_v14  ;;  %v1187_v36 = vadd.f32 %v1166_v2, %v1058_v48 }
 0x10c   : > { %v1171_v10 = vmul.f32 %v4164_v27, %v7572_v25  ;;  %v1172_v15 = vmul.f32 %v4165_v7, %v7573_v21  ;;  %v4183_v6 = vld [vmem:[%s5194_s1 + $0x165] ss:$8 sm:$0xf]  ;;  %v1188_v26 = vadd.f32 %v1167_v63, %v1059_v20  ;;  %v1189_v57 = vadd.f32 %v1168_v3, %v1060_v41  ;;  %v4201_v48 = vld [vmem:[%s5194_s1 + $0x106] ss:$8 sm:$0xf] }
 0x10d   : > { %v4184_v11 = vld [vmem:[%s5194_s1 + $0x185] ss:$8 sm:$0xf]  ;;  %v1190_v23 = vadd.f32 %v1169_v13, %v1061_v39  ;;  %v1191_v0 = vadd.f32 %v1170_v9, %v1062_v52  ;;  %v1194_v14 = vadd.f32 %v1173_v34, %v1065_v62  ;;  %v1295_v21 = vmul.f32 %v4180_v49, %v7574_v19  ;;  %v4202_v20 = vld [vmem:[%s5194_s1 + $0x126] ss:$8 sm:$0xf] }
 0x10e   : > { %v1192_v29 = vadd.f32 %v1171_v10, %v1063_v37  ;;  %v4186_v27 = vld [vmem:[%s5194_s1 + $0x1c5] ss:$8 sm:$0xf]  ;;  %v1193_v7 = vadd.f32 %v1172_v15, %v1064_v58  ;;  %v4203_v58 = vld [vmem:[%s5194_s1 + $0x146] ss:$8 sm:$0xf] }
 0x10f   : > { %v4187_v25 = vld [vmem:[%s5194_s1 + $0x1e5] ss:$8 sm:$0xf]  ;;  %v4204_v9 = vld [vmem:[%s5194_s1 + $0x166] ss:$8 sm:$0xf]  ;;  %v1316_v15 = vadd.f32 %v1295_v21, %v1187_v36  ;;  %v1425_v36 = vmul.f32 %v4202_v20, %v5718_v45 }
 0x110   : > { %v7575_v46 = vld [vmem:[#allocation48_spill] sm:$0xff]  ;;  %v7576_v2 = vld [vmem:[#allocation49_spill] sm:$0xff]  ;;  %v7577_v41 = vld [vmem:[#allocation50_spill] sm:$0xff]  ;;  %v1302_v49 = vmul.f32 %v4187_v25, %v7574_v19  ;;  %v1424_v25 = vmul.f32 %v4201_v48, %v5716_v16 }
 0x111   : > { %v1296_v53 = vmul.f32 %v4181_v51, %v7575_v46  ;;  %v1297_v63 = vmul.f32 %v4182_v55, %v7576_v2  ;;  %v1298_v39 = vmul.f32 %v4183_v6, %v7577_v41  ;;  %v7578_v3 = vld [vmem:[#allocation51_spill] sm:$0xff]  ;;  %v7579_v37 = vld [vmem:[#allocation52_spill] sm:$0xff]  ;;  %v7580_v62 = vld [vmem:[#allocation46_spill] sm:$0xff] }
 0x112   : > { %v1299_v52 = vmul.f32 %v4184_v11, %v7578_v3  ;;  %v1300_v13 = vmul.f32 %v4185_v17, %v7579_v37  ;;  %v1301_v10 = vmul.f32 %v4186_v27, %v7580_v62  ;;  %v4205_v34 = vld [vmem:[%s5194_s1 + $0x186] ss:$8 sm:$0xf]  ;;  %v1323_v37 = vadd.f32 %v1302_v49, %v1194_v14  ;;  %v4085_v48 = vld [vmem:[%s5194_s1 + $0x240] ss:$8 sm:$0xf] }
 0x113   : > { %v1317_v51 = vadd.f32 %v1296_v53, %v1188_v26  ;;  %v4206_v46 = vld [vmem:[%s5194_s1 + $0x1a6] ss:$8 sm:$0xf]  ;;  %v1318_v55 = vadd.f32 %v1297_v63, %v1189_v57  ;;  %v1319_v2 = vadd.f32 %v1298_v39, %v1190_v23  ;;  %v1426_v26 = vmul.f32 %v4203_v58, %v5720_v31  ;;  %v4086_v20 = vld [vmem:[%s5194_s1 + $0x260] ss:$8 sm:$0xf] }
 0x114   : > { %v1320_v6 = vadd.f32 %v1299_v52, %v1191_v0  ;;  %v1321_v41 = vadd.f32 %v1300_v13, %v1192_v29  ;;  %v4207_v8 = vld [vmem:[%s5194_s1 + $0x1c6] ss:$8 sm:$0xf]  ;;  %v1322_v17 = vadd.f32 %v1301_v10, %v1193_v7  ;;  %v1427_v27 = vmul.f32 %v4204_v9, %v5735_v60  ;;  %v4083_v0 = vld [vmem:[%s5194_s1 + $0x200] ss:$8 sm:$0xf] }
 0x115   : > { %v4208_v11 = vld [vmem:[%s5194_s1 + $0x1e6] ss:$8 sm:$0xf]  ;;  %v1428_v57 = vmul.f32 %v4205_v34, %v5737_v12  ;;  %v1429_v23 = vmul.f32 %v4206_v46, %v5742_v1  ;;  %v4084_v29 = vld [vmem:[%s5194_s1 + $0x220] ss:$8 sm:$0xf]  ;;  %v1445_v21 = vadd.f32 %v1424_v25, %v1316_v15  ;;  %v1446_v53 = vadd.f32 %v1425_v36, %v1317_v51 }
 0x116   : > { %v7581_v7 = vld [vmem:[#allocation53_spill] sm:$0xff]  ;;  %v1431_v19 = vmul.f32 %v4208_v11, %v5716_v16  ;;  %v1447_v52 = vadd.f32 %v1426_v26, %v1318_v55  ;;  %v1448_v13 = vadd.f32 %v1427_v27, %v1319_v2  ;;  %v7583_v27 = vld [vmem:[#allocation30_spill] sm:$0xff] }
 0x117   : > { %v1430_v14 = vmul.f32 %v4207_v8, %v7581_v7  ;;  %v4087_v63 = vld [vmem:[%s5194_s1 + $0x280] ss:$8 sm:$0xf]  ;;  %v4104_v39 = vld [vmem:[%s5194_s1 + $0x201] ss:$8 sm:$0xf]  ;;  %v1449_v46 = vadd.f32 %v1428_v57, %v1320_v6  ;;  %v1450_v58 = vadd.f32 %v1429_v23, %v1321_v41  ;;  %v1509_v16 = vadd.f32 %v5808_v44, %v1445_v21 }
 0x118   : > { %v4105_v9 = vld [vmem:[%s5194_s1 + $0x221] ss:$8 sm:$0xf]  ;;  %v1452_v49 = vadd.f32 %v1431_v19, %v1323_v37  ;;  %v1510_v15 = vadd.f32 %v5810_v5, %v1446_v53  ;;  %v4125_v34 = vld [vmem:[%s5194_s1 + $0x202] ss:$8 sm:$0xf]  ;;  %v1511_v2 = vadd.f32 %v5812_v56, %v1447_v52  ;;  %v1512_v55 = vadd.f32 %v5833_v22, %v1448_v13 }
 0x119   : > { %v4106_v62 = vld [vmem:[%s5194_s1 + $0x241] ss:$8 sm:$0xf]  ;;  %v1451_v8 = vadd.f32 %v1430_v14, %v1322_v17  ;;  %v1513_v41 = vadd.f32 %v5835_v42, %v1449_v46  ;;  %v1514_v6 = vadd.f32 %v5840_v61, %v1450_v58  ;;  %v4126_v11 = vld [vmem:[%s5194_s1 + $0x222] ss:$8 sm:$0xf]  ;;  %v680_v57 = vmul.f32 %v4084_v29, %v7583_v27 }
 0x11a   : > { %v4107_v10 = vld [vmem:[%s5194_s1 + $0x261] ss:$8 sm:$0xf]  ;;  %v4127_v37 = vld [vmem:[%s5194_s1 + $0x242] ss:$8 sm:$0xf]  ;;  %v1516_v25 = vadd.f32 %v5808_v44, %v1452_v49  ;;  %v789_v29 = vmul.f32 %v4106_v62, %v5339_v35 }
 0x11b   : > { %v4108_v51 = vld [vmem:[%s5194_s1 + $0x281] ss:$8 sm:$0xf]  ;;  %v1515_v17 = vadd.f32 %v5803_v50, %v1451_v8  ;;  %2028 = vst [vmem:[#allocation1] ss:$9 sm:$0xff] %v1509_v16  ;;  %v787_v50 = vmul.f32 %v4104_v39, %v5327_v24  ;;  %v790_v8 = vmul.f32 %v4107_v10, %v5345_v54  ;;  %v916_v16 = vmul.f32 %v4125_v34, %v5403_v32 }
 0x11c   : > { %v7582_v36 = vld [vmem:[#allocation29_spill] sm:$0xff]  ;;  %2029 = vst [vmem:[#allocation1 + $0x1] ss:$9 sm:$0xff] %v1510_v15  ;;  %v7584_v19 = vld [vmem:[#allocation31_spill] sm:$0xff]  ;;  %v7585_v53 = vld [vmem:[#allocation32_spill] sm:$0xff]  ;;  %v917_v24 = vmul.f32 %v4126_v11, %v5413_v43  ;;  %v918_v39 = vmul.f32 %v4127_v37, %v5423_v4 }
 0x11d   : > { %v679_v26 = vmul.f32 %v4083_v0, %v7582_v36  ;;  %v4128_v23 = vld [vmem:[%s5194_s1 + $0x262] ss:$8 sm:$0xf]  ;;  %v4146_v14 = vld [vmem:[%s5194_s1 + $0x203] ss:$8 sm:$0xf]  ;;  %v681_v21 = vmul.f32 %v4085_v48, %v7584_v19  ;;  %v682_v52 = vmul.f32 %v4086_v20, %v7585_v53  ;;  %v788_v0 = vmul.f32 %v4105_v9, %v5333_v30 }
 0x11e   : > { %v4129_v7 = vld [vmem:[%s5194_s1 + $0x282] ss:$8 sm:$0xf]  ;;  %v4147_v44 = vld [vmem:[%s5194_s1 + $0x223] ss:$8 sm:$0xf]  ;;  %v791_v48 = vmul.f32 %v4108_v51, %v5350_v59  ;;  %v1045_v43 = vmul.f32 %v4146_v14, %v5494_v47 }
 0x11f   : > { %v7586_v13 = vld [vmem:[#allocation33_spill] sm:$0xff]  ;;  %2030 = vst [vmem:[#allocation1 + $0x2] ss:$9 sm:$0xff] %v1511_v2  ;;  %v809_v35 = vadd.f32 %v788_v0, %v680_v57  ;;  %v810_v9 = vadd.f32 %v789_v29, %v681_v21  ;;  %v811_v54 = vadd.f32 %v790_v8, %v682_v52  ;;  %v7587_v15 = vld [vmem:[#allocation35_spill] sm:$0xff]  ;;  %v7588_v2 = vld [vmem:[#allocation36_spill] sm:$0xff]  ;;  %v1046_v11 = vmul.f32 %v4147_v44, %v5496_v28 }
 0x120   : > { %v683_v46 = vmul.f32 %v4087_v63, %v7586_v13  ;;  %v4148_v58 = vld [vmem:[%s5194_s1 + $0x243] ss:$8 sm:$0xf]  ;;  %2031 = vst [vmem:[#allocation1 + $0x3] ss:$9 sm:$0xff] %v1512_v55  ;;  %v808_v63 = vadd.f32 %v787_v50, %v679_v26  ;;  %v919_v51 = vmul.f32 %v4128_v23, %v7587_v15  ;;  %v920_v32 = vmul.f32 %v4129_v7, %v7588_v2 }
 0x121   : > { %v4149_v49 = vld [vmem:[%s5194_s1 + $0x263] ss:$8 sm:$0xf]  ;;  %v4167_v30 = vld [vmem:[%s5194_s1 + $0x204] ss:$8 sm:$0xf]  ;;  %v938_v4 = vadd.f32 %v917_v24, %v809_v35  ;;  %v1047_v37 = vmul.f32 %v4148_v58, %v5512_v38 }
 0x122   : > { %v4150_v20 = vld [vmem:[%s5194_s1 + $0x283] ss:$8 sm:$0xf]  ;;  %2032 = vst [vmem:[#allocation1 + $0x4] ss:$9 sm:$0xff] %v1513_v41  ;;  %v812_v62 = vadd.f32 %v791_v48, %v683_v46  ;;  %v937_v34 = vadd.f32 %v916_v16, %v808_v63  ;;  %v939_v41 = vadd.f32 %v918_v39, %v810_v9  ;;  %v1174_v21 = vmul.f32 %v4167_v30, %v7568_v40 }
 0x123   : > { %v4168_v10 = vld [vmem:[%s5194_s1 + $0x224] ss:$8 sm:$0xf]  ;;  %2033 = vst [vmem:[#allocation1 + $0x5] ss:$9 sm:$0xff] %v1514_v6  ;;  %v940_v6 = vadd.f32 %v919_v51, %v811_v54  ;;  %v1067_v14 = vadd.f32 %v1046_v11, %v938_v4 }
 0x124   : > { %v4169_v59 = vld [vmem:[%s5194_s1 + $0x244] ss:$8 sm:$0xf]  ;;  %2034 = vst [vmem:[#allocation1 + $0x6] ss:$9 sm:$0xff] %v1515_v17  ;;  %v941_v26 = vadd.f32 %v920_v32, %v812_v62  ;;  %v1066_v17 = vadd.f32 %v1045_v43, %v937_v34  ;;  %v1068_v19 = vadd.f32 %v1047_v37, %v939_v41  ;;  %v1175_v52 = vmul.f32 %v4168_v10, %v7569_v33 }
 0x125   : > { %v4170_v55 = vld [vmem:[%s5194_s1 + $0x264] ss:$8 sm:$0xf]  ;;  %2035 = vst [vmem:[#allocation1 + $0x7] ss:$9 sm:$0xff] %v1516_v25  ;;  %v1176_v13 = vmul.f32 %v4169_v59, %v7570_v18 }
 0x126   : > { %v4171_v36 = vld [vmem:[%s5194_s1 + $0x284] ss:$8 sm:$0xf]  ;;  %v4188_v7 = vld [vmem:[%s5194_s1 + $0x205] ss:$8 sm:$0xf]  ;;  %v1195_v8 = vadd.f32 %v1174_v21, %v1066_v17  ;;  %v1196_v63 = vadd.f32 %v1175_v52, %v1067_v14 }
 0x127   : > { %v7589_v27 = vld [vmem:[#allocation38_spill] sm:$0xff]  ;;  %v7590_v23 = vld [vmem:[#allocation39_spill] sm:$0xff]  ;;  %v6007_v44 = vld [vmem:[#allocation8] sm:$0x7f]  ;;  %v1197_v16 = vadd.f32 %v1176_v13, %v1068_v19 }
 0x128   : > { %v1048_v57 = vmul.f32 %v4149_v49, %v7589_v27  ;;  %v1049_v47 = vmul.f32 %v4150_v20, %v7590_v23  ;;  %v4189_v28 = vld [vmem:[%s5194_s1 + $0x225] ss:$8 sm:$0xf]  ;;  %v4209_v20 = vld [vmem:[%s5194_s1 + $0x206] ss:$8 sm:$0xf] }
 0x129   : > { %v4190_v53 = vld [vmem:[%s5194_s1 + $0x245] ss:$8 sm:$0xf]  ;;  %v4210_v30 = vld [vmem:[%s5194_s1 + $0x226] ss:$8 sm:$0xf]  ;;  %v1432_v41 = vmul.f32 %v4209_v20, %v5718_v45 }
 0x12a   : > { %v1069_v38 = vadd.f32 %v1048_v57, %v940_v6  ;;  %v1070_v25 = vadd.f32 %v1049_v47, %v941_v26  ;;  %v4191_v46 = vld [vmem:[%s5194_s1 + $0x265] ss:$8 sm:$0xf]  ;;  %v4211_v35 = vld [vmem:[%s5194_s1 + $0x246] ss:$8 sm:$0xf]  ;;  %v1433_v6 = vmul.f32 %v4210_v30, %v5720_v31 }
 0x12b   : > { %v4192_v50 = vld [vmem:[%s5194_s1 + $0x285] ss:$8 sm:$0xf]  ;;  %v1306_v62 = vmul.f32 %v4191_v46, %v7578_v3  ;;  %v4212_v15 = vld [vmem:[%s5194_s1 + $0x266] ss:$8 sm:$0xf]  ;;  %v1434_v26 = vmul.f32 %v4211_v35, %v5735_v60 }
 0x12c   : > { %v7591_v58 = vld [vmem:[#allocation44_spill] sm:$0xff]  ;;  %v7592_v29 = vld [vmem:[#allocation45_spill] sm:$0xff]  ;;  %v7595_v39 = vld [vmem:[#allocation50_spill] sm:$0xff]  ;;  %v1435_v47 = vmul.f32 %v4212_v15, %v5737_v12  ;;  %v6035_v31 = vperm.slane %v6007_v44, 0 }
 0x12d   : > { %v1177_v0 = vmul.f32 %v4170_v55, %v7591_v58  ;;  %v1178_v40 = vmul.f32 %v4171_v36, %v7592_v29  ;;  %v7593_v48 = vld [vmem:[#allocation48_spill] sm:$0xff]  ;;  %v7594_v24 = vld [vmem:[#allocation49_spill] sm:$0xff]  ;;  %v1305_v18 = vmul.f32 %v4190_v53, %v7595_v39  ;;  %v6023_v32 = vld [vmem:[#allocation8 + $0x10] sm:$0x7f] }
 0x12e   : > { %v1303_v49 = vmul.f32 %v4188_v7, %v7593_v48  ;;  %v1304_v33 = vmul.f32 %v4189_v28, %v7594_v24  ;;  %v7596_v10 = vld [vmem:[#allocation52_spill] sm:$0xff]  ;;  %v6021_v2 = vld [vmem:[#allocation8 + $0x8] sm:$0x7f]  ;;  %v6025_v34 = vld [vmem:[#allocation8 + $0x18] sm:$0x7f] }
 0x12f   : > { %v1198_v9 = vadd.f32 %v1177_v0, %v1069_v38  ;;  %v1199_v54 = vadd.f32 %v1178_v40, %v1070_v25  ;;  %v1307_v59 = vmul.f32 %v4192_v50, %v7596_v10  ;;  %v4213_v51 = vld [vmem:[%s5194_s1 + $0x286] ss:$8 sm:$0xf]  ;;  %v1326_v4 = vadd.f32 %v1305_v18, %v1197_v16 }
 0x130   : > { %v1324_v43 = vadd.f32 %v1303_v49, %v1195_v8  ;;  %v1325_v55 = vadd.f32 %v1304_v33, %v1196_v63  ;;  %v2038_v11 = vld [vmem:[#allocation1 + $0x12] sm:$0xff]  ;;  %v2036_v37 = vld [vmem:[#allocation1] sm:$0xff]  ;;  %v1522_v27 = vld [vmem:[%s5194_s1] sm:$0x7f]  ;;  %v1436_v7 = vmul.f32 %v4213_v51, %v5742_v1  ;;  %v6040_v12 = vperm.slane %v6021_v2, 0 }
 0x131   : > { %v1327_v3 = vadd.f32 %v1306_v62, %v1198_v9  ;;  %v1328_v36 = vadd.f32 %v1307_v59, %v1199_v54  ;;  %2195 = vmatmul.f32.gmra.mxu2 %v2038_v11  ;;  %2125 = vmatmul.f32.gmra.mxu0 %v2036_v37  ;;  %v2039_v57 = vld [vmem:[#allocation1 + $0x1b] sm:$0xff]  ;;  %v2037_v23 = vld [vmem:[#allocation1 + $0x9] sm:$0xff]  ;;  %v1455_v14 = vadd.f32 %v1434_v26, %v1326_v4  ;;  %v6043_v1 = vperm.slane %v6023_v32, 0 }
 0x132   : > { %v1453_v45 = vadd.f32 %v1432_v41, %v1324_v43  ;;  %v1523_v17 = vld [vmem:[%s5194_s1 + $0x8] sm:$0x7f]  ;;  %2230 = vmatmul.f32.gmra.mxu3 %v2039_v57  ;;  %2160 = vmatmul.f32.gmra.mxu1 %v2037_v23  ;;  %v1454_v60 = vadd.f32 %v1433_v6, %v1325_v55  ;;  %v1524_v19 = vld [vmem:[%s5194_s1 + $0x10] sm:$0x7f]  ;;  %v1525_v21 = vld [vmem:[%s5194_s1 + $0x18] sm:$0x7f]  ;;  %v1538_v0 = vmul.f32 %v6035_v31, %v1522_v27 }
 0x133   : > { %v1456_v28 = vadd.f32 %v1435_v47, %v1327_v3  ;;  %v1457_v53 = vadd.f32 %v1436_v7, %v1328_v36  ;;  %v6047_v25 = vperm.slane %v6025_v34, 0  ;;  %v4214_v52 = vld [vmem:[%s5194_s1 + $0x20] sm:$0x7f]  ;;  %v4215_v13 = vld [vmem:[%s5194_s1 + $0x28] sm:$0x7f]  ;;  %v1519_v58 = vadd.f32 %v5833_v22, %v1455_v14 }
 0x134   : > { %v1517_v38 = vadd.f32 %v5810_v5, %v1453_v45  ;;  %v4216_v46 = vld [vmem:[%s5194_s1 + $0x30] sm:$0x7f]  ;;  %v1518_v50 = vadd.f32 %v5812_v56, %v1454_v60  ;;  %v1539_v29 = vmul.f32 %v6040_v12, %v1523_v17  ;;  %v4217_v40 = vld [vmem:[%s5194_s1 + $0x38] sm:$0x7f]  ;;  %v4226_v8 = vld [vmem:[%s5194_s1 + $0x40] sm:$0x7f]  ;;  %v1540_v20 = vmul.f32 %v6043_v1, %v1524_v19 }
 0x135   : > { %v4227_v48 = vld [vmem:[%s5194_s1 + $0x48] sm:$0x7f]  ;;  %v1520_v5 = vadd.f32 %v5835_v42, %v1456_v28  ;;  %v1521_v49 = vadd.f32 %v5840_v61, %v1457_v53  ;;  %v1541_v63 = vmul.f32 %v6047_v25, %v1525_v21  ;;  %v4228_v16 = vld [vmem:[%s5194_s1 + $0x50] sm:$0x7f]  ;;  %v4229_v24 = vld [vmem:[%s5194_s1 + $0x58] sm:$0x7f] }
 0x136   : > { %2040 = vst [vmem:[#allocation1] ss:$9 sm:$0xff] %v1517_v38  ;;  %v6066_v22 = vperm.slane %v6007_v44, 1  ;;  %v6069_v56 = vperm.slane %v6021_v2, 1  ;;  %v6072_v33 = vperm.slane %v6023_v32, 1  ;;  %v6075_v42 = vperm.slane %v6025_v34, 1 }
 0x137   : > { %2041 = vst [vmem:[#allocation1 + $0x1] ss:$9 sm:$0xff] %v1518_v50  ;;  %v6078_v61 = vperm.slane %v6007_v44, 2  ;;  %v6081_v39 = vperm.slane %v6021_v2, 2  ;;  %v6084_v18 = vperm.slane %v6023_v32, 2  ;;  %v6087_v30 = vperm.slane %v6025_v34, 2 }
 0x138   : > { %2042 = vst [vmem:[#allocation1 + $0x2] ss:$9 sm:$0xff] %v1519_v58  ;;  %v1567_v35 = vmul.f32 %v4214_v52, %v6066_v22  ;;  %v1568_v9 = vmul.f32 %v4215_v13, %v6069_v56  ;;  %v1569_v54 = vmul.f32 %v4216_v46, %v6072_v33  ;;  %v1570_v62 = vmul.f32 %v4217_v40, %v6075_v42  ;;  %v4238_v43 = vld [vmem:[%s5194_s1 + $0x60] sm:$0x7f]  ;;  %v4239_v37 = vld [vmem:[%s5194_s1 + $0x68] sm:$0x7f] }
 0x139   : > { %2043 = vst [vmem:[#allocation1 + $0x3] ss:$9 sm:$0xff] %v1520_v5  ;;  %v1608_v10 = vmul.f32 %v4226_v8, %v6078_v61  ;;  %v1609_v59 = vmul.f32 %v4227_v48, %v6081_v39  ;;  %v1610_v15 = vmul.f32 %v4228_v16, %v6084_v18  ;;  %v1611_v51 = vmul.f32 %v4229_v24, %v6087_v30  ;;  %v4240_v3 = vld [vmem:[%s5194_s1 + $0x70] sm:$0x7f]  ;;  %v4241_v36 = vld [vmem:[%s5194_s1 + $0x78] sm:$0x7f] }
 0x13a   : > { %2044 = vst [vmem:[#allocation1 + $0x4] ss:$9 sm:$0xff] %v1521_v49  ;;  %v1579_v55 = vadd.f32 %v1567_v35, %v1538_v0  ;;  %v1580_v4 = vadd.f32 %v1568_v9, %v1539_v29  ;;  %v1581_v41 = vadd.f32 %v1569_v54, %v1540_v20  ;;  %v1582_v11 = vadd.f32 %v1570_v62, %v1541_v63  ;;  %v4250_v17 = vld [vmem:[%s5194_s1 + $0x80] sm:$0x7f]  ;;  %v4251_v28 = vld [vmem:[%s5194_s1 + $0x88] sm:$0x7f] }
 0x13b   : > { %v6102_v6 = vperm.slane %v6007_v44, 3  ;;  %v6105_v26 = vperm.slane %v6021_v2, 3  ;;  %v6108_v27 = vperm.slane %v6023_v32, 3  ;;  %v6111_v57 = vperm.slane %v6025_v34, 3  ;;  %v4252_v53 = vld [vmem:[%s5194_s1 + $0x90] sm:$0x7f] }
 0x13c   : > { %v1620_v23 = vadd.f32 %v1608_v10, %v1579_v55  ;;  %v1621_v47 = vadd.f32 %v1609_v59, %v1580_v4  ;;  %v1622_v7 = vadd.f32 %v1610_v15, %v1581_v41  ;;  %v1623_v45 = vadd.f32 %v1611_v51, %v1582_v11  ;;  %v4253_v38 = vld [vmem:[%s5194_s1 + $0x98] sm:$0x7f]  ;;  %v4262_v8 = vld [vmem:[%s5194_s1 + $0xa0] sm:$0x7f]  ;;  %v4263_v63 = vld [vmem:[%s5194_s1 + $0xa8] sm:$0x7f] }
 0x13d   : > { %v1649_v60 = vmul.f32 %v4238_v43, %v6102_v6  ;;  %v1650_v14 = vmul.f32 %v4239_v37, %v6105_v26  ;;  %v1651_v19 = vmul.f32 %v4240_v3, %v6108_v27  ;;  %v1652_v21 = vmul.f32 %v4241_v36, %v6111_v57  ;;  %v4264_v16 = vld [vmem:[%s5194_s1 + $0xb0] sm:$0x7f]  ;;  %v4265_v24 = vld [vmem:[%s5194_s1 + $0xb8] sm:$0x7f]  ;;  %v4274_v43 = vld [vmem:[%s5194_s1 + $0xc0] sm:$0x7f] }
 0x13e   : > { %v6122_v52 = vperm.slane %v6007_v44, 4  ;;  %v6125_v13 = vperm.slane %v6021_v2, 4  ;;  %v6128_v46 = vperm.slane %v6023_v32, 4  ;;  %v6131_v50 = vperm.slane %v6025_v34, 4  ;;  %v4275_v37 = vld [vmem:[%s5194_s1 + $0xc8] sm:$0x7f] }
 0x13f   : > { %v1661_v58 = vadd.f32 %v1649_v60, %v1620_v23  ;;  %v1662_v0 = vadd.f32 %v1650_v14, %v1621_v47  ;;  %v1663_v29 = vadd.f32 %v1651_v19, %v1622_v7  ;;  %v1664_v40 = vadd.f32 %v1652_v21, %v1623_v45  ;;  %v4276_v3 = vld [vmem:[%s5194_s1 + $0xd0] sm:$0x7f]  ;;  %v4277_v36 = vld [vmem:[%s5194_s1 + $0xd8] sm:$0x7f] }
 0x140   : > { %v1690_v48 = vmul.f32 %v4250_v17, %v6122_v52  ;;  %v1691_v5 = vmul.f32 %v4251_v28, %v6125_v13  ;;  %v1692_v49 = vmul.f32 %v4252_v53, %v6128_v46  ;;  %v1693_v20 = vmul.f32 %v4253_v38, %v6131_v50  ;;  %v1796_v17 = vld [vmem:[#allocation10] sm:$0xf]  ;;  %v1528_v38 = vld [vmem:[%s5194_s1 + $0xf0] sm:$0x7f] }
 0x141   : > { %v6142_v35 = vperm.slane %v6007_v44, 5  ;;  %v6145_v9 = vperm.slane %v6021_v2, 5  ;;  %v6148_v54 = vperm.slane %v6023_v32, 5  ;;  %v6151_v62 = vperm.slane %v6025_v34, 5  ;;  %v1526_v28 = vld [vmem:[%s5194_s1 + $0xe0] sm:$0x7f] }
 0x142   : > { %v1702_v10 = vadd.f32 %v1690_v48, %v1661_v58  ;;  %v1703_v59 = vadd.f32 %v1691_v5, %v1662_v0  ;;  %v1704_v15 = vadd.f32 %v1692_v49, %v1663_v29  ;;  %v1705_v51 = vadd.f32 %v1693_v20, %v1664_v40  ;;  %v1529_v58 = vld [vmem:[%s5194_s1 + $0xf8] sm:$0x7f]  ;;  %v4218_v48 = vld [vmem:[%s5194_s1 + $0x100] sm:$0x7f] }
 0x143   : > { %v1731_v55 = vmul.f32 %v4262_v8, %v6142_v35  ;;  %v1732_v4 = vmul.f32 %v4263_v63, %v6145_v9  ;;  %v1733_v41 = vmul.f32 %v4264_v16, %v6148_v54  ;;  %v1734_v11 = vmul.f32 %v4265_v24, %v6151_v62  ;;  %v4219_v16 = vld [vmem:[%s5194_s1 + $0x108] sm:$0x7f]  ;;  %v4220_v24 = vld [vmem:[%s5194_s1 + $0x110] sm:$0x7f] }
 0x144   : > { %v6162_v23 = vperm.slane %v6007_v44, 6  ;;  %v6165_v47 = vperm.slane %v6021_v2, 6  ;;  %v6168_v7 = vperm.slane %v6023_v32, 6  ;;  %v6171_v45 = vperm.slane %v6025_v34, 6  ;;  %v1527_v34 = vld [vmem:[%s5194_s1 + $0xe8] sm:$0x7f] }
 0x145   : > { %v1743_v60 = vadd.f32 %v1731_v55, %v1702_v10  ;;  %v1744_v14 = vadd.f32 %v1732_v4, %v1703_v59  ;;  %v1745_v19 = vadd.f32 %v1733_v41, %v1704_v15  ;;  %v1746_v21 = vadd.f32 %v1734_v11, %v1705_v51  ;;  %v4221_v10 = vld [vmem:[%s5194_s1 + $0x118] sm:$0x7f]  ;;  %v4230_v55 = vld [vmem:[%s5194_s1 + $0x120] sm:$0x7f] }
 0x146   : > { %v1772_v44 = vmul.f32 %v4274_v43, %v6162_v23  ;;  %v1773_v53 = vmul.f32 %v4275_v37, %v6165_v47  ;;  %v1774_v2 = vmul.f32 %v4276_v3, %v6168_v7  ;;  %v1775_v32 = vmul.f32 %v4277_v36, %v6171_v45 }
 0x147   : > { %v6181_v0 = vperm.slane %v1796_v17, 0  ;;  %v6183_v29 = vperm.slane %v1796_v17, 1  ;;  %v6185_v40 = vperm.slane %v1796_v17, 2  ;;  %v6187_v8 = vperm.slane %v1796_v17, 3 }
 0x148   : > { %v1784_v5 = vadd.f32 %v1772_v44, %v1743_v60  ;;  %v1785_v49 = vadd.f32 %v1773_v53, %v1744_v14  ;;  %v1786_v20 = vadd.f32 %v1774_v2, %v1745_v19  ;;  %v1787_v63 = vadd.f32 %v1775_v32, %v1746_v21 }
 0x149   : > { %v1542_v59 = vmul.f32 %v6035_v31, %v1526_v28  ;;  %v1543_v15 = vmul.f32 %v6040_v12, %v1527_v34  ;;  %v1544_v51 = vmul.f32 %v6043_v1, %v1528_v38  ;;  %v1545_v43 = vmul.f32 %v6047_v25, %v1529_v58  ;;  %v4231_v34 = vld [vmem:[%s5194_s1 + $0x128] sm:$0x7f]  ;;  %v4232_v38 = vld [vmem:[%s5194_s1 + $0x130] sm:$0x7f] }
 0x14a   : > { %v6199_v4 = vadd.f32 %v6181_v0, %v1784_v5  ;;  %v1807_v41 = vadd.f32 %v6183_v29, %v1785_v49  ;;  %v1808_v11 = vadd.f32 %v6185_v40, %v1786_v20  ;;  %v1809_v37 = vadd.f32 %v6187_v8, %v1787_v63  ;;  %v4233_v20 = vld [vmem:[%s5194_s1 + $0x138] sm:$0x7f]  ;;  %v4242_v63 = vld [vmem:[%s5194_s1 + $0x140] sm:$0x7f] }
 0x14b   : > { %v1571_v3 = vmul.f32 %v4218_v48, %v6066_v22  ;;  %v1572_v36 = vmul.f32 %v4219_v16, %v6069_v56  ;;  %v1573_v17 = vmul.f32 %v4220_v24, %v6072_v33  ;;  %v1574_v60 = vmul.f32 %v4221_v10, %v6075_v42 }
 0x14c   : > { %v6208_v14 = vrot.slane %v1807_v41, 7  ;;  %v6210_v19 = vrot.slane %v1808_v11, 6  ;;  %v6212_v21 = vrot.slane %v1809_v37, 5  ;;  %v1612_v28 = vmul.f32 %v4230_v55, %v6078_v61 }
 0x14d   : > { %v1583_v44 = vadd.f32 %v1571_v3, %v1542_v59  ;;  %v1584_v53 = vadd.f32 %v1572_v36, %v1543_v15  ;;  %v1585_v2 = vadd.f32 %v1573_v17, %v1544_v51  ;;  %v1586_v32 = vadd.f32 %v1574_v60, %v1545_v43  ;;  %v4243_v15 = vld [vmem:[%s5194_s1 + $0x148] sm:$0x7f]  ;;  %v4244_v51 = vld [vmem:[%s5194_s1 + $0x150] sm:$0x7f]  ;;  %v4245_v43 = vld [vmem:[%s5194_s1 + $0x158] sm:$0x7f] }
 0x14e   : > { %v1839_v58 = vsel %vm614_vm0, %v6199_v4, %v6208_v14  ;;  %v1840_v48 = vsel %vm7503_vm1, %v6210_v19, %v6212_v21  ;;  %v1842_v5 = vsel %vm620_vm2, %v6199_v4, %v6208_v14  ;;  %v1843_v49 = vsel %vm7502_vm3, %v6210_v19, %v6212_v21  ;;  %v4254_v3 = vld [vmem:[%s5194_s1 + $0x160] sm:$0x7f] }
 0x14f   : > { %v1841_v16 = vsel %vm7500_vm5, %v1839_v58, %v1840_v48  ;;  %v1844_v24 = vsel %vm7499_vm6, %v1842_v5, %v1843_v49  ;;  %v1846_v10 = vsel %vm7503_vm1, %v6199_v4, %v6208_v14  ;;  %v1847_v59 = vsel %vm7501_vm4, %v6210_v19, %v6212_v21  ;;  %v4255_v48 = vld [vmem:[%s5194_s1 + $0x168] sm:$0x7f]  ;;  %v4256_v5 = vld [vmem:[%s5194_s1 + $0x170] sm:$0x7f] }
 0x150   : > { %v1845_v55 = vrot.slane %v1844_v24, 1  ;;  %v1848_v41 = vsel %vm7498_vm7, %v1846_v10, %v1847_v59  ;;  %2045 = vst [vmem:[#allocation1 + $0x5] ss:$9 sm:$0xff] %v1841_v16  ;;  %v1613_v11 = vmul.f32 %v4231_v34, %v6081_v39  ;;  %v1614_v37 = vmul.f32 %v4232_v38, %v6084_v18  ;;  %v4257_v38 = vld [vmem:[%s5194_s1 + $0x178] sm:$0x7f] }
 0x151   : > { %v1849_v36 = vrot.slane %v1848_v41, 2  ;;  %v1615_v17 = vmul.f32 %v4233_v20, %v6087_v30  ;;  %v1624_v60 = vadd.f32 %v1612_v28, %v1583_v44  ;;  %v1653_v58 = vmul.f32 %v4242_v63, %v6102_v6  ;;  %v4266_v10 = vld [vmem:[%s5194_s1 + $0x180] sm:$0x7f]  ;;  %v4267_v59 = vld [vmem:[%s5194_s1 + $0x188] sm:$0x7f] }
 0x152   : > { %2046 = vst [vmem:[#allocation1 + $0x6] ss:$9 sm:$0xff] %v1845_v55  ;;  %v1625_v49 = vadd.f32 %v1613_v11, %v1584_v53  ;;  %v1626_v24 = vadd.f32 %v1614_v37, %v1585_v2  ;;  %v1654_v16 = vmul.f32 %v4243_v15, %v6105_v26  ;;  %v1655_v34 = vmul.f32 %v4244_v51, %v6108_v27  ;;  %v4268_v53 = vld [vmem:[%s5194_s1 + $0x190] sm:$0x7f]  ;;  %v4269_v41 = vld [vmem:[%s5194_s1 + $0x198] sm:$0x7f] }
 0x153   : > { %2047 = vst [vmem:[#allocation1 + $0x7] ss:$9 sm:$0xff] %v1849_v36  ;;  %v1627_v20 = vadd.f32 %v1615_v17, %v1586_v32  ;;  %v1656_v28 = vmul.f32 %v4245_v43, %v6111_v57  ;;  %v1665_v44 = vadd.f32 %v1653_v58, %v1624_v60  ;;  %v1694_v63 = vmul.f32 %v4254_v3, %v6122_v52  ;;  %v4278_v11 = vld [vmem:[%s5194_s1 + $0x1a0] sm:$0x7f]  ;;  %v4279_v17 = vld [vmem:[%s5194_s1 + $0x1a8] sm:$0x7f] }
 0x154   : > { %v1666_v2 = vadd.f32 %v1654_v16, %v1625_v49  ;;  %v1667_v55 = vadd.f32 %v1655_v34, %v1626_v24  ;;  %v1695_v15 = vmul.f32 %v4255_v48, %v6125_v13  ;;  %v1696_v51 = vmul.f32 %v4256_v5, %v6128_v46  ;;  %v4280_v60 = vld [vmem:[%s5194_s1 + $0x1b0] sm:$0x7f]  ;;  %v4281_v16 = vld [vmem:[%s5194_s1 + $0x1b8] sm:$0x7f] }
 0x155   : > { %v1668_v37 = vadd.f32 %v1656_v28, %v1627_v20  ;;  %v1697_v32 = vmul.f32 %v4257_v38, %v6131_v50  ;;  %v1706_v36 = vadd.f32 %v1694_v63, %v1665_v44  ;;  %v1735_v43 = vmul.f32 %v4266_v10, %v6142_v35 }
 0x156   : > { %v1707_v3 = vadd.f32 %v1695_v15, %v1666_v2  ;;  %v1708_v58 = vadd.f32 %v1696_v51, %v1667_v55  ;;  %v1736_v49 = vmul.f32 %v4267_v59, %v6145_v9  ;;  %v1737_v24 = vmul.f32 %v4268_v53, %v6148_v54 }
 0x157   : > { %v1709_v48 = vadd.f32 %v1697_v32, %v1668_v37  ;;  %v1738_v5 = vmul.f32 %v4269_v41, %v6151_v62  ;;  %v1747_v34 = vadd.f32 %v1735_v43, %v1706_v36  ;;  %v1776_v20 = vmul.f32 %v4278_v11, %v6162_v23 }
 0x158   : > { %v1748_v28 = vadd.f32 %v1736_v49, %v1707_v3  ;;  %v1749_v38 = vadd.f32 %v1737_v24, %v1708_v58  ;;  %v1777_v44 = vmul.f32 %v4279_v17, %v6165_v47  ;;  %v1778_v10 = vmul.f32 %v4280_v60, %v6168_v7 }
 0x159   : > { %v1750_v63 = vadd.f32 %v1738_v5, %v1709_v48  ;;  %v1779_v2 = vmul.f32 %v4281_v16, %v6171_v45  ;;  %v1788_v55 = vadd.f32 %v1776_v20, %v1747_v34  ;;  %v1850_v59 = vsel %vm7502_vm3, %v6199_v4, %v6208_v14 }
 0x15a   : > { %v2050_v53 = vld [vmem:[#allocation1 + $0x12] sm:$0xff]  ;;  %v2048_v15 = vld [vmem:[#allocation1] sm:$0xff]  ;;  %v1789_v51 = vadd.f32 %v1777_v44, %v1748_v28  ;;  %v1790_v41 = vadd.f32 %v1778_v10, %v1749_v38  ;;  %v1851_v11 = vsel %vm7508_vm8, %v6210_v19, %v6212_v21  ;;  %v1854_v37 = vsel %vm7501_vm4, %v6199_v4, %v6208_v14  ;;  %v2049_v36 = vld [vmem:[#allocation1 + $0x9] sm:$0xff] }
 0x15b   : > { %2198 = vmatmul.f32.gmra.mxu2 %v2050_v53  ;;  %2128 = vmatmul.f32.gmra.mxu0 %v2048_v15  ;;  %v2051_v32 = vld [vmem:[#allocation1 + $0x1b] sm:$0xff]  ;;  %v1791_v43 = vadd.f32 %v1779_v2, %v1750_v63  ;;  %v6284_v17 = vadd.f32 %v6181_v0, %v1788_v55  ;;  %v1852_v60 = vsel %vm7497_vm9, %v1850_v59, %v1851_v11  ;;  %v1530_v10 = vld [vmem:[%s5194_s1 + $0x1c0] sm:$0x7f]  ;;  %v1531_v53 = vld [vmem:[%s5194_s1 + $0x1c8] sm:$0x7f] }
 0x15c   : > { %2233 = vmatmul.f32.gmra.mxu3 %v2051_v32  ;;  %2163 = vmatmul.f32.gmra.mxu1 %v2049_v36  ;;  %v1811_v3 = vadd.f32 %v6183_v29, %v1789_v51  ;;  %v1812_v58 = vadd.f32 %v6185_v40, %v1790_v41  ;;  %v1853_v49 = vrot.slane %v1852_v60, 3  ;;  %v1855_v24 = vsel %vm7507_vm10, %v6210_v19, %v6212_v21  ;;  %v1532_v15 = vld [vmem:[%s5194_s1 + $0x1d0] sm:$0x7f]  ;;  %v1533_v51 = vld [vmem:[%s5194_s1 + $0x1d8] sm:$0x7f] }
 0x15d   : > { %v1813_v16 = vadd.f32 %v6187_v8, %v1791_v43  ;;  %v1856_v48 = vsel %vm7496_vm11, %v1854_v37, %v1855_v24  ;;  %v1858_v5 = vsel %vm7508_vm8, %v6199_v4, %v6208_v14  ;;  %v1859_v34 = vsel %vm646_vm12, %v6212_v21, %v6210_v19  ;;  %v4222_v60 = vld [vmem:[%s5194_s1 + $0x1e0] sm:$0x7f] }
 0x15e   : > { %v6300_v20 = vrot.slane %v1811_v3, 7  ;;  %v6302_v28 = vrot.slane %v1812_v58, 6  ;;  %v1857_v38 = vrot.slane %v1856_v48, 4  ;;  %v1860_v44 = vsel %vm7506_vm13, %v1858_v5, %v1859_v34  ;;  %2052 = vst [vmem:[#allocation1] ss:$9 sm:$0xff] %v1853_v49 }
 0x15f   : > { %v6306_v63 = vrot.slane %v1813_v16, 5  ;;  %v1861_v2 = vrot.slane %v1860_v44, 5  ;;  %v1862_v55 = vsel %vm7507_vm10, %v6199_v4, %v6208_v14  ;;  %v1863_v59 = vsel %vm614_vm0, %v6210_v19, %v6212_v21  ;;  %v4223_v14 = vld [vmem:[%s5194_s1 + $0x1e8] sm:$0x7f]  ;;  %v4224_v19 = vld [vmem:[%s5194_s1 + $0x1f0] sm:$0x7f] }
 0x160   : > { %v1864_v41 = vsel %vm7505_vm14, %v1863_v59, %v1862_v55  ;;  %v1866_v11 = vsel %vm614_vm0, %v6284_v17, %v6300_v20  ;;  %v1869_v37 = vsel %vm620_vm2, %v6284_v17, %v6300_v20  ;;  %v1873_v4 = vsel %vm7503_vm1, %v6284_v17, %v6300_v20  ;;  %2053 = vst [vmem:[#allocation1 + $0x1] ss:$9 sm:$0xff] %v1857_v38  ;;  %v4225_v3 = vld [vmem:[%s5194_s1 + $0x1f8] sm:$0x7f]  ;;  %v4235_v48 = vld [vmem:[%s5194_s1 + $0x208] sm:$0x7f] }
 0x161   : > { %v1865_v21 = vrot.slane %v1864_v41, 6  ;;  %v1867_v32 = vsel %vm7503_vm1, %v6302_v28, %v6306_v63  ;;  %v1870_v36 = vsel %vm7502_vm3, %v6302_v28, %v6306_v63  ;;  %v1874_v43 = vsel %vm7501_vm4, %v6302_v28, %v6306_v63  ;;  %2054 = vst [vmem:[#allocation1 + $0x2] ss:$9 sm:$0xff] %v1861_v2  ;;  %v4236_v5 = vld [vmem:[%s5194_s1 + $0x210] sm:$0x7f] }
 0x162   : > { %v1868_v58 = vsel %vm7500_vm5, %v1866_v11, %v1867_v32  ;;  %v1871_v49 = vsel %vm7499_vm6, %v1869_v37, %v1870_v36  ;;  %v1875_v24 = vsel %vm7498_vm7, %v1873_v4, %v1874_v43  ;;  %v1877_v16 = vsel %vm7502_vm3, %v6284_v17, %v6300_v20  ;;  %v4237_v34 = vld [vmem:[%s5194_s1 + $0x218] sm:$0x7f]  ;;  %v4234_v59 = vld [vmem:[%s5194_s1 + $0x200] sm:$0x7f]  ;;  %v4247_v32 = vld [vmem:[%s5194_s1 + $0x228] sm:$0x7f] }
 0x163   : > { %v1872_v38 = vrot.slane %v1871_v49, 1  ;;  %v1876_v44 = vrot.slane %v1875_v24, 2  ;;  %v1878_v2 = vsel %vm7508_vm8, %v6302_v28, %v6306_v63  ;;  %2055 = vst [vmem:[#allocation1 + $0x3] ss:$9 sm:$0xff] %v1865_v21  ;;  %v1546_v55 = vmul.f32 %v6035_v31, %v1530_v10  ;;  %v4248_v36 = vld [vmem:[%s5194_s1 + $0x230] sm:$0x7f] }
 0x164   : > { %v1879_v41 = vsel %vm7497_vm9, %v1877_v16, %v1878_v2  ;;  %2056 = vst [vmem:[#allocation1 + $0x4] ss:$9 sm:$0xff] %v1868_v58  ;;  %v1547_v11 = vmul.f32 %v6040_v12, %v1531_v53  ;;  %v1548_v37 = vmul.f32 %v6043_v1, %v1532_v15  ;;  %v1549_v4 = vmul.f32 %v6047_v25, %v1533_v51  ;;  %v4246_v58 = vld [vmem:[%s5194_s1 + $0x220] sm:$0x7f]  ;;  %v4249_v15 = vld [vmem:[%s5194_s1 + $0x238] sm:$0x7f] }
 0x165   : > { %v1880_v43 = vrot.slane %v1879_v41, 3  ;;  %2057 = vst [vmem:[#allocation1 + $0x5] ss:$9 sm:$0xff] %v1872_v38  ;;  %v1575_v21 = vmul.f32 %v4222_v60, %v6066_v22  ;;  %v1576_v31 = vmul.f32 %v4223_v14, %v6069_v56  ;;  %v1577_v10 = vmul.f32 %v4224_v19, %v6072_v33  ;;  %v4259_v51 = vld [vmem:[%s5194_s1 + $0x248] sm:$0x7f] }
 0x166   : > { %2058 = vst [vmem:[#allocation1 + $0x6] ss:$9 sm:$0xff] %v1876_v44  ;;  %v1578_v12 = vmul.f32 %v4225_v3, %v6075_v42  ;;  %v1616_v1 = vmul.f32 %v4234_v59, %v6078_v61  ;;  %v1617_v25 = vmul.f32 %v4235_v48, %v6081_v39  ;;  %v1618_v53 = vmul.f32 %v4236_v5, %v6084_v18  ;;  %v4258_v19 = vld [vmem:[%s5194_s1 + $0x240] sm:$0x7f]  ;;  %v4260_v42 = vld [vmem:[%s5194_s1 + $0x250] sm:$0x7f] }
 0x167   : > { %2059 = vst [vmem:[#allocation1 + $0x7] ss:$9 sm:$0xff] %v1880_v43  ;;  %v1587_v22 = vadd.f32 %v1575_v21, %v1546_v55  ;;  %v1588_v56 = vadd.f32 %v1576_v31, %v1547_v11  ;;  %v1589_v33 = vadd.f32 %v1577_v10, %v1548_v37  ;;  %v1619_v14 = vmul.f32 %v4237_v34, %v6087_v30  ;;  %v4261_v3 = vld [vmem:[%s5194_s1 + $0x258] sm:$0x7f]  ;;  %v4270_v30 = vld [vmem:[%s5194_s1 + $0x260] sm:$0x7f] }
 0x168   : > { %v1590_v60 = vadd.f32 %v1578_v12, %v1549_v4  ;;  %v1657_v61 = vmul.f32 %v4246_v58, %v6102_v6  ;;  %v1658_v39 = vmul.f32 %v4247_v32, %v6105_v26  ;;  %v1659_v18 = vmul.f32 %v4248_v36, %v6108_v27  ;;  %v4271_v5 = vld [vmem:[%s5194_s1 + $0x268] sm:$0x7f]  ;;  %v4272_v34 = vld [vmem:[%s5194_s1 + $0x270] sm:$0x7f]  ;;  %v4273_v27 = vld [vmem:[%s5194_s1 + $0x278] sm:$0x7f] }
 0x169   : > { %v1628_v49 = vadd.f32 %v1616_v1, %v1587_v22  ;;  %v1629_v24 = vadd.f32 %v1617_v25, %v1588_v56  ;;  %v1630_v16 = vadd.f32 %v1618_v53, %v1589_v33  ;;  %v1660_v48 = vmul.f32 %v4249_v15, %v6111_v57  ;;  %v4282_v11 = vld [vmem:[%s5194_s1 + $0x280] sm:$0x7f]  ;;  %v4283_v37 = vld [vmem:[%s5194_s1 + $0x288] sm:$0x7f]  ;;  %v4284_v57 = vld [vmem:[%s5194_s1 + $0x290] sm:$0x7f] }
 0x16a   : > { %v1631_v38 = vadd.f32 %v1619_v14, %v1590_v60  ;;  %v1698_v44 = vmul.f32 %v4258_v19, %v6122_v52  ;;  %v1699_v6 = vmul.f32 %v4259_v51, %v6125_v13  ;;  %v1700_v26 = vmul.f32 %v4260_v42, %v6128_v46  ;;  %v4285_v31 = vld [vmem:[%s5194_s1 + $0x298] sm:$0x7f]  ;;  %v2283_v60 = vld [vmem:[#allocation13 + $0x38] sm:$0xff] }
 0x16b   : > { %v1669_v2 = vadd.f32 %v1657_v61, %v1628_v49  ;;  %v1670_v55 = vadd.f32 %v1658_v39, %v1629_v24  ;;  %v1671_v59 = vadd.f32 %v1659_v18, %v1630_v16  ;;  %v1701_v41 = vmul.f32 %v4261_v3, %v6131_v50  ;;  %v2282_v42 = vld [vmem:[#allocation13 + $0x30] sm:$0xff]  ;;  %v2281_v61 = vld [vmem:[#allocation13 + $0x28] sm:$0xff]  ;;  %2396 = vmatpush.msrb.mxu3 %v2283_v60  ;;  %v2280_v24 = vld [vmem:[#allocation13 + $0x20] sm:$0xff] }
 0x16c   : > { %v1672_v4 = vadd.f32 %v1660_v48, %v1631_v38  ;;  %v1739_v32 = vmul.f32 %v4270_v30, %v6142_v35  ;;  %v1740_v36 = vmul.f32 %v4271_v5, %v6145_v9  ;;  %v1741_v52 = vmul.f32 %v4272_v34, %v6148_v54  ;;  %2370 = vmatpush.msrb.mxu2 %v2282_v42  ;;  %v2278_v16 = vld [vmem:[#allocation13 + $0x10] sm:$0xff]  ;;  %v2279_v48 = vld [vmem:[#allocation13 + $0x18] sm:$0xff] }
 0x16d   : > { %v1710_v13 = vadd.f32 %v1698_v44, %v1669_v2  ;;  %v1711_v43 = vadd.f32 %v1699_v6, %v1670_v55  ;;  %v1712_v46 = vadd.f32 %v1700_v26, %v1671_v59  ;;  %v1742_v21 = vmul.f32 %v4273_v27, %v6151_v62  ;;  %2344 = vmatpush.msrb.mxu1 %v2281_v61 }
 0x16e   : > { %v2062_v10 = vld [vmem:[#allocation1 + $0x12] sm:$0xff]  ;;  %v2060_v58 = vld [vmem:[#allocation1] sm:$0xff]  ;;  %v1713_v12 = vadd.f32 %v1701_v41, %v1672_v4  ;;  %v1780_v50 = vmul.f32 %v4282_v11, %v6162_v23  ;;  %v1781_v1 = vmul.f32 %v4283_v37, %v6165_v47  ;;  %v1782_v25 = vmul.f32 %v4284_v57, %v6168_v7  ;;  %v2061_v9 = vld [vmem:[#allocation1 + $0x9] sm:$0xff]  ;;  %2318 = vmatpush.msrb.mxu0 %v2280_v24 }
 0x16f   : > { %2201 = vmatmul.f32.gmra.mxu2 %v2062_v10  ;;  %2131 = vmatmul.f32.gmra.mxu0 %v2060_v58  ;;  %v2063_v35 = vld [vmem:[#allocation1 + $0x1b] sm:$0xff]  ;;  %v1751_v54 = vadd.f32 %v1739_v32, %v1710_v13  ;;  %v1752_v53 = vadd.f32 %v1740_v36, %v1711_v43  ;;  %v1753_v15 = vadd.f32 %v1741_v52, %v1712_v46 }
 0x170   : > { %2236 = vmatmul.f32.gmra.mxu3 %v2063_v35  ;;  %2166 = vmatmul.f32.gmra.mxu1 %v2061_v9  ;;  %v1754_v62 = vadd.f32 %v1742_v21, %v1713_v12  ;;  %v1783_v51 = vmul.f32 %v4285_v31, %v6171_v45  ;;  %v1881_v23 = vsel %vm7501_vm4, %v6284_v17, %v6300_v20  ;;  %v2277_v57 = vld [vmem:[#allocation13 + $0x8] sm:$0xff]  ;;  %v2276_v35 = vld [vmem:[#allocation13] sm:$0xff] }
 0x171   : > { %v1792_v22 = vadd.f32 %v1780_v50, %v1751_v54  ;;  %v1793_v47 = vadd.f32 %v1781_v1, %v1752_v53  ;;  %v1794_v56 = vadd.f32 %v1782_v25, %v1753_v15  ;;  %v1882_v7 = vsel %vm7507_vm10, %v6302_v28, %v6306_v63  ;;  %2371 = vmatpush.msrb.mxu2 %v2278_v16 }
 0x172   : > { %v1795_v33 = vadd.f32 %v1783_v51, %v1754_v62  ;;  %v1883_v14 = vsel %vm7496_vm11, %v1881_v23, %v1882_v7  ;;  %v1885_v19 = vsel %vm7508_vm8, %v6284_v17, %v6300_v20  ;;  %v1886_v45 = vsel %vm646_vm12, %v6306_v63, %v6302_v28  ;;  %2397 = vmatpush.msrb.mxu3 %v2279_v48 }
 0x173   : > { %v1814_v39 = vadd.f32 %v6181_v0, %v1792_v22  ;;  %v1815_v18 = vadd.f32 %v6183_v29, %v1793_v47  ;;  %v1816_v3 = vadd.f32 %v6185_v40, %v1794_v56  ;;  %v1884_v49 = vrot.slane %v1883_v14, 4  ;;  %2345 = vmatpush.msrb.mxu1 %v2277_v57  ;;  %2319 = vmatpush.msrb.mxu0 %v2276_v35  ;;  %v6447_v47 = vld [vmem:[%s7442_s6] ss:$0 sm:$0xff] }
 0x174   : > { %v1817_v30 = vadd.f32 %v6187_v8, %v1795_v33  ;;  %v1887_v5 = vsel %vm7506_vm13, %v1885_v19, %v1886_v45  ;;  %v1889_v34 = vsel %vm7507_vm10, %v6284_v17, %v6300_v20  ;;  %v1890_v0 = vsel %vm614_vm0, %v6302_v28, %v6306_v63 }
 0x175   : > { %v1836_v29 = vrot.slane %v1815_v18, 7  ;;  %v1837_v40 = vrot.slane %v1816_v3, 6  ;;  %v1888_v38 = vrot.slane %v1887_v5, 5  ;;  %v1891_v44 = vsel %vm7505_vm14, %v1890_v0, %v1889_v34  ;;  %2064 = vst [vmem:[#allocation1] ss:$9 sm:$0xff] %v1884_v49 }
 0x176   : > { %v1838_v8 = vrot.slane %v1817_v30, 5  ;;  %v1892_v6 = vrot.slane %v1891_v44, 6 }
 0x177   : > { %v1893_v26 = vsel %vm614_vm0, %v1814_v39, %v1836_v29  ;;  %v1896_v17 = vsel %vm620_vm2, %v1814_v39, %v1836_v29  ;;  %v1900_v20 = vsel %vm7503_vm1, %v1814_v39, %v1836_v29  ;;  %v1904_v28 = vsel %vm7502_vm3, %v1814_v39, %v1836_v29  ;;  %2065 = vst [vmem:[#allocation1 + $0x1] ss:$9 sm:$0xff] %v1888_v38 }
 0x178   : > { %v1894_v63 = vsel %vm7503_vm1, %v1837_v40, %v1838_v8  ;;  %v1897_v27 = vsel %vm7502_vm3, %v1837_v40, %v1838_v8  ;;  %v1901_v2 = vsel %vm7501_vm4, %v1837_v40, %v1838_v8  ;;  %v1905_v55 = vsel %vm7508_vm8, %v1837_v40, %v1838_v8  ;;  %2066 = vst [vmem:[#allocation1 + $0x2] ss:$9 sm:$0xff] %v1892_v6 }
 0x179   : > { %v1895_v59 = vsel %vm7500_vm5, %v1893_v26, %v1894_v63  ;;  %v1898_v41 = vsel %vm7499_vm6, %v1896_v17, %v1897_v27  ;;  %v1902_v11 = vsel %vm7498_vm7, %v1900_v20, %v1901_v2  ;;  %v1906_v37 = vsel %vm7497_vm9, %v1904_v28, %v1905_v55  ;;  %v2642_v26 = vld [vmem:[#allocation16 + $0x30] sm:$0xff]  ;;  %v2643_v17 = vld [vmem:[#allocation16 + $0x38] sm:$0xff]  ;;  %v2641_v20 = vld [vmem:[#allocation16 + $0x28] sm:$0xff] }
 0x17a   : > { %v1899_v4 = vrot.slane %v1898_v41, 1  ;;  %v1903_v32 = vrot.slane %v1902_v11, 2  ;;  %v1907_v36 = vrot.slane %v1906_v37, 3  ;;  %v1908_v52 = vsel %vm7501_vm4, %v1814_v39, %v1836_v29  ;;  %2067 = vst [vmem:[#allocation1 + $0x3] ss:$9 sm:$0xff] %v1895_v59  ;;  %2737 = vmatpush.msra.mxu2 %v2642_v26  ;;  %2763 = vmatpush.msra.mxu3 %v2643_v17  ;;  %v2640_v37 = vld [vmem:[#allocation16 + $0x20] sm:$0xff] }
 0x17b   : > { %v1909_v13 = vsel %vm7507_vm10, %v1837_v40, %v1838_v8  ;;  %v1912_v21 = vsel %vm7508_vm8, %v1814_v39, %v1836_v29  ;;  %v1913_v31 = vsel %vm646_vm12, %v1838_v8, %v1837_v40  ;;  %v1916_v10 = vsel %vm7507_vm10, %v1814_v39, %v1836_v29  ;;  %2711 = vmatpush.msra.mxu1 %v2641_v20 }
 0x17c   : > { %v1910_v43 = vsel %vm7496_vm11, %v1908_v52, %v1909_v13  ;;  %2068 = vst [vmem:[#allocation1 + $0x4] ss:$9 sm:$0xff] %v1899_v4  ;;  %v1917_v58 = vsel %vm614_vm0, %v1837_v40, %v1838_v8  ;;  %v1914_v12 = vsel %vm7506_vm13, %v1912_v21, %v1913_v31  ;;  %2685 = vmatpush.msra.mxu0 %v2640_v37  ;;  %v2639_v52 = vld [vmem:[#allocation16 + $0x18] sm:$0xff]  ;;  %vm2657_vm11 = vcmask 1042432  }
 0x17d   : > { %v1911_v46 = vrot.slane %v1910_v43, 4  ;;  %2069 = vst [vmem:[#allocation1 + $0x5] ss:$9 sm:$0xff] %v1903_v32  ;;  %v1918_v50 = vsel %vm7505_vm14, %v1917_v58, %v1916_v10  ;;  %v1915_v1 = vrot.slane %v1914_v12, 5  ;;  %2764 = vmatpush.msra.mxu3 %v2639_v52  ;;  %v2637_v12 = vld [vmem:[#allocation16 + $0x8] sm:$0xff] }
 0x17e   : > { %2070 = vst [vmem:[#allocation1 + $0x6] ss:$9 sm:$0xff] %v1907_v36  ;;  %v1919_v25 = vrot.slane %v1918_v50, 6  ;;  %v2638_v36 = vld [vmem:[#allocation16 + $0x10] sm:$0xff]  ;;  %v2636_v50 = vld [vmem:[#allocation16] sm:$0xff]  ;;  %2712 = vmatpush.msra.mxu1 %v2637_v12 }
 0x17f   : > { %2071 = vst [vmem:[#allocation1 + $0x7] ss:$9 sm:$0xff] %v1911_v46  ;;  %2738 = vmatpush.msra.mxu2 %v2638_v36  ;;  %2686 = vmatpush.msra.mxu0 %v2636_v50 }
 0x186   : > { %v2074_v9 = vld [vmem:[#allocation1 + $0x12] sm:$0xff]  ;;  %v2072_v54 = vld [vmem:[#allocation1] sm:$0xff]  ;;  %v2073_v15 = vld [vmem:[#allocation1 + $0x9] sm:$0xff]  ;;  %v2123_v56 = vpop.f32.mrf.mxu0 }
 0x187   : > { %v2075_v53 = vld [vmem:[#allocation1 + $0x1b] sm:$0xff]  ;;  %2204 = vmatmul.f32.gmra.mxu2 %v2074_v9  ;;  %2134 = vmatmul.f32.gmra.mxu0 %v2072_v54  ;;  %v2124_v7 = vadd.f32 %v6447_v47, %v2123_v56  ;;  %v2158_v33 = vpop.f32.mrf.mxu1 }
 0x188   : > { %2239 = vmatmul.f32.gmra.mxu3 %v2075_v53  ;;  %2169 = vmatmul.f32.gmra.mxu1 %v2073_v15  ;;  %2076 = vst [vmem:[#allocation1] ss:$9 sm:$0xff] %v1915_v1 }
 0x189   : > { %2077 = vst [vmem:[#allocation1 + $0x1] ss:$9 sm:$0xff] %v1919_v25  ;;  %v2159_v14 = vadd.f32 %v2158_v33, %v2124_v7 }
 0x18c   : > { %v2193_v19 = vpop.f32.mrf.mxu2 }
 0x18d   : > { %v2194_v45 = vadd.f32 %v2193_v19, %v2159_v14 }
 0x18e   : > { %v2228_v42 = vpop.f32.mrf.mxu3 }
 0x18f   : > { %v2229_v60 = vadd.f32 %v2228_v42, %v2194_v45 }
 0x190   : > { %v2080_v62 = vld [vmem:[#allocation1 + $0x12] sm:$0xff]  ;;  %v2078_v51 = vld [vmem:[#allocation1] sm:$0xff]  ;;  %v2079_v22 = vld [vmem:[#allocation1 + $0x9] sm:$0xff] }
 0x191   : > { %v2081_v23 = vld [vmem:[#allocation1 + $0x1b] sm:$0xff]  ;;  %2207 = vmatmul.f32.gmra.mxu2 %v2080_v62  ;;  %2137 = vmatmul.f32.gmra.mxu0 %v2078_v51  ;;  %v2246_v61 = vadd.f32 3.0, %v2229_v60 }
 0x192   : > { %2242 = vmatmul.f32.gmra.mxu3 %v2081_v23  ;;  %2172 = vmatmul.f32.gmra.mxu1 %v2079_v22 }
 0x193   : > { %v2252_v39 = vmax.f32 %v2246_v61, 0.0 }
 0x195   : > { %v2258_v24 = vmin.f32 %v2252_v39, 6.0 }
 0x197   : > { %v2264_v48 = vmul.f32 %v2258_v24, %v2229_v60 }
 0x199   : > { %v2270_v29 = vmul.f32 0.16666667, %v2264_v48 }
 0x19b   : > { %4286 = vmatmul.msk.f32.vlgmr.msrb.gmra.mxu0 %vm2294_vm15, %v2270_v29  ;;  %4289 = vmatmul.msk.f32.vlgmr.msrb.gmra.mxu1 %vm2294_vm15, %v2270_v29 }
 0x19c   : > { %4292 = vmatmul.msk.f32.vlgmr.msrb.gmra.mxu2 %vm2294_vm15, %v2270_v29  ;;  %4295 = vmatmul.msk.f32.vlgmr.msrb.gmra.mxu3 %vm2294_vm15, %v2270_v29 }
 0x1ae   : > { %v2126_v18 = vpop.f32.mrf.mxu0 }
 0x1af   : > { %v2127_v3 = vadd.f32 %v6447_v47, %v2126_v18  ;;  %v2161_v49 = vpop.f32.mrf.mxu1 }
 0x1b1   : > { %v2162_v16 = vadd.f32 %v2161_v49, %v2127_v3 }
 0x1b4   : > { %v2196_v30 = vpop.f32.mrf.mxu2 }
 0x1b5   : > { %v2197_v5 = vadd.f32 %v2196_v30, %v2162_v16  ;;  %v2231_v34 = vpop.f32.mrf.mxu3 }
 0x1b7   : > { %v2232_v0 = vadd.f32 %v2231_v34, %v2197_v5 }
 0x1b9   : > { %v2247_v40 = vadd.f32 3.0, %v2232_v0 }
 0x1bb   : > { %v2253_v38 = vmax.f32 %v2247_v40, 0.0 }
 0x1bd   : > { %v2259_v44 = vmin.f32 %v2253_v38, 6.0 }
 0x1bf   : > { %v2265_v8 = vmul.f32 %v2259_v44, %v2232_v0 }
 0x1c1   : > { %v2271_v6 = vmul.f32 0.16666667, %v2265_v8 }
 0x1c3   : > { %4287 = vmatmul.msk.f32.gmra.mxu0 %vm2294_vm15, %v2271_v6  ;;  %4290 = vmatmul.msk.f32.gmra.mxu1 %vm2294_vm15, %v2271_v6 }
 0x1c4   : > { %4293 = vmatmul.msk.f32.gmra.mxu2 %vm2294_vm15, %v2271_v6  ;;  %4296 = vmatmul.msk.f32.gmra.mxu3 %vm2294_vm15, %v2271_v6 }
 0x1d8   : > { %v2129_v28 = vpop.f32.mrf.mxu0 }
 0x1d9   : > { %v2130_v63 = vadd.f32 %v6447_v47, %v2129_v28  ;;  %v2164_v27 = vpop.f32.mrf.mxu1  ;;  %v2284_v28 = vld [vmem:[#allocation14] sm:$0xf] }
 0x1da   : > { %v6491_v36 = vperm.slane %v2284_v28, 3 }
 0x1db   : > { %v2165_v2 = vadd.f32 %v2164_v27, %v2130_v63  ;;  %v6482_v63 = vperm.slane %v2284_v28, 0  ;;  %v6484_v27 = vperm.slane %v2284_v28, 1 }
 0x1de   : > { %v2199_v55 = vpop.f32.mrf.mxu2 }
 0x1df   : > { %v2200_v59 = vadd.f32 %v2199_v55, %v2165_v2  ;;  %v2234_v41 = vpop.f32.mrf.mxu3 }
 0x1e1   : > { %v2235_v11 = vadd.f32 %v2234_v41, %v2200_v59 }
 0x1e3   : > { %v2248_v57 = vadd.f32 3.0, %v2235_v11 }
 0x1e5   : > { %v2254_v4 = vmax.f32 %v2248_v57, 0.0  ;;  %v6488_v57 = vperm.slane %v2284_v28, 2 }
 0x1e7   : > { %v2260_v32 = vmin.f32 %v2254_v4, 6.0 }
 0x1e9   : > { %v2266_v13 = vmul.f32 %v2260_v32, %v2235_v11 }
 0x1eb   : > { %v2272_v43 = vmul.f32 0.16666667, %v2266_v13 }
 0x1ec   : > { %v2132_v46 = vpop.f32.mrf.mxu0 }
 0x1ed   : > { %v2133_v21 = vadd.f32 %v6447_v47, %v2132_v46  ;;  %v2167_v31 = vpop.f32.mrf.mxu1  ;;  %4288 = vmatmul.msk.f32.gmra.mxu0 %vm2294_vm15, %v2272_v43  ;;  %4291 = vmatmul.msk.f32.gmra.mxu1 %vm2294_vm15, %v2272_v43  ;;  %v2658_v23 = vrot.slane %v2272_v43, 5 }
 0x1ee   : > { %4294 = vmatmul.msk.f32.gmra.mxu2 %vm2294_vm15, %v2272_v43  ;;  %4297 = vmatmul.msk.f32.gmra.mxu3 %vm2294_vm15, %v2272_v43 }
 0x1ef   : > { %v2168_v10 = vadd.f32 %v2167_v31, %v2133_v21 }
 0x1f2   : > { %v2202_v58 = vpop.f32.mrf.mxu2 }
 0x1f3   : > { %v2203_v1 = vadd.f32 %v2202_v58, %v2168_v10  ;;  %v2237_v25 = vpop.f32.mrf.mxu3 }
 0x1f5   : > { %v2238_v35 = vadd.f32 %v2237_v25, %v2203_v1 }
 0x1f7   : > { %v2249_v9 = vadd.f32 3.0, %v2238_v35 }
 0x1f9   : > { %v2255_v54 = vmax.f32 %v2249_v9, 0.0 }
 0x1fb   : > { %v2261_v53 = vmin.f32 %v2255_v54, 6.0 }
 0x1fd   : > { %v2267_v15 = vmul.f32 %v2261_v53, %v2238_v35 }
 0x1ff   : > { %v2273_v62 = vmul.f32 0.16666667, %v2267_v15 }
 0x201   : > { %v2659_v51 = vrot.slane %v2273_v62, 5 }
 0x203   : > { %v2660_v22 = vsel %vm2657_vm11, %v2658_v23, %v2659_v51 }
 0x204   : > { %v2135_v56 = vpop.f32.mrf.mxu0  ;;  %4310 = vmatmul.msk.f32.vlgmr.msra.gmra.mxu0 %vm2294_vm15, %v2660_v22  ;;  %4313 = vmatmul.msk.f32.vlgmr.msra.gmra.mxu1 %vm2294_vm15, %v2660_v22 }
 0x205   : > { %v2136_v7 = vadd.f32 %v6447_v47, %v2135_v56  ;;  %v2170_v33 = vpop.f32.mrf.mxu1  ;;  %4316 = vmatmul.msk.f32.vlgmr.msra.gmra.mxu2 %vm2294_vm15, %v2660_v22  ;;  %4319 = vmatmul.msk.f32.vlgmr.msra.gmra.mxu3 %vm2294_vm15, %v2660_v22 }
 0x207   : > { %v2171_v14 = vadd.f32 %v2170_v33, %v2136_v7 }
 0x20a   : > { %v2205_v19 = vpop.f32.mrf.mxu2 }
 0x20b   : > { %v2206_v45 = vadd.f32 %v2205_v19, %v2171_v14  ;;  %v2240_v42 = vpop.f32.mrf.mxu3 }
 0x20d   : > { %v2241_v60 = vadd.f32 %v2240_v42, %v2206_v45 }
 0x20e   : > { %v2138_v61 = vpop.f32.mrf.mxu0 }
 0x20f   : > { %v2250_v39 = vadd.f32 3.0, %v2241_v60  ;;  %v2139_v18 = vadd.f32 %v6447_v47, %v2138_v61  ;;  %v2173_v3 = vpop.f32.mrf.mxu1 }
 0x211   : > { %v2256_v49 = vmax.f32 %v2250_v39, 0.0  ;;  %v2174_v24 = vadd.f32 %v2173_v3, %v2139_v18 }
 0x213   : > { %v2262_v16 = vmin.f32 %v2256_v49, 6.0 }
 0x214   : > { %v2208_v48 = vpop.f32.mrf.mxu2 }
 0x215   : > { %v2268_v30 = vmul.f32 %v2262_v16, %v2241_v60  ;;  %v2209_v5 = vadd.f32 %v2208_v48, %v2174_v24  ;;  %v2243_v34 = vpop.f32.mrf.mxu3 }
 0x217   : > { %v2274_v0 = vmul.f32 0.16666667, %v2268_v30  ;;  %v2244_v29 = vadd.f32 %v2243_v34, %v2209_v5 }
 0x218   : > { %v2321_v2 = vpop.f32.mrf.mxu0  ;;  %v2347_v55 = vpop.f32.mrf.mxu1 }
 0x219   : > { %v2661_v40 = vrot.slane %v2274_v0, 5  ;;  %v2251_v38 = vadd.f32 3.0, %v2244_v29  ;;  %v2322_v59 = vadd.f32 %v2321_v2, %v6482_v63  ;;  %v2348_v41 = vadd.f32 %v2347_v55, %v6484_v27 }
 0x21b   : > { %v2662_v44 = vsel %vm2657_vm11, %v2659_v51, %v2661_v40  ;;  %v2257_v8 = vmax.f32 %v2251_v38, 0.0  ;;  %v4298_v11 = vmul.f32 -1.442695, %v2322_v59  ;;  %v4299_v37 = vmul.f32 -1.442695, %v2348_v41 }
 0x21c   : > { %4311 = vmatmul.msk.f32.gmra.mxu0 %vm2294_vm15, %v2662_v44  ;;  %4314 = vmatmul.msk.f32.gmra.mxu1 %vm2294_vm15, %v2662_v44 }
 0x21d   : > { %4317 = vmatmul.msk.f32.gmra.mxu2 %vm2294_vm15, %v2662_v44  ;;  %4320 = vmatmul.msk.f32.gmra.mxu3 %vm2294_vm15, %v2662_v44  ;;  %v2263_v47 = vmin.f32 %v2257_v8, 6.0  ;;  %4478 = vpow2.f32 %v4298_v11 }
 0x21e   : > { %4480 = vpow2.f32 %v4299_v37 }
 0x21f   : > { %v2269_v6 = vmul.f32 %v2263_v47, %v2244_v29  ;;  %v2373_v4 = vpop.f32.mrf.mxu2  ;;  %v2399_v52 = vpop.f32.mrf.mxu3 }
 0x220   : > { %v2374_v32 = vadd.f32 %v2373_v4, %v6488_v57  ;;  %v2400_v43 = vadd.f32 %v2399_v52, %v6491_v36 }
 0x221   : > { %v2275_v26 = vmul.f32 0.16666667, %v2269_v6 }
 0x222   : > { %v4300_v13 = vmul.f32 -1.442695, %v2374_v32  ;;  %v4301_v10 = vmul.f32 -1.442695, %v2400_v43 }
 0x223   : > { %v2663_v17 = vrot.slane %v2275_v26, 5  ;;  %v4479_v46 = vpop.eup %4478 }
 0x224   : > { %v4481_v21 = vpop.eup %4480  ;;  %v2444_v31 = vadd.f32 1.0, %v4479_v46  ;;  %4482 = vpow2.f32 %v4300_v13 }
 0x225   : > { %v2664_v20 = vsel %vm2657_vm11, %v2661_v40, %v2663_v17  ;;  %v2445_v58 = vadd.f32 1.0, %v4481_v21 }
 0x226   : > { %4318 = vmatmul.msk.f32.gmra.mxu2 %vm2294_vm15, %v2664_v20  ;;  %4321 = vmatmul.msk.f32.gmra.mxu3 %vm2294_vm15, %v2664_v20  ;;  %4484 = vrcp.f32 %v2444_v31  ;;  %v2467_v19 = vand.u32 2147483648, %v2444_v31  ;;  %vm2461_vm7 = vweird.f32 %v2444_v31  ;;  %v2465_v60 = vand.u32 2147483647, %v2444_v31 }
 0x227   : > { %4315 = vmatmul.msk.f32.gmra.mxu1 %vm2294_vm15, %v2664_v20  ;;  %4312 = vmatmul.msk.f32.gmra.mxu0 %vm2294_vm15, %v2664_v20  ;;  %4486 = vrcp.f32 %v2445_v58  ;;  %v2482_v23 = vand.u32 2147483648, %v2445_v58  ;;  %v2480_v56 = vand.u32 2147483647, %v2445_v58  ;;  %vm2476_vm9 = vweird.f32 %v2445_v58 }
 0x228   : > { %4488 = vpow2.f32 %v4301_v10  ;;  %v2468_v48 = vor.u32 1.1754944e-38, %v2467_v19  ;;  %vm2466_vm3 = vcmp.eq.f32.partialorder %v2465_v60, 8.507059e+37 }
 0x229   : > { %v2483_v61 = vor.u32 1.1754944e-38, %v2482_v23  ;;  %vm2481_vm4 = vcmp.eq.f32.partialorder %v2480_v56, 8.507059e+37 }
 0x22a   : > { %v4483_v12 = vpop.eup %4482 }
 0x22b   : > { %v6494_v50 = vadd.f32 1.0, %v4483_v12 }
 0x22c   : > { %v4485_v1 = vpop.eup %4484 }
 0x22d   : > { %v4487_v25 = vpop.eup %4486  ;;  %v2457_v35 = vmul.f32 %v4485_v1, %v2444_v31  ;;  %4490 = vrcp.f32 %v6494_v50  ;;  %vm2462_vm15 = vweird.f32 %v4485_v1  ;;  %v2497_v47 = vand.u32 2147483648, %v6494_v50 }
 0x22e   : > { %v4489_v9 = vpop.eup %4488  ;;  %v2472_v54 = vmul.f32 %v4487_v25, %v2445_v58  ;;  %vm2477_vm11 = vweird.f32 %v4487_v25  ;;  %vm2463_vm5 = vmor %vm2461_vm7, %vm2462_vm15  ;;  %v2495_v17 = vand.u32 2147483647, %v6494_v50 }
 0x22f   : > { %v2458_v53 = vsub.f32 1.0, %v2457_v35  ;;  %v2447_v15 = vadd.f32 1.0, %v4489_v9  ;;  %vm2478_vm6 = vmor %vm2476_vm9, %vm2477_vm11  ;;  %v2498_v41 = vor.u32 1.1754944e-38, %v2497_v47 }
 0x230   : > { %v2473_v62 = vsub.f32 1.0, %v2472_v54  ;;  %vm2496_vm7 = vcmp.eq.f32.partialorder %v2495_v17, 8.507059e+37 }
 0x231   : > { %v2459_v51 = vmul.f32 %v4485_v1, %v2458_v53  ;;  %4492 = vrcp.f32 %v2447_v15  ;;  %v2512_v20 = vand.u32 2147483648, %v2447_v15  ;;  %v2510_v55 = vand.u32 2147483647, %v2447_v15 }
 0x232   : > { %v2474_v22 = vmul.f32 %v4487_v25, %v2473_v62 }
 0x233   : > { %v4491_v7 = vpop.eup %4490  ;;  %v2460_v33 = vadd.f32 %v4485_v1, %v2459_v51  ;;  %v2513_v37 = vor.u32 1.1754944e-38, %v2512_v20  ;;  %vm2511_vm11 = vcmp.eq.f32.partialorder %v2510_v55, 8.507059e+37 }
 0x234   : > { %v2475_v45 = vadd.f32 %v4487_v25, %v2474_v22  ;;  %v2487_v42 = vmul.f32 %v4491_v7, %v6494_v50  ;;  %vm2492_vm1 = vweird.f32 %v4491_v7 }
 0x235   : > { %v2464_v24 = vsel %vm2463_vm5, %v4485_v1, %v2460_v33 }
 0x236   : > { %v2479_v18 = vsel %vm2478_vm6, %v4487_v25, %v2475_v45  ;;  %v2488_v3 = vsub.f32 1.0, %v2487_v42  ;;  %v6501_v0 = vsel %vm2466_vm3, %v2468_v48, %v2464_v24  ;;  %vm2491_vm3 = vweird.f32 %v6494_v50 }
 0x237   : > { %v4493_v49 = vpop.eup %4492  ;;  %v2484_v16 = vsel %vm2481_vm4, %v2483_v61, %v2479_v18  ;;  %vm2493_vm4 = vmor %vm2491_vm3, %vm2492_vm1  ;;  %vm2506_vm6 = vweird.f32 %v2447_v15  ;;  %vm7504_vm1 = vcmask 1046529  }
 0x238   : > { %v6499_v30 = vrot.slane %v2484_v16, 7  ;;  %v2489_v5 = vmul.f32 %v4491_v7, %v2488_v3  ;;  %v2502_v34 = vmul.f32 %v4493_v49, %v2447_v15  ;;  %vm2507_vm5 = vweird.f32 %v4493_v49 }
 0x239   : > { %vm2508_vm9 = vmor %vm2506_vm6, %vm2507_vm5 }
 0x23a   : > { %v3043_v29 = vsel %vm7508_vm8, %v6501_v0, %v6499_v30  ;;  %v3047_v40 = vsel %vm7507_vm10, %v6501_v0, %v6499_v30  ;;  %v3051_v38 = vsel %vm646_vm12, %v6499_v30, %v6501_v0  ;;  %v2490_v8 = vadd.f32 %v4491_v7, %v2489_v5 }
 0x23b   : > { %v2503_v6 = vsub.f32 1.0, %v2502_v34 }
 0x23c   : > { %v2494_v59 = vsel %vm2493_vm4, %v4491_v7, %v2490_v8 }
 0x23d   : > { %v2504_v2 = vmul.f32 %v4493_v49, %v2503_v6  ;;  %v2499_v4 = vsel %vm2496_vm7, %v2498_v41, %v2494_v59 }
 0x23e   : > { %v6516_v21 = vrot.slane %v2499_v4, 6 }
 0x23f   : > { %v2505_v11 = vadd.f32 %v4493_v49, %v2504_v2 }
 0x240   : > { %v2324_v14 = vpop.f32.mrf.mxu0  ;;  %v2350_v26 = vpop.f32.mrf.mxu1 }
 0x241   : > { %v2325_v39 = vadd.f32 %v2324_v14, %v6482_v63  ;;  %v2351_v28 = vadd.f32 %v2350_v26, %v6484_v27  ;;  %v2509_v32 = vsel %vm2508_vm9, %v4493_v49, %v2505_v11 }
 0x242   : > { %v2514_v52 = vsel %vm2511_vm11, %v2513_v37, %v2509_v32 }
 0x243   : > { %v4302_v44 = vmul.f32 -1.442695, %v2325_v39  ;;  %v6518_v31 = vrot.slane %v2514_v52, 5  ;;  %v4303_v12 = vmul.f32 -1.442695, %v2351_v28 }
 0x245   : > { %4494 = vpow2.f32 %v4302_v44  ;;  %v3044_v1 = vsel %vm646_vm12, %v6518_v31, %v6516_v21  ;;  %v3048_v25 = vsel %vm614_vm0, %v6516_v21, %v6518_v31  ;;  %v3052_v35 = vsel %vm620_vm2, %v6516_v21, %v6518_v31 }
 0x246   : > { %v6534_v9 = vsel %vm7506_vm13, %v3043_v29, %v3044_v1  ;;  %v6537_v54 = vsel %vm7505_vm14, %v3048_v25, %v3047_v40  ;;  %v6540_v53 = vsel %vm7504_vm1, %v3052_v35, %v3051_v38  ;;  %4496 = vpow2.f32 %v4303_v12 }
 0x247   : > { %v2376_v13 = vpop.f32.mrf.mxu2  ;;  %v2402_v43 = vpop.f32.mrf.mxu3 }
 0x248   : > { %v2377_v10 = vadd.f32 %v2376_v13, %v6488_v57  ;;  %v2403_v58 = vadd.f32 %v2402_v43, %v6491_v36 }
 0x24a   : > { %v4304_v7 = vmul.f32 -1.442695, %v2377_v10  ;;  %v4305_v33 = vmul.f32 -1.442695, %v2403_v58 }
 0x24b   : > { %v4495_v46 = vpop.eup %4494 }
 0x24c   : > { %v6522_v50 = vadd.f32 1.0, %v4495_v46  ;;  %v4497_v15 = vpop.eup %4496 }
 0x24d   : > { %v2449_v56 = vadd.f32 1.0, %v4497_v15 }
 0x24e   : > { %4498 = vrcp.f32 %v6522_v50  ;;  %vm2521_vm4 = vweird.f32 %v6522_v50  ;;  %v2525_v8 = vand.u32 2147483647, %v6522_v50  ;;  %v2527_v47 = vand.u32 2147483648, %v6522_v50 }
 0x24f   : > { %4500 = vrcp.f32 %v2449_v56  ;;  %v2540_v40 = vand.u32 2147483647, %v2449_v56  ;;  %v2542_v38 = vand.u32 2147483648, %v2449_v56  ;;  %vm2536_vm6 = vweird.f32 %v2449_v56 }
 0x250   : > { %4502 = vpow2.f32 %v4304_v7  ;;  %vm2526_vm11 = vcmp.eq.f32.partialorder %v2525_v8, 8.507059e+37  ;;  %v2528_v11 = vor.u32 1.1754944e-38, %v2527_v47 }
 0x251   : > { %4504 = vpow2.f32 %v4305_v33  ;;  %v2543_v2 = vor.u32 1.1754944e-38, %v2542_v38  ;;  %vm2541_vm9 = vcmp.eq.f32.partialorder %v2540_v40, 8.507059e+37 }
 0x254   : > { %v6543_v51 = vpop.eup %4498 }
 0x255   : > { %v2517_v14 = vmul.f32 %v6543_v51, %v6522_v50  ;;  %v4501_v49 = vpop.eup %4500  ;;  %vm2522_vm15 = vweird.f32 %v6543_v51 }
 0x256   : > { %v4503_v24 = vpop.eup %4502  ;;  %vm2537_vm3 = vweird.f32 %v4501_v49  ;;  %vm6565_vm5 = vmor %vm2521_vm4, %vm2522_vm15  ;;  %vm7599_vm15 = vcmask 1042434   ;;  %vm7601_vm4 = vcmask 1044484  }
 0x257   : > { %v2518_v18 = vsub.f32 1.0, %v2517_v14  ;;  %v4505_v48 = vpop.eup %4504  ;;  %vm2538_vm7 = vmor %vm2536_vm6, %vm2537_vm3  ;;  %vm7600_vm3 = vcmask 1043459  }
 0x258   : > { %v6554_v34 = vadd.f32 1.0, %v4505_v48 }
 0x259   : > { %v2519_v16 = vmul.f32 %v6543_v51, %v2518_v18 }
 0x25a   : > { %v2572_v33 = vand.u32 2147483648, %v6554_v34 }
 0x26a   : > { %v2327_v62 = vpop.f32.mrf.mxu0  ;;  %v2353_v23 = vpop.f32.mrf.mxu1 }
 0x26b   : > { %v2328_v19 = vadd.f32 %v2327_v62, %v6482_v63  ;;  %v2354_v45 = vadd.f32 %v2353_v23, %v6484_v27  ;;  %v2532_v63 = vmul.f32 %v4501_v49, %v2449_v56  ;;  %v6552_v27 = vadd.f32 1.0, %v4503_v24 }
 0x26d   : > { %v4306_v61 = vmul.f32 -1.442695, %v2328_v19  ;;  %v4307_v39 = vmul.f32 -1.442695, %v2354_v45  ;;  %v2533_v5 = vsub.f32 1.0, %v2532_v63  ;;  %v2557_v7 = vand.u32 2147483648, %v6552_v27 }
 0x26e   : > { %v2555_v56 = vand.u32 2147483647, %v6552_v27 }
 0x26f   : > { %4506 = vpow2.f32 %v4306_v61  ;;  %v2534_v44 = vmul.f32 %v4501_v49, %v2533_v5 }
 0x270   : > { %4508 = vpow2.f32 %v4307_v39 }
 0x271   : > { %v2379_v22 = vpop.f32.mrf.mxu2  ;;  %v2405_v60 = vpop.f32.mrf.mxu3  ;;  %4510 = vrcp.f32 %v6552_v27  ;;  %v2535_v17 = vadd.f32 %v4501_v49, %v2534_v44 }
 0x272   : > { %v2380_v42 = vadd.f32 %v2379_v22, %v6488_v57  ;;  %v2406_v3 = vadd.f32 %v2405_v60, %v6491_v36  ;;  %v2520_v36 = vadd.f32 %v6543_v51, %v2519_v16  ;;  %4512 = vrcp.f32 %v6554_v34 }
 0x273   : > { %v2539_v59 = vsel %vm2538_vm7, %v4501_v49, %v2535_v17  ;;  %vm2551_vm7 = vweird.f32 %v6552_v27  ;;  %v2573_v49 = vor.u32 1.1754944e-38, %v2572_v33 }
 0x274   : > { %v4308_v28 = vmul.f32 -1.442695, %v2380_v42  ;;  %v2524_v55 = vsel %vm6565_vm5, %v6543_v51, %v2520_v36  ;;  %v2544_v37 = vsel %vm2541_vm9, %v2543_v2, %v2539_v59  ;;  %v4309_v13 = vmul.f32 -1.442695, %v2406_v3 }
 0x275   : > { %v4507_v57 = vpop.eup %4506  ;;  %v3018_v32 = vrot.slane %v2544_v37, 7  ;;  %v2529_v43 = vsel %vm2526_vm11, %v2528_v11, %v2524_v55  ;;  %v2570_v42 = vand.u32 2147483647, %v6554_v34  ;;  %vm2566_vm9 = vweird.f32 %v6554_v34 }
 0x276   : > { %v4509_v29 = vpop.eup %4508  ;;  %v6563_v6 = vadd.f32 1.0, %v4507_v57  ;;  %v2558_v3 = vor.u32 1.1754944e-38, %v2557_v7 }
 0x277   : > { %v6569_v20 = vadd.f32 1.0, %v4509_v29  ;;  %v4511_v41 = vpop.eup %4510  ;;  %v3056_v10 = vsel %vm614_vm0, %v2529_v43, %v3018_v32  ;;  %v3059_v58 = vsel %vm620_vm2, %v2529_v43, %v3018_v32  ;;  %v3063_v12 = vsel %vm7599_vm15, %v2529_v43, %v3018_v32 }
 0x278   : > { %4514 = vrcp.f32 %v6563_v6  ;;  %v4513_v4 = vpop.eup %4512  ;;  %v2547_v52 = vmul.f32 %v4511_v41, %v6552_v27  ;;  %v3067_v50 = vsel %vm7600_vm3, %v2529_v43, %v3018_v32  ;;  %v3071_v1 = vsel %vm7601_vm4, %v2529_v43, %v3018_v32 }
 0x279   : > { %4516 = vrcp.f32 %v6569_v20  ;;  %v2562_v46 = vmul.f32 %v4513_v4, %v6554_v34  ;;  %v3075_v25 = vsel %vm7508_vm8, %v2529_v43, %v3018_v32  ;;  %v3079_v35 = vsel %vm7507_vm10, %v2529_v43, %v3018_v32 }
 0x27a   : > { %4518 = vpow2.f32 %v4308_v28  ;;  %v3083_v15 = vsel %vm646_vm12, %v3018_v32, %v2529_v43  ;;  %v2548_v51 = vsub.f32 1.0, %v2547_v52  ;;  %vm2552_vm5 = vweird.f32 %v4511_v41 }
 0x27b   : > { %v2563_v23 = vsub.f32 1.0, %v2562_v46  ;;  %4520 = vpow2.f32 %v4309_v13  ;;  %vm2567_vm6 = vweird.f32 %v4513_v4  ;;  %vm2553_vm11 = vmor %vm2551_vm7, %vm2552_vm5  ;;  %vm2556_vm3 = vcmp.eq.f32.partialorder %v2555_v56, 8.507059e+37  ;;  %v2644_v46 = vld [vmem:[%s7446_s10] sm:$0xf] }
 0x27c   : > { %v2549_v19 = vmul.f32 %v4511_v41, %v2548_v51  ;;  %vm2568_vm15 = vmor %vm2566_vm9, %vm2567_vm6  ;;  %vm2571_vm4 = vcmp.eq.f32.partialorder %v2570_v42, 8.507059e+37  ;;  %vm7602_vm5 = vcmask 1042434   ;;  %vm7603_vm6 = vcmask 1043459  }
 0x27d   : > { %v2564_v45 = vmul.f32 %v4513_v4, %v2563_v23  ;;  %vm7604_vm7 = vcmask 1044484   ;;  %vm7605_vm9 = vcmask 1041408  }
 0x27e   : > { %v6586_v62 = vpop.eup %4514  ;;  %v2550_v60 = vadd.f32 %v4511_v41, %v2549_v19 }
 0x27f   : > { %v6588_v22 = vpop.eup %4516  ;;  %v2565_v61 = vadd.f32 %v4513_v4, %v2564_v45  ;;  %v2577_v39 = vmul.f32 %v6586_v62, %v6563_v6 }
 0x280   : > { %v4519_v14 = vpop.eup %4518  ;;  %v2592_v18 = vmul.f32 %v6588_v22, %v6569_v20  ;;  %v2554_v63 = vsel %vm2553_vm11, %v4511_v41, %v2550_v60  ;;  %vm7606_vm11 = vcmask 1042433  }
 0x281   : > { %v6600_v24 = vadd.f32 1.0, %v4519_v14  ;;  %v4521_v16 = vpop.eup %4520  ;;  %v2569_v48 = vsel %vm2568_vm15, %v4513_v4, %v2565_v61  ;;  %v2559_v27 = vsel %vm2556_vm3, %v2558_v3, %v2554_v63  ;;  %v2578_v29 = vsub.f32 1.0, %v2577_v39  ;;  %v2688_v51 = vpop.f32.mrf.mxu0 }
 0x282   : > { %v2574_v57 = vsel %vm2571_vm4, %v2573_v49, %v2569_v48  ;;  %v3019_v5 = vrot.slane %v2559_v27, 6  ;;  %v2593_v40 = vsub.f32 1.0, %v2592_v18  ;;  %v6603_v38 = vadd.f32 1.0, %v4521_v16  ;;  %v2714_v3 = vpop.f32.mrf.mxu1 }
 0x283   : > { %v3020_v34 = vrot.slane %v2574_v57, 5  ;;  %4522 = vrcp.f32 %v6600_v24  ;;  %vm7607_vm15 = vcmask 1043458   ;;  %vm7608_vm3 = vcmask 1044483  }
 0x284   : > { %v2579_v59 = vmul.f32 %v6586_v62, %v2578_v29  ;;  %v2594_v41 = vmul.f32 %v6588_v22, %v2593_v40  ;;  %vm7609_vm4 = vcmask 1045508   ;;  %4524 = vrcp.f32 %v6603_v38 }
 0x285   : > { %v3057_v36 = vsel %vm7602_vm5, %v3019_v5, %v3020_v34  ;;  %v3060_v44 = vsel %vm7603_vm6, %v3019_v5, %v3020_v34  ;;  %v3064_v8 = vsel %vm7604_vm7, %v3019_v5, %v3020_v34  ;;  %v3068_v47 = vsel %vm7508_vm8, %v3019_v5, %v3020_v34 }
 0x286   : > { %v6610_v26 = vsel %vm7605_vm9, %v3056_v10, %v3057_v36  ;;  %v6613_v17 = vsel %vm7606_vm11, %v3059_v58, %v3060_v44  ;;  %v6616_v28 = vsel %vm7607_vm15, %v3063_v12, %v3064_v8  ;;  %v6619_v2 = vsel %vm7608_vm3, %v3067_v50, %v3068_v47 }
 0x287   : > { %v3072_v55 = vsel %vm7507_vm10, %v3019_v5, %v3020_v34  ;;  %v3076_v37 = vsel %vm646_vm12, %v3020_v34, %v3019_v5  ;;  %v3080_v4 = vsel %vm614_vm0, %v3019_v5, %v3020_v34  ;;  %v3084_v32 = vsel %vm620_vm2, %v3019_v5, %v3020_v34 }
 0x288   : > { %v6625_v11 = vsel %vm7609_vm4, %v3071_v1, %v3072_v55  ;;  %v6631_v52 = vsel %vm7506_vm13, %v3075_v25, %v3076_v37  ;;  %v6634_v13 = vsel %vm7505_vm14, %v3080_v4, %v3079_v35  ;;  %v6637_v43 = vsel %vm7504_vm1, %v3084_v32, %v3083_v15  ;;  %v2740_v16 = vpop.f32.mrf.mxu2  ;;  %v2766_v40 = vpop.f32.mrf.mxu3 }
 0x289   : > { %v6642_v10 = vpop.eup %4522  ;;  %v2595_v58 = vadd.f32 %v6588_v22, %v2594_v41  ;;  %vm2597_vm5 = vweird.f32 %v6588_v22  ;;  %v2580_v12 = vadd.f32 %v6586_v62, %v2579_v59  ;;  %vm2582_vm6 = vweird.f32 %v6586_v62 }
 0x28a   : > { %v2602_v50 = vand.u32 2147483648, %v6569_v20  ;;  %v6650_v1 = vperm.slane %v2644_v46, 0  ;;  %v2585_v25 = vand.u32 2147483647, %v6563_v6  ;;  %v2587_v35 = vand.u32 2147483648, %v6563_v6  ;;  %v4525_v7 = vpop.eup %4524 }
 0x28b   : > { %vm2596_vm7 = vweird.f32 %v6569_v20  ;;  %v2600_v15 = vand.u32 2147483647, %v6569_v20  ;;  %vm2581_vm9 = vweird.f32 %v6563_v6  ;;  %v2607_v56 = vmul.f32 %v6642_v10, %v6600_v24 }
 0x28c   : > { %vm2598_vm11 = vmor %vm2596_vm7, %vm2597_vm5  ;;  %v2603_v14 = vor.u32 1.1754944e-38, %v2602_v50  ;;  %v2689_v19 = vadd.f32 %v2688_v51, %v6650_v1  ;;  %vm2586_vm3 = vcmp.eq.f32.partialorder %v2585_v25, 8.507059e+37  ;;  %v2588_v45 = vor.u32 1.1754944e-38, %v2587_v35 }
 0x28d   : > { %vm2583_vm15 = vmor %vm2581_vm9, %vm2582_vm6  ;;  %v2599_v23 = vsel %vm2598_vm11, %v6588_v22, %v2595_v58  ;;  %vm2601_vm4 = vcmp.eq.f32.partialorder %v2600_v15, 8.507059e+37  ;;  %vm2611_vm1 = vweird.f32 %v6600_v24  ;;  %v2615_v6 = vand.u32 2147483647, %v6600_v24 }
 0x28e   : > { %v2584_v33 = vsel %vm2583_vm15, %v6586_v62, %v2580_v12  ;;  %v2604_v20 = vsel %vm2601_vm4, %v2603_v14, %v2599_v23  ;;  %v2617_v42 = vand.u32 2147483648, %v6600_v24  ;;  %v2608_v61 = vsub.f32 1.0, %v2607_v56 }
 0x28f   : > { %v2589_v22 = vsel %vm2586_vm3, %v2588_v45, %v2584_v33  ;;  %v3021_v60 = vrot.slane %v2604_v20, 7  ;;  %v2622_v39 = vmul.f32 %v4525_v7, %v6603_v38  ;;  %vm2612_vm5 = vweird.f32 %v6642_v10 }
 0x290   : > { %v4322_v62 = vmul.f32 -1.442695, %v2689_v19  ;;  %v6667_v18 = vperm.slane %v2644_v46, 1  ;;  %v6669_v49 = vperm.slane %v2644_v46, 2  ;;  %vm7610_vm6 = vcmask 1042434   ;;  %vm2613_vm15 = vmor %vm2611_vm1, %vm2612_vm5 }
 0x291   : > { %v3087_v63 = vsel %vm614_vm0, %v2589_v22, %v3021_v60  ;;  %v3090_v48 = vsel %vm620_vm2, %v2589_v22, %v3021_v60  ;;  %v3094_v27 = vsel %vm7610_vm6, %v2589_v22, %v3021_v60  ;;  %vm7611_vm7 = vcmask 1043459  }
 0x292   : > { %v3098_v57 = vsel %vm7611_vm7, %v2589_v22, %v3021_v60  ;;  %vm7612_vm9 = vcmask 1044484   ;;  %v2609_v34 = vmul.f32 %v6642_v10, %v2608_v61  ;;  %v2623_v29 = vsub.f32 1.0, %v2622_v39 }
 0x293   : > { %v3102_v5 = vsel %vm7612_vm9, %v2589_v22, %v3021_v60  ;;  %4526 = vpow2.f32 %v4322_v62  ;;  %v2632_v36 = vand.u32 2147483648, %v6603_v38  ;;  %v2715_v44 = vadd.f32 %v2714_v3, %v6667_v18 }
 0x294   : > { %v2741_v8 = vadd.f32 %v2740_v16, %v6669_v49  ;;  %v6680_v47 = vperm.slane %v2644_v46, 3  ;;  %v2610_v55 = vadd.f32 %v6642_v10, %v2609_v34  ;;  %v2624_v59 = vmul.f32 %v4525_v7, %v2623_v29 }
 0x295   : > { %vm2627_vm11 = vweird.f32 %v4525_v7  ;;  %v2630_v41 = vand.u32 2147483647, %v6603_v38  ;;  %v2618_v37 = vor.u32 1.1754944e-38, %v2617_v42  ;;  %v4323_v4 = vmul.f32 -1.442695, %v2715_v44 }
 0x296   : > { %v4324_v32 = vmul.f32 -1.442695, %v2741_v8  ;;  %v2767_v58 = vadd.f32 %v2766_v40, %v6680_v47  ;;  %v2614_v12 = vsel %vm2613_vm15, %v6642_v10, %v2610_v55  ;;  %vm2616_vm3 = vcmp.eq.f32.partialorder %v2615_v6, 8.507059e+37 }
 0x297   : > { %v2625_v46 = vadd.f32 %v4525_v7, %v2624_v59  ;;  %vm2626_vm4 = vweird.f32 %v6603_v38  ;;  %v2619_v50 = vsel %vm2616_vm3, %v2618_v37, %v2614_v12  ;;  %v2633_v25 = vor.u32 1.1754944e-38, %v2632_v36 }
 0x298   : > { %vm2628_vm6 = vmor %vm2626_vm4, %vm2627_vm11  ;;  %v4325_v35 = vmul.f32 -1.442695, %v2767_v58  ;;  %v3022_v51 = vrot.slane %v2619_v50, 6  ;;  %vm2631_vm7 = vcmp.eq.f32.partialorder %v2630_v41, 8.507059e+37  ;;  %4528 = vpow2.f32 %v4323_v4 }
 0x299   : > { %v4527_v15 = vpop.eup %4526  ;;  %v2629_v23 = vsel %vm2628_vm6, %v4525_v7, %v2625_v46  ;;  %4530 = vpow2.f32 %v4324_v32  ;;  %vm7613_vm1 = vcmask 1042434   ;;  %vm7614_vm5 = vcmask 1043459  }
 0x29a   : > { %v2634_v24 = vsel %vm2631_vm7, %v2633_v25, %v2629_v23  ;;  %v6691_v56 = vadd.f32 1.0, %v4527_v15  ;;  %4532 = vpow2.f32 %v4325_v35  ;;  %vm7615_vm11 = vcmask 1041408   ;;  %v2691_v35 = vpop.f32.mrf.mxu0  ;;  %v2717_v15 = vpop.f32.mrf.mxu1 }
 0x29b   : > { %v3023_v33 = vrot.slane %v2634_v24, 5  ;;  %vm7616_vm15 = vcmask 1042433   ;;  %vm7617_vm3 = vcmask 1043458   ;;  %vm7618_vm4 = vcmask 1044483  }
 0x29c   : > { %4534 = vrcp.f32 %v6691_v56  ;;  %vm7619_vm6 = vcmask 1045508   ;;  %vm2828_vm7 = vweird.f32 %v6691_v56  ;;  %v2832_v44 = vand.u32 2147483647, %v6691_v56 }
 0x29d   : > { %v3088_v10 = vsel %vm7613_vm1, %v3022_v51, %v3023_v33  ;;  %v3091_v38 = vsel %vm7614_vm5, %v3022_v51, %v3023_v33  ;;  %v3095_v14 = vsel %vm7612_vm9, %v3022_v51, %v3023_v33  ;;  %v3099_v19 = vsel %vm7508_vm8, %v3022_v51, %v3023_v33 }
 0x29e   : > { %v6699_v7 = vsel %vm7615_vm11, %v3087_v63, %v3088_v10  ;;  %v6702_v45 = vsel %vm7616_vm15, %v3090_v48, %v3091_v38  ;;  %v6705_v20 = vsel %vm7617_vm3, %v3094_v27, %v3095_v14  ;;  %v6708_v6 = vsel %vm7618_vm4, %v3098_v57, %v3099_v19  ;;  %v4529_v42 = vpop.eup %4528 }
 0x29f   : > { %v3103_v22 = vsel %vm7507_vm10, %v3022_v51, %v3023_v33  ;;  %v4531_v60 = vpop.eup %4530  ;;  %v2812_v16 = vadd.f32 1.0, %v4529_v42  ;;  %v2834_v57 = vand.u32 2147483648, %v6691_v56  ;;  %v2692_v24 = vadd.f32 %v2691_v35, %v6650_v1 }
 0x2a0   : > { %v6712_v61 = vsel %vm7619_vm6, %v3102_v5, %v3103_v22  ;;  %v4533_v39 = vpop.eup %4532  ;;  %v2813_v63 = vadd.f32 1.0, %v4531_v60  ;;  %v2718_v33 = vadd.f32 %v2717_v15, %v6667_v18 }
 0x2a1   : > { %v6718_v48 = vadd.f32 1.0, %v4533_v39  ;;  %4536 = vrcp.f32 %v2812_v16  ;;  %v2847_v34 = vand.u32 2147483647, %v2812_v16  ;;  %v2849_v5 = vand.u32 2147483648, %v2812_v16 }
 0x2a2   : > { %v6714_v62 = vpop.eup %4534  ;;  %4538 = vrcp.f32 %v2813_v63  ;;  %v2835_v8 = vor.u32 1.1754944e-38, %v2834_v57  ;;  %vm2843_vm5 = vweird.f32 %v2812_v16  ;;  %vm2858_vm9 = vweird.f32 %v2813_v63 }
 0x2a3   : > { %v2824_v3 = vmul.f32 %v6714_v62, %v6691_v56  ;;  %4540 = vrcp.f32 %v6718_v48  ;;  %vm2829_vm1 = vweird.f32 %v6714_v62  ;;  %v2862_v37 = vand.u32 2147483647, %v2813_v63 }
 0x2a4   : > { %vm6726_vm11 = vcmp.eq.f32.partialorder %v2847_v34, 8.507059e+37  ;;  %v2850_v58 = vor.u32 1.1754944e-38, %v2849_v5  ;;  %v2864_v25 = vand.u32 2147483648, %v2813_v63  ;;  %v2877_v38 = vand.u32 2147483647, %v6718_v48  ;;  %vm6740_vm4 = vmor %vm2828_vm7, %vm2829_vm1 }
 0x2a5   : > { %v2825_v27 = vsub.f32 1.0, %v2824_v3  ;;  %v2879_v14 = vand.u32 2147483648, %v6718_v48  ;;  %v4326_v60 = vmul.f32 -1.442695, %v2692_v24  ;;  %vm2863_vm13 = vcmp.eq.f32.partialorder %v2862_v37, 8.507059e+37 }
 0x2a6   : > { %v2865_v3 = vor.u32 1.1754944e-38, %v2864_v25  ;;  %vm2873_vm10 = vweird.f32 %v6718_v48  ;;  %v4327_v57 = vmul.f32 -1.442695, %v2718_v33  ;;  %vm2833_vm1 = vcmp.eq.f32.partialorder %v2832_v44, 8.507059e+37 }
 0x2a7   : > { %v4537_v29 = vpop.eup %4536  ;;  %v2826_v40 = vmul.f32 %v6714_v62, %v2825_v27  ;;  %4542 = vpow2.f32 %v4326_v60 }
 0x2a8   : > { %v4539_v36 = vpop.eup %4538  ;;  %v2839_v55 = vmul.f32 %v4537_v29, %v2812_v16  ;;  %vm2844_vm15 = vweird.f32 %v4537_v29  ;;  %4544 = vpow2.f32 %v4327_v57 }
 0x2a9   : > { %v4541_v59 = vpop.eup %4540  ;;  %v2854_v41 = vmul.f32 %v4539_v36, %v2813_v63  ;;  %v2827_v46 = vadd.f32 %v6714_v62, %v2826_v40  ;;  %vm2859_vm3 = vweird.f32 %v4539_v36  ;;  %vm2845_vm14 = vmor %vm2843_vm5, %vm2844_vm15  ;;  %v2880_v40 = vor.u32 1.1754944e-38, %v2879_v14  ;;  %v2769_v63 = vpop.f32.mrf.mxu3 }
 0x2aa   : > { %v2840_v4 = vsub.f32 1.0, %v2839_v55  ;;  %v2869_v12 = vmul.f32 %v4541_v59, %v6718_v48  ;;  %vm2874_vm6 = vweird.f32 %v4541_v59  ;;  %vm2860_vm8 = vmor %vm2858_vm9, %vm2859_vm3  ;;  %v2743_v55 = vpop.f32.mrf.mxu2  ;;  %vm7627_vm5 = vcmask 1045509  }
 0x2ab   : > { %v2855_v50 = vsub.f32 1.0, %v2854_v41  ;;  %v2831_v34 = vsel %vm6740_vm4, %v6714_v62, %v2827_v46  ;;  %vm2875_vm7 = vmor %vm2873_vm10, %vm2874_vm6  ;;  %vm7625_vm10 = vcmask 1043459   ;;  %vm7628_vm9 = vcmask 1046534  }
 0x2ac   : > { %v2841_v51 = vmul.f32 %v4537_v29, %v2840_v4  ;;  %v2870_v23 = vsub.f32 1.0, %v2869_v12  ;;  %v2744_v4 = vadd.f32 %v2743_v55, %v6669_v49  ;;  %v2836_v12 = vsel %vm2833_vm1, %v2835_v8, %v2831_v34  ;;  %vm7630_vm15 = vmmov %vm7625_vm10 }
 0x2ad   : > { %v2856_v10 = vmul.f32 %v4539_v36, %v2855_v50  ;;  %v4543_v46 = vpop.eup %4542  ;;  %vm7632_vm4 = vmmov %vm7627_vm5  ;;  %vm7633_vm6 = vcmask 1041408   ;;  %vm7636_vm1 = vcmask 1044483  }
 0x2ae   : > { %v2842_v42 = vadd.f32 %v4537_v29, %v2841_v51  ;;  %v2871_v22 = vmul.f32 %v4541_v59, %v2870_v23  ;;  %v6764_v51 = vadd.f32 1.0, %v4543_v46  ;;  %v4328_v23 = vmul.f32 -1.442695, %v2744_v4  ;;  %v4545_v60 = vpop.eup %4544 }
 0x2af   : > { %v2857_v39 = vadd.f32 %v4539_v36, %v2856_v10  ;;  %v2816_v4 = vadd.f32 1.0, %v4545_v60 }
 0x2b0   : > { %v2846_v27 = vsel %vm2845_vm14, %v4537_v29, %v2842_v42  ;;  %v2872_v56 = vadd.f32 %v4541_v59, %v2871_v22  ;;  %vm2878_vm14 = vcmp.eq.f32.partialorder %v2877_v38, 8.507059e+37  ;;  %4546 = vrcp.f32 %v6764_v51 }
 0x2b1   : > { %v2851_v5 = vsel %vm6726_vm11, %v2850_v58, %v2846_v27  ;;  %v2861_v16 = vsel %vm2860_vm8, %v4539_v36, %v2857_v39  ;;  %v2770_v58 = vadd.f32 %v2769_v63, %v6680_v47  ;;  %vm7624_vm8 = vcmask 1042434  }
 0x2b2   : > { %v3118_v41 = vrot.slane %v2851_v5, 7  ;;  %v2866_v48 = vsel %vm2863_vm13, %v2865_v3, %v2861_v16  ;;  %v2876_v29 = vsel %vm2875_vm7, %v4541_v59, %v2872_v56  ;;  %vm7626_vm13 = vcmask 1044484   ;;  %vm7629_vm11 = vmmov %vm7624_vm8 }
 0x2b3   : > { %v2881_v37 = vsel %vm2878_vm14, %v2880_v40, %v2876_v29  ;;  %v3119_v50 = vrot.slane %v2866_v48, 6  ;;  %vm7631_vm3 = vmmov %vm7626_vm13  ;;  %vm7634_vm7 = vcmask 1042433   ;;  %vm7635_vm14 = vcmask 1043458  }
 0x2b4   : > { %v3127_v62 = vsel %vm614_vm0, %v2836_v12, %v3118_v41  ;;  %v3130_v36 = vsel %vm620_vm2, %v2836_v12, %v3118_v41  ;;  %v3154_v32 = vsel %vm646_vm12, %v3118_v41, %v2836_v12  ;;  %v3134_v59 = vsel %vm7624_vm8, %v2836_v12, %v3118_v41  ;;  %vm7637_vm8 = vmmov %vm7628_vm9 }
 0x2b5   : > { %v3138_v25 = vsel %vm7625_vm10, %v2836_v12, %v3118_v41  ;;  %v3142_v44 = vsel %vm7626_vm13, %v2836_v12, %v3118_v41  ;;  %v3120_v35 = vrot.slane %v2881_v37, 5  ;;  %v3146_v8 = vsel %vm7627_vm5, %v2836_v12, %v3118_v41 }
 0x2b6   : > { %v3150_v15 = vsel %vm7628_vm9, %v2836_v12, %v3118_v41  ;;  %vm7638_vm10 = vcmask 1045508   ;;  %vm7639_vm13 = vcmask 1046533   ;;  %vm7640_vm5 = vcmask 1045504   ;;  %v6806_v12 = vpop.eup %4546 }
 0x2b7   : > { %v3128_v24 = vsel %vm7629_vm11, %v3119_v50, %v3120_v35  ;;  %v3131_v33 = vsel %vm7630_vm15, %v3119_v50, %v3120_v35  ;;  %v3135_v10 = vsel %vm7631_vm3, %v3119_v50, %v3120_v35  ;;  %v3139_v38 = vsel %vm7632_vm4, %v3119_v50, %v3120_v35 }
 0x2b8   : > { %v6771_v14 = vsel %vm7633_vm6, %v3127_v62, %v3128_v24  ;;  %v3132_v19 = vsel %vm7634_vm7, %v3130_v36, %v3131_v33  ;;  %v3136_v42 = vsel %vm7635_vm14, %v3134_v59, %v3135_v10  ;;  %v3140_v22 = vsel %vm7636_vm1, %v3138_v25, %v3139_v38 }
 0x2b9   : > { %v6776_v39 = vrot.slane %v3132_v19, 1  ;;  %v6778_v3 = vrot.slane %v3136_v42, 2  ;;  %v6780_v27 = vrot.slane %v3140_v22, 3  ;;  %v3143_v56 = vsel %vm7637_vm8, %v3119_v50, %v3120_v35  ;;  %3376 = vst [vmem:[#allocation1] ss:$9 sm:$0xff] %v6771_v14 }
 0x2ba   : > { %v3144_v57 = vsel %vm7638_vm10, %v3142_v44, %v3143_v56  ;;  %v3147_v34 = vsel %vm646_vm12, %v3120_v35, %v3119_v50  ;;  %v3151_v5 = vsel %vm614_vm0, %v3119_v50, %v3120_v35  ;;  %v3155_v16 = vsel %vm620_vm2, %v3119_v50, %v3120_v35 }
 0x2bb   : > { %v6788_v40 = vrot.slane %v3144_v57, 4  ;;  %v3148_v55 = vsel %vm7639_vm13, %v3146_v8, %v3147_v34  ;;  %v3152_v41 = vsel %vm7640_vm5, %v3151_v5, %v3150_v15  ;;  %vm7641_vm9 = vcmask 1046529   ;;  %3378 = vst [vmem:[#allocation1 + $0x1] ss:$9 sm:$0xff] %v6776_v39 }
 0x2bc   : > { %v6793_v48 = vsel %vm7641_vm9, %v3155_v16, %v3154_v32  ;;  %v6796_v29 = vrot.slane %v3148_v55, 5  ;;  %v6798_v63 = vrot.slane %v3152_v41, 6  ;;  %3380 = vst [vmem:[#allocation1 + $0x2] ss:$9 sm:$0xff] %v6778_v3  ;;  %v4329_v37 = vmul.f32 -1.442695, %v2770_v58 }
 0x2bd   : > { %3382 = vst [vmem:[#allocation1 + $0x3] ss:$9 sm:$0xff] %v6780_v27  ;;  %4548 = vpow2.f32 %v4328_v23  ;;  %v2884_v50 = vmul.f32 %v6806_v12, %v6764_v51  ;;  %v3025_v33 = vsel %vm7629_vm11, %v6516_v21, %v6518_v31  ;;  %v2909_v10 = vand.u32 2147483648, %v2816_v4 }
 0x2be   : > { %3384 = vst [vmem:[#allocation1 + $0x4] ss:$9 sm:$0xff] %v6788_v40  ;;  %4550 = vrcp.f32 %v2816_v4  ;;  %v2907_v19 = vand.u32 2147483647, %v2816_v4  ;;  %v3024_v42 = vsel %vm614_vm0, %v6501_v0, %v6499_v30  ;;  %vm2889_vm3 = vweird.f32 %v6806_v12 }
 0x2bf   : > { %3386 = vst [vmem:[#allocation1 + $0x5] ss:$9 sm:$0xff] %v6796_v29  ;;  %4552 = vpow2.f32 %v4329_v37  ;;  %v2885_v32 = vsub.f32 1.0, %v2884_v50  ;;  %vm2903_vm4 = vweird.f32 %v2816_v4  ;;  %v6834_v57 = vsel %vm7633_vm6, %v3024_v42, %v3025_v33 }
 0x2c0   : > { %3388 = vst [vmem:[#allocation1 + $0x6] ss:$9 sm:$0xff] %v6798_v63  ;;  %vm2888_vm7 = vweird.f32 %v6764_v51  ;;  %v2894_v34 = vand.u32 2147483648, %v6764_v51  ;;  %v2910_v5 = vor.u32 1.1754944e-38, %v2909_v10  ;;  %v2892_v16 = vand.u32 2147483647, %v6764_v51 }
 0x2c1   : > { %v2886_v15 = vmul.f32 %v6806_v12, %v2885_v32  ;;  %vm2908_vm1 = vcmp.eq.f32.partialorder %v2907_v19, 8.507059e+37  ;;  %v3027_v37 = vsel %vm620_vm2, %v6501_v0, %v6499_v30  ;;  %vm7642_vm8 = vcmask 1043459   ;;  %vm6853_vm10 = vmor %vm2888_vm7, %vm2889_vm3 }
 0x2c2   : > { %v3209_v32 = vperm.slane %v6834_v57, 1  ;;  %vm7645_vm13 = vcmask 1042433   ;;  %vm2893_vm5 = vcmp.eq.f32.partialorder %v2892_v16, 8.507059e+37  ;;  %vm7646_vm9 = vcmask 1046534  }
 0x2c3   : > { %v4549_v62 = vpop.eup %4548  ;;  %v2887_v22 = vadd.f32 %v6806_v12, %v2886_v15  ;;  %v3210_v15 = vperm.slane %v6834_v57, 2 }
 0x2c4   : > { %v4551_v36 = vpop.eup %4550  ;;  %v6810_v58 = vadd.f32 1.0, %v4549_v62 }
 0x2c5   : > { %v4553_v46 = vpop.eup %4552  ;;  %v2899_v59 = vmul.f32 %v4551_v36, %v2816_v4  ;;  %vm2904_vm15 = vweird.f32 %v4551_v36  ;;  %v3028_v4 = vsel %vm7642_vm8, %v6516_v21, %v6518_v31  ;;  %vm7649_vm8 = vcmask 1044484  }
 0x2c6   : > { %4554 = vrcp.f32 %v6810_v58  ;;  %v6816_v24 = vadd.f32 1.0, %v4553_v46  ;;  %vm2905_vm14 = vmor %vm2903_vm4, %vm2904_vm15  ;;  %v2891_v46 = vsel %vm6853_vm10, %v6806_v12, %v2887_v22  ;;  %vm2918_vm15 = vweird.f32 %v6810_v58 }
 0x2c7   : > { %v3389_v25 = vld [vmem:[#allocation1] sm:$0xff]  ;;  %v3390_v44 = vld [vmem:[#allocation1 + $0x9] sm:$0xff]  ;;  %v3391_v35 = vld [vmem:[#allocation1 + $0x12] sm:$0xff]  ;;  %v2900_v23 = vsub.f32 1.0, %v2899_v59  ;;  %v2922_v50 = vand.u32 2147483647, %v6810_v58 }
 0x2c8   : > { %v6813_v8 = vld [vmem:[#allocation1 + $0x1b] sm:$0xff]  ;;  %4556 = vrcp.f32 %v6816_v24  ;;  %v3698_v42 = vmul.f32 %v3390_v44, %v3209_v32  ;;  %vm2933_vm6 = vweird.f32 %v6816_v24  ;;  %vm7650_vm10 = vcmask 1042434  }
 0x2c9   : > { %3393 = vst [vmem:[#allocation1] ss:$9 sm:$0xff] %v6771_v14  ;;  %v2901_v38 = vmul.f32 %v4551_v36, %v2900_v23  ;;  %v2895_v23 = vor.u32 1.1754944e-38, %v2894_v34  ;;  %vm2923_vm7 = vcmp.eq.f32.partialorder %v2922_v50, 8.507059e+37 }
 0x2ca   : > { %3394 = vst [vmem:[#allocation1 + $0x1] ss:$9 sm:$0xff] %v6776_v39 }
 0x2cb   : > { %3395 = vst [vmem:[#allocation1 + $0x2] ss:$9 sm:$0xff] %v6778_v3  ;;  %v2902_v60 = vadd.f32 %v4551_v36, %v2901_v38  ;;  %v3029_v38 = vsel %vm7645_vm13, %v3027_v37, %v3028_v4  ;;  %vm7651_vm13 = vcmask 1043458  }
 0x2cc   : > { %3396 = vst [vmem:[#allocation1 + $0x3] ss:$9 sm:$0xff] %v6780_v27  ;;  %v6831_v56 = vpop.eup %4554  ;;  %v3030_v34 = vrot.slane %v3029_v38, 1 }
 0x2cd   : > { %3397 = vst [vmem:[#allocation1 + $0x4] ss:$9 sm:$0xff] %v6788_v40  ;;  %v2906_v55 = vsel %vm2905_vm14, %v4551_v36, %v2902_v60  ;;  %v2914_v41 = vmul.f32 %v6831_v56, %v6810_v58  ;;  %v3208_v36 = vperm.slane %v6834_v57, 0  ;;  %v3699_v60 = vmul.f32 %v3391_v35, %v3210_v15 }
 0x2ce   : > { %3398 = vst [vmem:[#allocation1 + $0x5] ss:$9 sm:$0xff] %v6796_v29  ;;  %v2911_v51 = vsel %vm2908_vm1, %v2910_v5, %v2906_v55  ;;  %v6857_v62 = vpop.eup %4556  ;;  %v6870_v5 = vsel %vm2893_vm5, %v2895_v23, %v2891_v46  ;;  %vm2919_vm11 = vweird.f32 %v6831_v56  ;;  %v2937_v46 = vand.u32 2147483647, %v6816_v24 }
 0x2cf   : > { %3399 = vst [vmem:[#allocation1 + $0x6] ss:$9 sm:$0xff] %v6798_v63  ;;  %v6864_v59 = vrot.slane %v2911_v51, 7  ;;  %v2915_v33 = vsub.f32 1.0, %v2914_v41  ;;  %v2929_v10 = vmul.f32 %v6857_v62, %v6816_v24  ;;  %v3697_v19 = vmul.f32 %v3389_v25, %v3208_v36  ;;  %vm6900_vm3 = vmor %vm2918_vm15, %vm2919_vm11 }
 0x2d0   : > { %3782 = vst [vmem:[%s6884_s16 + $0x8] sm:$0x7f] %v3698_v42  ;;  %v2924_v41 = vand.u32 2147483648, %v6810_v58  ;;  %v2939_v36 = vand.u32 2147483648, %v6816_v24  ;;  %vm2934_vm4 = vweird.f32 %v6857_v62  ;;  %v3211_v15 = vperm.slane %v6834_v57, 3 }
 0x2d1   : > { %v6875_v12 = vsel %vm7646_vm9, %v6870_v5, %v6864_v59  ;;  %v6880_v22 = vsel %vm646_vm12, %v6864_v59, %v6870_v5  ;;  %3781 = vst [vmem:[%s6884_s16] sm:$0x7f] %v3697_v19  ;;  %v2916_v25 = vmul.f32 %v6831_v56, %v2915_v33  ;;  %v2930_v44 = vsub.f32 1.0, %v2929_v10  ;;  %vm2935_vm14 = vmor %vm2933_vm6, %vm2934_vm4 }
 0x2d2   : > { %3783 = vst [vmem:[%s6884_s16 + $0x10] sm:$0x7f] %v3699_v60  ;;  %v3212_v33 = vperm.slane %v3030_v34, 0  ;;  %v3213_v10 = vperm.slane %v3030_v34, 1  ;;  %v2925_v38 = vor.u32 1.1754944e-38, %v2924_v41  ;;  %v3214_v19 = vperm.slane %v3030_v34, 2  ;;  %vm7658_vm6 = vmmov %vm7649_vm8 }
 0x2d3   : > { %v2917_v4 = vadd.f32 %v6831_v56, %v2916_v25  ;;  %v2931_v51 = vmul.f32 %v6857_v62, %v2930_v44  ;;  %v3700_v57 = vmul.f32 %v6813_v8, %v3211_v15  ;;  %vm2938_vm1 = vcmp.eq.f32.partialorder %v2937_v46, 8.507059e+37 }
 0x2d4   : > { %v3215_v24 = vperm.slane %v3030_v34, 3  ;;  %v3032_v41 = vsel %vm7649_vm8, %v6516_v21, %v6518_v31  ;;  %v3031_v34 = vsel %vm7650_vm10, %v6501_v0, %v6499_v30  ;;  %vm7652_vm5 = vcmask 1045504  }
 0x2d5   : > { %v2921_v58 = vsel %vm6900_vm3, %v6831_v56, %v2917_v4  ;;  %v2932_v23 = vadd.f32 %v6857_v62, %v2931_v51  ;;  %v2940_v56 = vor.u32 1.1754944e-38, %v2939_v36  ;;  %3784 = vst [vmem:[%s6884_s16 + $0x18] sm:$0x7f] %v3700_v57  ;;  %vm7653_vm9 = vcmask 1046529  }
 0x2d6   : > { %v3400_v35 = vld [vmem:[#allocation1] sm:$0xff]  ;;  %v3401_v16 = vld [vmem:[#allocation1 + $0x9] sm:$0xff]  ;;  %v3402_v55 = vld [vmem:[#allocation1 + $0x12] sm:$0xff]  ;;  %v2926_v60 = vsel %vm2923_vm7, %v2925_v38, %v2921_v58  ;;  %vm7654_vm11 = vcmask 1045509   ;;  %vm7655_vm15 = vcmask 1043459   ;;  %vm7656_vm3 = vcmask 1044483  }
 0x2d7   : > { %v3403_v37 = vld [vmem:[#allocation1 + $0x1b] sm:$0xff]  ;;  %v3701_v42 = vmul.f32 %v3400_v35, %v3212_v33  ;;  %v2936_v25 = vsel %vm2935_vm14, %v6857_v62, %v2932_v23  ;;  %v3702_v8 = vmul.f32 %v3401_v16, %v3213_v10  ;;  %v3703_v35 = vmul.f32 %v3402_v55, %v3214_v19  ;;  %vm7660_vm14 = vmmov %vm7655_vm15 }
 0x2d8   : > { %3404 = vst [vmem:[#allocation1] ss:$9 sm:$0xff] %v6771_v14  ;;  %v2941_v44 = vsel %vm2938_vm1, %v2940_v56, %v2936_v25  ;;  %v3704_v4 = vmul.f32 %v3403_v37, %v3215_v24  ;;  %v6926_v50 = vrot.slane %v2926_v60, 6  ;;  %v3033_v16 = vsel %vm7651_vm13, %v3031_v34, %v3032_v41  ;;  %vm7661_vm1 = vmmov %vm7658_vm6 }
 0x2d9   : > { %3405 = vst [vmem:[#allocation1 + $0x1] ss:$9 sm:$0xff] %v6776_v39  ;;  %v6928_v62 = vrot.slane %v2941_v44, 5  ;;  %v3034_v51 = vrot.slane %v3033_v16, 2  ;;  %v3036_v56 = vsel %vm7654_vm11, %v6516_v21, %v6518_v31  ;;  %v3035_v60 = vsel %vm7655_vm15, %v6501_v0, %v6499_v30  ;;  %vm7662_vm8 = vmmov %vm7654_vm11 }
 0x2da   : > { %3406 = vst [vmem:[#allocation1 + $0x2] ss:$9 sm:$0xff] %v6778_v3  ;;  %v3037_v25 = vsel %vm7656_vm3, %v3035_v60, %v3036_v56  ;;  %vm7657_vm4 = vcmask 1046534   ;;  %vm7659_vm7 = vcmask 1045508   ;;  %vm7663_vm13 = vmmov %vm7650_vm10  ;;  %vm7667_vm15 = vcmask 1043458  }
 0x2db   : > { %3407 = vst [vmem:[#allocation1 + $0x3] ss:$9 sm:$0xff] %v6780_v27  ;;  %v3182_v55 = vsel %vm614_vm0, %v6926_v50, %v6928_v62  ;;  %v3186_v37 = vsel %vm620_vm2, %v6926_v50, %v6928_v62  ;;  %v3216_v33 = vperm.slane %v3034_v51, 0  ;;  %v3217_v10 = vperm.slane %v3034_v51, 1  ;;  %vm7666_vm11 = vmmov %vm7660_vm14 }
 0x2dc   : > { %3408 = vst [vmem:[#allocation1 + $0x4] ss:$9 sm:$0xff] %v6788_v40  ;;  %v6946_v36 = vsel %vm7652_vm5, %v3182_v55, %v6875_v12  ;;  %v6950_v32 = vsel %vm7653_vm9, %v3186_v37, %v6880_v22  ;;  %v3218_v12 = vperm.slane %v3034_v51, 2  ;;  %v3219_v38 = vperm.slane %v3034_v51, 3  ;;  %vm7665_vm9 = vmmov %vm7657_vm4 }
 0x2dd   : > { %3409 = vst [vmem:[#allocation1 + $0x5] ss:$9 sm:$0xff] %v6796_v29  ;;  %v3038_v24 = vrot.slane %v3037_v25, 3  ;;  %v3046_v25 = vrot.slane %v6534_v9, 5  ;;  %vm7664_vm5 = vcmask 1042433   ;;  %vm7668_vm3 = vmmov %vm7661_vm1 }
 0x2de   : > { %3410 = vst [vmem:[#allocation1 + $0x6] ss:$9 sm:$0xff] %v6798_v63 }
 0x2df   : > { %3785 = vst [vmem:[%s6884_s16 + $0x20] sm:$0x7f] %v3701_v42  ;;  %v3221_v34 = vperm.slane %v3038_v24, 1  ;;  %v3222_v16 = vperm.slane %v3038_v24, 2  ;;  %v3223_v37 = vperm.slane %v3038_v24, 3 }
 0x2e0   : > { %3786 = vst [vmem:[%s6884_s16 + $0x28] sm:$0x7f] %v3702_v8 }
 0x2e1   : > { %3787 = vst [vmem:[%s6884_s16 + $0x30] sm:$0x7f] %v3703_v35 }
 0x2e2   : > { %3788 = vst [vmem:[%s6884_s16 + $0x38] sm:$0x7f] %v3704_v4  ;;  %v3220_v4 = vperm.slane %v3038_v24, 0 }
 0x2e5   : > { %v3411_v46 = vld [vmem:[#allocation1] sm:$0xff]  ;;  %v3412_v15 = vld [vmem:[#allocation1 + $0x9] sm:$0xff]  ;;  %v3413_v58 = vld [vmem:[#allocation1 + $0x12] sm:$0xff] }
 0x2e6   : > { %v3414_v23 = vld [vmem:[#allocation1 + $0x1b] sm:$0xff]  ;;  %v3705_v22 = vmul.f32 %v3411_v46, %v3216_v33  ;;  %v3706_v19 = vmul.f32 %v3412_v15, %v3217_v10  ;;  %v3707_v57 = vmul.f32 %v3413_v58, %v3218_v12  ;;  %v3040_v15 = vsel %vm7657_vm4, %v6516_v21, %v6518_v31 }
 0x2e7   : > { %3415 = vst [vmem:[#allocation1] ss:$9 sm:$0xff] %v6771_v14  ;;  %v3708_v42 = vmul.f32 %v3414_v23, %v3219_v38  ;;  %v3039_v23 = vsel %vm7658_vm6, %v6501_v0, %v6499_v30  ;;  %vm7669_vm4 = vcmask 1044483   ;;  %vm7670_vm6 = vmmov %vm7662_vm8 }
 0x2e8   : > { %3416 = vst [vmem:[#allocation1 + $0x1] ss:$9 sm:$0xff] %v6776_v39  ;;  %v3041_v33 = vsel %vm7659_vm7, %v3039_v23, %v3040_v15  ;;  %vm7671_vm7 = vcmask 1041408  }
 0x2e9   : > { %3417 = vst [vmem:[#allocation1 + $0x2] ss:$9 sm:$0xff] %v6778_v3  ;;  %v3042_v10 = vrot.slane %v3041_v33, 4 }
 0x2ea   : > { %3418 = vst [vmem:[#allocation1 + $0x3] ss:$9 sm:$0xff] %v6780_v27 }
 0x2eb   : > { %3419 = vst [vmem:[#allocation1 + $0x4] ss:$9 sm:$0xff] %v6788_v40  ;;  %v3224_v21 = vperm.slane %v3042_v10, 0  ;;  %v3225_v30 = vperm.slane %v3042_v10, 1  ;;  %v3226_v0 = vperm.slane %v3042_v10, 2 }
 0x2ec   : > { %3420 = vst [vmem:[#allocation1 + $0x5] ss:$9 sm:$0xff] %v6796_v29 }
 0x2ed   : > { %3421 = vst [vmem:[#allocation1 + $0x6] ss:$9 sm:$0xff] %v6798_v63 }
 0x2ee   : > { %3789 = vst [vmem:[%s6884_s16 + $0x40] sm:$0x7f] %v3705_v22 }
 0x2ef   : > { %3790 = vst [vmem:[%s6884_s16 + $0x48] sm:$0x7f] %v3706_v19 }
 0x2f0   : > { %3791 = vst [vmem:[%s6884_s16 + $0x50] sm:$0x7f] %v3707_v57  ;;  %v3227_v57 = vperm.slane %v3042_v10, 3 }
 0x2f1   : > { %3792 = vst [vmem:[%s6884_s16 + $0x58] sm:$0x7f] %v3708_v42 }
 0x2f4   : > { %v3422_v8 = vld [vmem:[#allocation1] sm:$0xff]  ;;  %v3423_v44 = vld [vmem:[#allocation1 + $0x9] sm:$0xff]  ;;  %v3424_v41 = vld [vmem:[#allocation1 + $0x12] sm:$0xff] }
 0x2f5   : > { %v3425_v35 = vld [vmem:[#allocation1 + $0x1b] sm:$0xff]  ;;  %v3709_v55 = vmul.f32 %v3422_v8, %v3220_v4  ;;  %v3710_v51 = vmul.f32 %v3423_v44, %v3221_v34  ;;  %v3711_v46 = vmul.f32 %v3424_v41, %v3222_v16  ;;  %v3229_v4 = vperm.slane %v3046_v25, 1 }
 0x2f6   : > { %3426 = vst [vmem:[#allocation1] ss:$9 sm:$0xff] %v6771_v14  ;;  %v3712_v58 = vmul.f32 %v3425_v35, %v3223_v37  ;;  %v3228_v35 = vperm.slane %v3046_v25, 0  ;;  %v3230_v34 = vperm.slane %v3046_v25, 2  ;;  %v3231_v16 = vperm.slane %v3046_v25, 3 }
 0x2f7   : > { %3427 = vst [vmem:[#allocation1 + $0x1] ss:$9 sm:$0xff] %v6776_v39 }
 0x2f8   : > { %3428 = vst [vmem:[#allocation1 + $0x2] ss:$9 sm:$0xff] %v6778_v3 }
 0x2f9   : > { %3429 = vst [vmem:[#allocation1 + $0x3] ss:$9 sm:$0xff] %v6780_v27 }
 0x2fa   : > { %3430 = vst [vmem:[#allocation1 + $0x4] ss:$9 sm:$0xff] %v6788_v40 }
 0x2fb   : > { %3431 = vst [vmem:[#allocation1 + $0x5] ss:$9 sm:$0xff] %v6796_v29 }
 0x2fc   : > { %3432 = vst [vmem:[#allocation1 + $0x6] ss:$9 sm:$0xff] %v6798_v63 }
 0x2fd   : > { %3793 = vst [vmem:[%s6884_s16 + $0x60] sm:$0x7f] %v3709_v55 }
 0x2fe   : > { %3794 = vst [vmem:[%s6884_s16 + $0x68] sm:$0x7f] %v3710_v51 }
 0x2ff   : > { %3795 = vst [vmem:[%s6884_s16 + $0x70] sm:$0x7f] %v3711_v46 }
 0x300   : > { %3796 = vst [vmem:[%s6884_s16 + $0x78] sm:$0x7f] %v3712_v58 }
 0x303   : > { %v3433_v12 = vld [vmem:[#allocation1] sm:$0xff]  ;;  %v3434_v22 = vld [vmem:[#allocation1 + $0x9] sm:$0xff]  ;;  %v3435_v38 = vld [vmem:[#allocation1 + $0x12] sm:$0xff] }
 0x304   : > { %v3436_v19 = vld [vmem:[#allocation1 + $0x1b] sm:$0xff]  ;;  %v3713_v31 = vmul.f32 %v3433_v12, %v3224_v21  ;;  %v3714_v56 = vmul.f32 %v3434_v22, %v3225_v30  ;;  %v3715_v42 = vmul.f32 %v3435_v38, %v3226_v0  ;;  %v3166_v12 = vsel %vm7661_vm1, %v6926_v50, %v6928_v62 }
 0x305   : > { %3437 = vst [vmem:[#allocation1] ss:$9 sm:$0xff] %v6771_v14  ;;  %v3716_v60 = vmul.f32 %v3436_v19, %v3227_v57  ;;  %v3170_v38 = vsel %vm7662_vm8, %v6926_v50, %v6928_v62  ;;  %v3165_v19 = vsel %vm7650_vm10, %v6870_v5, %v6864_v59  ;;  %v3159_v21 = vsel %vm7663_vm13, %v6926_v50, %v6928_v62 }
 0x306   : > { %3438 = vst [vmem:[#allocation1 + $0x1] ss:$9 sm:$0xff] %v6776_v39  ;;  %v3174_v0 = vsel %vm7665_vm9, %v6926_v50, %v6928_v62  ;;  %v3167_v57 = vsel %vm7667_vm15, %v3165_v19, %v3166_v12  ;;  %v3243_v12 = vperm.slane %v6610_v26, 3  ;;  %v2720_v19 = vpop.f32.mrf.mxu1 }
 0x307   : > { %3439 = vst [vmem:[#allocation1 + $0x2] ss:$9 sm:$0xff] %v6778_v3 }
 0x308   : > { %3440 = vst [vmem:[#allocation1 + $0x3] ss:$9 sm:$0xff] %v6780_v27 }
 0x309   : > { %3441 = vst [vmem:[#allocation1 + $0x4] ss:$9 sm:$0xff] %v6788_v40 }
 0x30a   : > { %3442 = vst [vmem:[#allocation1 + $0x5] ss:$9 sm:$0xff] %v6796_v29 }
 0x30b   : > { %3443 = vst [vmem:[#allocation1 + $0x6] ss:$9 sm:$0xff] %v6798_v63 }
 0x30c   : > { %3797 = vst [vmem:[%s6884_s16 + $0x80] sm:$0x7f] %v3713_v31  ;;  %v3169_v31 = vsel %vm7666_vm11, %v6870_v5, %v6864_v59 }
 0x30d   : > { %3798 = vst [vmem:[%s6884_s16 + $0x88] sm:$0x7f] %v3714_v56  ;;  %v3178_v56 = vsel %vm646_vm12, %v6928_v62, %v6926_v50  ;;  %v3171_v25 = vsel %vm7669_vm4, %v3169_v31, %v3170_v38  ;;  %vm7672_vm12 = vcmask 1045508  }
 0x30e   : > { %3799 = vst [vmem:[%s6884_s16 + $0x90] sm:$0x7f] %v3715_v42  ;;  %v3158_v42 = vsel %vm614_vm0, %v6870_v5, %v6864_v59 }
 0x30f   : > { %3800 = vst [vmem:[%s6884_s16 + $0x98] sm:$0x7f] %v3716_v60  ;;  %v3173_v60 = vsel %vm7668_vm3, %v6870_v5, %v6864_v59 }
 0x312   : > { %v3444_v24 = vld [vmem:[#allocation1] sm:$0xff]  ;;  %v3445_v8 = vld [vmem:[#allocation1 + $0x9] sm:$0xff]  ;;  %v3446_v44 = vld [vmem:[#allocation1 + $0x12] sm:$0xff] }
 0x313   : > { %v3447_v41 = vld [vmem:[#allocation1 + $0x1b] sm:$0xff]  ;;  %v3717_v9 = vmul.f32 %v3444_v24, %v3228_v35  ;;  %v3718_v55 = vmul.f32 %v3445_v8, %v3229_v4  ;;  %v3177_v24 = vsel %vm7670_vm6, %v6870_v5, %v6864_v59  ;;  %v7060_v8 = vsel %vm7671_vm7, %v3158_v42, %v3159_v21  ;;  %v2772_v42 = vpop.f32.mrf.mxu3 }
 0x314   : > { %3448 = vst [vmem:[#allocation1] ss:$9 sm:$0xff] %v6771_v14  ;;  %v3719_v14 = vmul.f32 %v3446_v44, %v3230_v34  ;;  %v3720_v37 = vmul.f32 %v3447_v41, %v3231_v16  ;;  %v7065_v44 = vrot.slane %v3167_v57, 2  ;;  %v7069_v35 = vrot.slane %v3171_v25, 3 }
 0x315   : > { %3449 = vst [vmem:[#allocation1 + $0x1] ss:$9 sm:$0xff] %v6776_v39  ;;  %v3050_v39 = vrot.slane %v6537_v54, 6  ;;  %v3062_v21 = vrot.slane %v6613_v17, 1  ;;  %v2773_v17 = vadd.f32 %v2772_v42, %v6680_v47 }
 0x316   : > { %3450 = vst [vmem:[#allocation1 + $0x2] ss:$9 sm:$0xff] %v6778_v3 }
 0x317   : > { %3451 = vst [vmem:[#allocation1 + $0x3] ss:$9 sm:$0xff] %v6780_v27  ;;  %v3232_v3 = vperm.slane %v3050_v39, 0  ;;  %v3233_v51 = vperm.slane %v3050_v39, 1  ;;  %v3234_v27 = vperm.slane %v3050_v39, 2  ;;  %v3235_v46 = vperm.slane %v3050_v39, 3 }
 0x318   : > { %3452 = vst [vmem:[#allocation1 + $0x4] ss:$9 sm:$0xff] %v6788_v40  ;;  %v7013_v40 = vrot.slane %v6793_v48, 7  ;;  %v3161_v48 = vsel %vm620_vm2, %v6870_v5, %v6864_v59  ;;  %v3244_v25 = vperm.slane %v3062_v21, 0 }
 0x319   : > { %3453 = vst [vmem:[#allocation1 + $0x5] ss:$9 sm:$0xff] %v6796_v29 }
 0x31a   : > { %3454 = vst [vmem:[#allocation1 + $0x6] ss:$9 sm:$0xff] %v6798_v63  ;;  %v3162_v63 = vsel %vm7660_vm14, %v6926_v50, %v6928_v62  ;;  %v3175_v62 = vsel %vm7672_vm12, %v3173_v60, %v3174_v0  ;;  %vm7673_vm14 = vcmask 1046533  }
 0x31b   : > { %3801 = vst [vmem:[%s6884_s16 + $0xa0] sm:$0x7f] %v3717_v9  ;;  %v3163_v30 = vsel %vm7664_vm5, %v3161_v48, %v3162_v63  ;;  %v3179_v41 = vsel %vm7673_vm14, %v3177_v24, %v3178_v56  ;;  %v7072_v4 = vrot.slane %v3175_v62, 4  ;;  %v3240_v63 = vperm.slane %v6610_v26, 0 }
 0x31c   : > { %3802 = vst [vmem:[%s6884_s16 + $0xa8] sm:$0x7f] %v3718_v55  ;;  %v7062_v50 = vrot.slane %v3163_v30, 1  ;;  %v7075_v59 = vrot.slane %v3179_v41, 5  ;;  %v3055_v55 = vrot.slane %v6540_v53, 7  ;;  %v2746_v30 = vpop.f32.mrf.mxu2  ;;  %v2721_v56 = vadd.f32 %v2720_v19, %v6667_v18 }
 0x31d   : > { %3803 = vst [vmem:[%s6884_s16 + $0xb0] sm:$0x7f] %v3719_v14  ;;  %v2747_v60 = vadd.f32 %v2746_v30, %v6669_v49  ;;  %v3245_v24 = vperm.slane %v3062_v21, 1  ;;  %v3246_v62 = vperm.slane %v3062_v21, 2 }
 0x31e   : > { %3804 = vst [vmem:[%s6884_s16 + $0xb8] sm:$0x7f] %v3720_v37  ;;  %v3236_v14 = vperm.slane %v3055_v55, 0  ;;  %v3237_v37 = vperm.slane %v3055_v55, 1  ;;  %v3238_v39 = vperm.slane %v3055_v55, 2  ;;  %v3239_v53 = vperm.slane %v3055_v55, 3 }
 0x31f   : > { %v4331_v18 = vmul.f32 -1.442695, %v2721_v56  ;;  %v4333_v55 = vmul.f32 -1.442695, %v2773_v17 }
 0x321   : > { %v3455_v15 = vld [vmem:[#allocation1] sm:$0xff]  ;;  %v3456_v29 = vld [vmem:[#allocation1 + $0x9] sm:$0xff]  ;;  %v3457_v58 = vld [vmem:[#allocation1 + $0x12] sm:$0xff]  ;;  %4558 = vpow2.f32 %v4331_v18 }
 0x322   : > { %v3458_v54 = vld [vmem:[#allocation1 + $0x1b] sm:$0xff]  ;;  %v3721_v23 = vmul.f32 %v3455_v15, %v3232_v3  ;;  %v3722_v33 = vmul.f32 %v3456_v29, %v3233_v51  ;;  %v3723_v10 = vmul.f32 %v3457_v58, %v3234_v27 }
 0x323   : > { %v3724_v22 = vmul.f32 %v3458_v54, %v3235_v46  ;;  %3459 = vst [vmem:[#allocation1] ss:$9 sm:$0xff] %v7013_v40  ;;  %v3241_v54 = vperm.slane %v6610_v26, 1 }
 0x324   : > { %3805 = vst [vmem:[%s6884_s16 + $0xc0] sm:$0x7f] %v3721_v23 }
 0x325   : > { %3806 = vst [vmem:[%s6884_s16 + $0xc8] sm:$0x7f] %v3722_v33  ;;  %v3242_v33 = vperm.slane %v6610_v26, 2 }
 0x326   : > { %3807 = vst [vmem:[%s6884_s16 + $0xd0] sm:$0x7f] %v3723_v10 }
 0x327   : > { %3808 = vst [vmem:[%s6884_s16 + $0xd8] sm:$0x7f] %v3724_v22 }
 0x328   : > { %3460 = vst [vmem:[#allocation1 + $0x1] ss:$9 sm:$0xff] %v7060_v8 }
 0x329   : > { %3461 = vst [vmem:[#allocation1 + $0x2] ss:$9 sm:$0xff] %v7062_v50 }
 0x32a   : > { %3462 = vst [vmem:[#allocation1 + $0x3] ss:$9 sm:$0xff] %v7065_v44 }
 0x32b   : > { %3463 = vst [vmem:[#allocation1 + $0x4] ss:$9 sm:$0xff] %v7069_v35 }
 0x32c   : > { %3464 = vst [vmem:[#allocation1 + $0x5] ss:$9 sm:$0xff] %v7072_v4 }
 0x32d   : > { %3465 = vst [vmem:[#allocation1 + $0x6] ss:$9 sm:$0xff] %v7075_v59 }
 0x334   : > { %v3466_v5 = vld [vmem:[#allocation1] sm:$0xff]  ;;  %v3467_v34 = vld [vmem:[#allocation1 + $0x9] sm:$0xff]  ;;  %v3468_v9 = vld [vmem:[#allocation1 + $0x12] sm:$0xff] }
 0x335   : > { %v3469_v16 = vld [vmem:[#allocation1 + $0x1b] sm:$0xff]  ;;  %v3725_v3 = vmul.f32 %v3466_v5, %v3236_v14  ;;  %v3726_v51 = vmul.f32 %v3467_v34, %v3237_v37  ;;  %v3727_v27 = vmul.f32 %v3468_v9, %v3238_v39  ;;  %v3247_v5 = vperm.slane %v3062_v21, 3  ;;  %v2694_v9 = vpop.f32.mrf.mxu0 }
 0x336   : > { %3470 = vst [vmem:[#allocation1] ss:$9 sm:$0xff] %v7013_v40  ;;  %v3728_v23 = vmul.f32 %v3469_v16, %v3239_v53  ;;  %v4332_v34 = vmul.f32 -1.442695, %v2747_v60  ;;  %v2695_v14 = vadd.f32 %v2694_v9, %v6650_v1  ;;  %v3066_v39 = vrot.slane %v6616_v28, 2 }
 0x337   : > { %3471 = vst [vmem:[#allocation1 + $0x1] ss:$9 sm:$0xff] %v7060_v8 }
 0x338   : > { %3472 = vst [vmem:[#allocation1 + $0x2] ss:$9 sm:$0xff] %v7062_v50  ;;  %4560 = vpow2.f32 %v4332_v34  ;;  %v4330_v37 = vmul.f32 -1.442695, %v2695_v14  ;;  %v3248_v53 = vperm.slane %v3066_v39, 0  ;;  %v7170_v14 = vrot.slane %v6625_v11, 4 }
 0x339   : > { %3473 = vst [vmem:[#allocation1 + $0x3] ss:$9 sm:$0xff] %v7065_v44  ;;  %4562 = vpow2.f32 %v4333_v55 }
 0x33a   : > { %3474 = vst [vmem:[#allocation1 + $0x4] ss:$9 sm:$0xff] %v7069_v35  ;;  %4564 = vpow2.f32 %v4330_v37 }
 0x33b   : > { %3475 = vst [vmem:[#allocation1 + $0x5] ss:$9 sm:$0xff] %v7072_v4 }
 0x33c   : > { %3476 = vst [vmem:[#allocation1 + $0x6] ss:$9 sm:$0xff] %v7075_v59 }
 0x33d   : > { %3809 = vst [vmem:[%s6884_s16 + $0xe0] sm:$0x7f] %v3725_v3  ;;  %v4559_v3 = vpop.eup %4558 }
 0x33e   : > { %3810 = vst [vmem:[%s6884_s16 + $0xe8] sm:$0x7f] %v3726_v51  ;;  %v7126_v1 = vadd.f32 1.0, %v4559_v3 }
 0x33f   : > { %3811 = vst [vmem:[%s6884_s16 + $0xf0] sm:$0x7f] %v3727_v27 }
 0x340   : > { %3812 = vst [vmem:[%s6884_s16 + $0xf8] sm:$0x7f] %v3728_v23  ;;  %4566 = vrcp.f32 %v7126_v1  ;;  %vm2963_vm1 = vweird.f32 %v7126_v1 }
 0x343   : > { %v3477_v46 = vld [vmem:[#allocation1] sm:$0xff]  ;;  %v3478_v15 = vld [vmem:[#allocation1 + $0x9] sm:$0xff]  ;;  %v3479_v29 = vld [vmem:[#allocation1 + $0x12] sm:$0xff] }
 0x344   : > { %v3480_v58 = vld [vmem:[#allocation1 + $0x1b] sm:$0xff]  ;;  %v3729_v10 = vmul.f32 %v3477_v46, %v3240_v63  ;;  %v3730_v22 = vmul.f32 %v3478_v15, %v3241_v54  ;;  %v3731_v48 = vmul.f32 %v3479_v29, %v3242_v33  ;;  %v4561_v15 = vpop.eup %4560  ;;  %v3249_v63 = vperm.slane %v3066_v39, 1 }
 0x345   : > { %3481 = vst [vmem:[#allocation1] ss:$9 sm:$0xff] %v7013_v40  ;;  %v3732_v38 = vmul.f32 %v3480_v58, %v3243_v12  ;;  %v4563_v58 = vpop.eup %4562  ;;  %v7129_v28 = vadd.f32 1.0, %v4561_v15  ;;  %v3250_v54 = vperm.slane %v3066_v39, 2  ;;  %v3251_v33 = vperm.slane %v3066_v39, 3 }
 0x346   : > { %3482 = vst [vmem:[#allocation1 + $0x1] ss:$9 sm:$0xff] %v7060_v8  ;;  %v7133_v12 = vadd.f32 1.0, %v4563_v58 }
 0x347   : > { %3483 = vst [vmem:[#allocation1 + $0x2] ss:$9 sm:$0xff] %v7062_v50  ;;  %4568 = vrcp.f32 %v7129_v28  ;;  %vm2978_vm10 = vweird.f32 %v7129_v28  ;;  %v2984_v15 = vand.u32 2147483648, %v7129_v28 }
 0x348   : > { %3484 = vst [vmem:[#allocation1 + $0x3] ss:$9 sm:$0xff] %v7065_v44  ;;  %4570 = vrcp.f32 %v7133_v12  ;;  %vm2993_vm11 = vweird.f32 %v7133_v12 }
 0x349   : > { %3485 = vst [vmem:[#allocation1 + $0x4] ss:$9 sm:$0xff] %v7069_v35 }
 0x34a   : > { %3486 = vst [vmem:[#allocation1 + $0x5] ss:$9 sm:$0xff] %v7072_v4 }
 0x34b   : > { %3487 = vst [vmem:[#allocation1 + $0x6] ss:$9 sm:$0xff] %v7075_v59 }
 0x34c   : > { %3813 = vst [vmem:[%s6884_s16 + $0x100] sm:$0x7f] %v3729_v10 }
 0x34d   : > { %3814 = vst [vmem:[%s6884_s16 + $0x108] sm:$0x7f] %v3730_v22 }
 0x34e   : > { %3815 = vst [vmem:[%s6884_s16 + $0x110] sm:$0x7f] %v3731_v48  ;;  %v4565_v48 = vpop.eup %4564 }
 0x34f   : > { %3816 = vst [vmem:[%s6884_s16 + $0x118] sm:$0x7f] %v3732_v38  ;;  %v7143_v19 = vadd.f32 1.0, %v4565_v48  ;;  %v7146_v21 = vpop.eup %4566  ;;  %v3257_v48 = vperm.slane %v7170_v14, 1 }
 0x350   : > { %v7148_v30 = vpop.eup %4568  ;;  %v2959_v60 = vmul.f32 %v7146_v21, %v7126_v1  ;;  %vm2964_vm8 = vweird.f32 %v7146_v21 }
 0x351   : > { %4572 = vrcp.f32 %v7143_v19  ;;  %v7152_v56 = vpop.eup %4570  ;;  %vm2979_vm13 = vweird.f32 %v7148_v30  ;;  %vm7186_vm5 = vmor %vm2963_vm1, %vm2964_vm8  ;;  %vm2948_vm6 = vweird.f32 %v7143_v19 }
 0x352   : > { %v3488_v0 = vld [vmem:[#allocation1] sm:$0xff]  ;;  %v3489_v31 = vld [vmem:[#allocation1 + $0x9] sm:$0xff]  ;;  %v3490_v57 = vld [vmem:[#allocation1 + $0x12] sm:$0xff]  ;;  %v2989_v17 = vmul.f32 %v7152_v56, %v7133_v12  ;;  %v2960_v34 = vsub.f32 1.0, %v2959_v60  ;;  %vm2994_vm15 = vweird.f32 %v7152_v56 }
 0x353   : > { %v3491_v26 = vld [vmem:[#allocation1 + $0x1b] sm:$0xff]  ;;  %v3733_v41 = vmul.f32 %v3488_v0, %v3244_v25  ;;  %v3734_v49 = vmul.f32 %v3489_v31, %v3245_v24  ;;  %v3735_v16 = vmul.f32 %v3490_v57, %v3246_v62  ;;  %v3070_v0 = vrot.slane %v6619_v2, 3  ;;  %vm7194_vm9 = vmor %vm2978_vm10, %vm2979_vm13 }
 0x354   : > { %3492 = vst [vmem:[#allocation1] ss:$9 sm:$0xff] %v7013_v40  ;;  %v3736_v47 = vmul.f32 %v3491_v26, %v3247_v5  ;;  %v2974_v25 = vmul.f32 %v7148_v30, %v7129_v28  ;;  %v2990_v55 = vsub.f32 1.0, %v2989_v17  ;;  %v2961_v39 = vmul.f32 %v7146_v21, %v2960_v34  ;;  %vm7211_vm3 = vmor %vm2993_vm11, %vm2994_vm15 }
 0x355   : > { %3493 = vst [vmem:[#allocation1 + $0x1] ss:$9 sm:$0xff] %v7060_v8  ;;  %v3252_v24 = vperm.slane %v3070_v0, 0  ;;  %v3253_v2 = vperm.slane %v3070_v0, 1  ;;  %v3254_v62 = vperm.slane %v3070_v0, 2  ;;  %v3255_v5 = vperm.slane %v3070_v0, 3 }
 0x356   : > { %3494 = vst [vmem:[#allocation1 + $0x2] ss:$9 sm:$0xff] %v7062_v50  ;;  %v2975_v9 = vsub.f32 1.0, %v2974_v25  ;;  %v2991_v11 = vmul.f32 %v7152_v56, %v2990_v55  ;;  %v2962_v58 = vadd.f32 %v7146_v21, %v2961_v39  ;;  %vm7684_vm10 = vcmask 1043459  }
 0x357   : > { %3495 = vst [vmem:[#allocation1 + $0x3] ss:$9 sm:$0xff] %v7065_v44  ;;  %v7164_v18 = vpop.eup %4572  ;;  %vm7685_vm13 = vcmask 1042434   ;;  %vm7688_vm11 = vmmov %vm7684_vm10  ;;  %vm7689_vm15 = vcmask 1045509  }
 0x358   : > { %3496 = vst [vmem:[#allocation1 + $0x4] ss:$9 sm:$0xff] %v7069_v35  ;;  %v2944_v37 = vmul.f32 %v7164_v18, %v7143_v19  ;;  %v2976_v3 = vmul.f32 %v7148_v30, %v2975_v9  ;;  %v2966_v25 = vsel %vm7186_vm5, %v7146_v21, %v2962_v58  ;;  %vm2949_vm7 = vweird.f32 %v7164_v18 }
 0x359   : > { %3497 = vst [vmem:[#allocation1 + $0x5] ss:$9 sm:$0xff] %v7072_v4  ;;  %vm7239_vm1 = vmor %vm2948_vm6, %vm2949_vm7  ;;  %vm7686_vm5 = vcmask 1044484   ;;  %vm7693_vm6 = vcmask 1043458   ;;  %vm7694_vm7 = vcmask 1044483  }
 0x35a   : > { %3498 = vst [vmem:[#allocation1 + $0x6] ss:$9 sm:$0xff] %v7075_v59 }
 0x35b   : > { %3817 = vst [vmem:[%s6884_s16 + $0x120] sm:$0x7f] %v3733_v41 }
 0x35c   : > { %3818 = vst [vmem:[%s6884_s16 + $0x128] sm:$0x7f] %v3734_v49 }
 0x35d   : > { %3819 = vst [vmem:[%s6884_s16 + $0x130] sm:$0x7f] %v3735_v16 }
 0x35e   : > { %3820 = vst [vmem:[%s6884_s16 + $0x138] sm:$0x7f] %v3736_v47 }
 0x361   : > { %v3499_v51 = vld [vmem:[#allocation1] sm:$0xff]  ;;  %v3500_v27 = vld [vmem:[#allocation1 + $0x9] sm:$0xff]  ;;  %v3501_v46 = vld [vmem:[#allocation1 + $0x12] sm:$0xff] }
 0x362   : > { %v3502_v29 = vld [vmem:[#allocation1 + $0x1b] sm:$0xff]  ;;  %v3737_v23 = vmul.f32 %v3499_v51, %v3248_v53  ;;  %v3738_v10 = vmul.f32 %v3500_v27, %v3249_v63  ;;  %v3739_v22 = vmul.f32 %v3501_v46, %v3250_v54  ;;  %v3256_v51 = vperm.slane %v7170_v14, 0 }
 0x363   : > { %3503 = vst [vmem:[#allocation1] ss:$9 sm:$0xff] %v7013_v40  ;;  %v3740_v38 = vmul.f32 %v3502_v29, %v3251_v33  ;;  %v2969_v46 = vand.u32 2147483648, %v7126_v1  ;;  %v2945_v29 = vsub.f32 1.0, %v2944_v37  ;;  %v2977_v53 = vadd.f32 %v7148_v30, %v2976_v3 }
 0x364   : > { %3504 = vst [vmem:[#allocation1 + $0x1] ss:$9 sm:$0xff] %v7060_v8  ;;  %v7255_v3 = vrot.slane %v6946_v36, 6 }
 0x365   : > { %3505 = vst [vmem:[#allocation1 + $0x2] ss:$9 sm:$0xff] %v7062_v50  ;;  %v2946_v60 = vmul.f32 %v7164_v18, %v2945_v29 }
 0x366   : > { %3506 = vst [vmem:[#allocation1 + $0x3] ss:$9 sm:$0xff] %v7065_v44 }
 0x367   : > { %3507 = vst [vmem:[#allocation1 + $0x4] ss:$9 sm:$0xff] %v7069_v35  ;;  %v2947_v17 = vadd.f32 %v7164_v18, %v2946_v60 }
 0x368   : > { %3508 = vst [vmem:[#allocation1 + $0x5] ss:$9 sm:$0xff] %v7072_v4 }
 0x369   : > { %3509 = vst [vmem:[#allocation1 + $0x6] ss:$9 sm:$0xff] %v7075_v59 }
 0x36a   : > { %3821 = vst [vmem:[%s6884_s16 + $0x140] sm:$0x7f] %v3737_v23 }
 0x36b   : > { %3822 = vst [vmem:[%s6884_s16 + $0x148] sm:$0x7f] %v3738_v10  ;;  %v2982_v10 = vand.u32 2147483647, %v7129_v28 }
 0x36c   : > { %3823 = vst [vmem:[%s6884_s16 + $0x150] sm:$0x7f] %v3739_v22  ;;  %v2999_v22 = vand.u32 2147483648, %v7133_v12 }
 0x36d   : > { %3824 = vst [vmem:[%s6884_s16 + $0x158] sm:$0x7f] %v3740_v38  ;;  %v3258_v38 = vperm.slane %v7170_v14, 2  ;;  %vm7224_vm4 = vcmp.eq.f32.partialorder %v2982_v10, 8.507059e+37 }
 0x370   : > { %v3510_v31 = vld [vmem:[#allocation1] sm:$0xff]  ;;  %v3511_v57 = vld [vmem:[#allocation1 + $0x9] sm:$0xff]  ;;  %v3512_v26 = vld [vmem:[#allocation1 + $0x12] sm:$0xff] }
 0x371   : > { %v3513_v42 = vld [vmem:[#allocation1 + $0x1b] sm:$0xff]  ;;  %v3741_v41 = vmul.f32 %v3510_v31, %v3252_v24  ;;  %v3742_v49 = vmul.f32 %v3511_v57, %v3253_v2  ;;  %v3743_v16 = vmul.f32 %v3512_v26, %v3254_v62  ;;  %v2992_v31 = vadd.f32 %v7152_v56, %v2991_v11 }
 0x372   : > { %3514 = vst [vmem:[#allocation1] ss:$9 sm:$0xff] %v7013_v40  ;;  %v3744_v47 = vmul.f32 %v3513_v42, %v3255_v5  ;;  %v2997_v57 = vand.u32 2147483647, %v7133_v12  ;;  %v3259_v26 = vperm.slane %v7170_v14, 3  ;;  %v2970_v24 = vor.u32 1.1754944e-38, %v2969_v46 }
 0x373   : > { %3515 = vst [vmem:[#allocation1 + $0x1] ss:$9 sm:$0xff] %v7060_v8  ;;  %v2967_v42 = vand.u32 2147483647, %v7126_v1  ;;  %v2985_v1 = vor.u32 1.1754944e-38, %v2984_v15  ;;  %v3000_v2 = vor.u32 1.1754944e-38, %v2999_v22  ;;  %v2996_v21 = vsel %vm7211_vm3, %v7152_v56, %v2992_v31 }
 0x374   : > { %3516 = vst [vmem:[#allocation1 + $0x2] ss:$9 sm:$0xff] %v7062_v50  ;;  %vm2998_vm12 = vcmp.eq.f32.partialorder %v2997_v57, 8.507059e+37  ;;  %v2952_v62 = vand.u32 2147483647, %v7143_v19  ;;  %vm7690_vm3 = vcmask 1042433  }
 0x375   : > { %3517 = vst [vmem:[#allocation1 + $0x3] ss:$9 sm:$0xff] %v7065_v44  ;;  %vm2968_vm14 = vcmp.eq.f32.partialorder %v2967_v42, 8.507059e+37  ;;  %v3001_v5 = vsel %vm2998_vm12, %v3000_v2, %v2996_v21  ;;  %vm7695_vm12 = vcmask 1041408   ;;  %v3082_v2 = vrot.slane %v6634_v13, 6 }
 0x376   : > { %3518 = vst [vmem:[#allocation1 + $0x4] ss:$9 sm:$0xff] %v7069_v35  ;;  %vm2953_vm8 = vcmp.eq.f32.partialorder %v2952_v62, 8.507059e+37 }
 0x377   : > { %3519 = vst [vmem:[#allocation1 + $0x5] ss:$9 sm:$0xff] %v7072_v4  ;;  %v3265_v21 = vperm.slane %v3082_v2, 1 }
 0x378   : > { %3520 = vst [vmem:[#allocation1 + $0x6] ss:$9 sm:$0xff] %v7075_v59 }
 0x379   : > { %3825 = vst [vmem:[%s6884_s16 + $0x160] sm:$0x7f] %v3741_v41 }
 0x37a   : > { %3826 = vst [vmem:[%s6884_s16 + $0x168] sm:$0x7f] %v3742_v49  ;;  %v2971_v49 = vsel %vm2968_vm14, %v2970_v24, %v2966_v25 }
 0x37b   : > { %3827 = vst [vmem:[%s6884_s16 + $0x170] sm:$0x7f] %v3743_v16  ;;  %v3126_v16 = vrot.slane %v3001_v5, 5  ;;  %v3267_v5 = vperm.slane %v3082_v2, 3 }
 0x37c   : > { %3828 = vst [vmem:[%s6884_s16 + $0x178] sm:$0x7f] %v3744_v47 }
 0x37f   : > { %v3521_v54 = vld [vmem:[#allocation1] sm:$0xff]  ;;  %v3522_v23 = vld [vmem:[#allocation1 + $0x9] sm:$0xff]  ;;  %v3523_v33 = vld [vmem:[#allocation1 + $0x12] sm:$0xff] }
 0x380   : > { %v3524_v0 = vld [vmem:[#allocation1 + $0x1b] sm:$0xff] }
 0x381   : > { %3525 = vst [vmem:[#allocation1] ss:$9 sm:$0xff] %v7013_v40  ;;  %v2981_v40 = vsel %vm7194_vm9, %v7148_v30, %v2977_v53  ;;  %v3746_v30 = vmul.f32 %v3522_v23, %v3257_v48  ;;  %v3748_v56 = vmul.f32 %v3524_v0, %v3259_v26  ;;  %vm7687_vm9 = vmmov %vm7685_vm13  ;;  %v7272_v0 = vrot.slane %v6950_v32, 7 }
 0x382   : > { %3526 = vst [vmem:[#allocation1 + $0x1] ss:$9 sm:$0xff] %v7060_v8  ;;  %v3745_v8 = vmul.f32 %v3521_v54, %v3256_v51 }
 0x383   : > { %3527 = vst [vmem:[#allocation1 + $0x2] ss:$9 sm:$0xff] %v7062_v50  ;;  %v2954_v50 = vand.u32 2147483648, %v7143_v19  ;;  %v3078_v19 = vrot.slane %v6631_v52, 5 }
 0x384   : > { %3528 = vst [vmem:[#allocation1 + $0x3] ss:$9 sm:$0xff] %v7065_v44  ;;  %v3747_v44 = vmul.f32 %v3523_v33, %v3258_v38 }
 0x385   : > { %3529 = vst [vmem:[#allocation1 + $0x4] ss:$9 sm:$0xff] %v7069_v35  ;;  %v2986_v35 = vsel %vm7224_vm4, %v2985_v1, %v2981_v40  ;;  %v2955_v34 = vor.u32 1.1754944e-38, %v2954_v50  ;;  %v3260_v55 = vperm.slane %v3078_v19, 0  ;;  %v3261_v14 = vperm.slane %v3078_v19, 1 }
 0x386   : > { %3530 = vst [vmem:[#allocation1 + $0x5] ss:$9 sm:$0xff] %v7072_v4  ;;  %v2951_v4 = vsel %vm7239_vm1, %v7164_v18, %v2947_v17  ;;  %v3125_v9 = vrot.slane %v2986_v35, 6  ;;  %v3262_v37 = vperm.slane %v3078_v19, 2  ;;  %v3263_v39 = vperm.slane %v3078_v19, 3 }
 0x387   : > { %3531 = vst [vmem:[#allocation1 + $0x6] ss:$9 sm:$0xff] %v7075_v59  ;;  %v3124_v59 = vrot.slane %v2971_v49, 7  ;;  %v2956_v47 = vsel %vm2953_vm8, %v2955_v34, %v2951_v4  ;;  %vm7692_vm4 = vcmask 1046534   ;;  %v3266_v50 = vperm.slane %v3082_v2, 2 }
 0x388   : > { %3829 = vst [vmem:[%s6884_s16 + $0x180] sm:$0x7f] %v3745_v8  ;;  %v3193_v18 = vsel %vm7684_vm10, %v3125_v9, %v3126_v16  ;;  %v3197_v63 = vsel %vm7686_vm5, %v3125_v9, %v3126_v16  ;;  %v3190_v54 = vsel %vm7687_vm9, %v3125_v9, %v3126_v16  ;;  %v3201_v33 = vsel %vm7689_vm15, %v3125_v9, %v3126_v16 }
 0x389   : > { %3830 = vst [vmem:[%s6884_s16 + $0x188] sm:$0x7f] %v3746_v30  ;;  %v3192_v58 = vsel %vm620_vm2, %v2956_v47, %v3124_v59  ;;  %v3196_v36 = vsel %vm7685_vm13, %v2956_v47, %v3124_v59  ;;  %v3200_v23 = vsel %vm7688_vm11, %v2956_v47, %v3124_v59  ;;  %v3189_v10 = vsel %vm614_vm0, %v2956_v47, %v3124_v59  ;;  %vm7691_vm2 = vmmov %vm7686_vm5 }
 0x38a   : > { %3831 = vst [vmem:[%s6884_s16 + $0x190] sm:$0x7f] %v3747_v44  ;;  %v3194_v22 = vsel %vm7690_vm3, %v3192_v58, %v3193_v18  ;;  %v3204_v48 = vsel %vm7691_vm2, %v2956_v47, %v3124_v59  ;;  %v3205_v38 = vsel %vm7692_vm4, %v3125_v9, %v3126_v16  ;;  %v3198_v31 = vsel %vm7693_vm6, %v3196_v36, %v3197_v63 }
 0x38b   : > { %3832 = vst [vmem:[%s6884_s16 + $0x198] sm:$0x7f] %v3748_v56  ;;  %v3202_v57 = vsel %vm7694_vm7, %v3200_v23, %v3201_v33  ;;  %v7280_v26 = vsel %vm7695_vm12, %v3189_v10, %v3190_v54  ;;  %v7282_v42 = vrot.slane %v3194_v22, 1  ;;  %vm7696_vm0 = vcmask 1045508  }
 0x38c   : > { %v3206_v28 = vsel %vm7696_vm0, %v3204_v48, %v3205_v38  ;;  %v7285_v60 = vrot.slane %v3198_v31, 2  ;;  %v7288_v32 = vrot.slane %v3202_v57, 3  ;;  %v3264_v8 = vperm.slane %v3082_v2, 0 }
 0x38d   : > { %v7291_v25 = vrot.slane %v3206_v28, 4  ;;  %v3086_v44 = vrot.slane %v6637_v43, 7  ;;  %v3093_v58 = vrot.slane %v6702_v45, 1  ;;  %v3097_v31 = vrot.slane %v6705_v20, 2 }
 0x38e   : > { %v3532_v52 = vld [vmem:[#allocation1] sm:$0xff]  ;;  %v3533_v11 = vld [vmem:[#allocation1 + $0x9] sm:$0xff]  ;;  %v3534_v51 = vld [vmem:[#allocation1 + $0x12] sm:$0xff] }
 0x38f   : > { %v3535_v27 = vld [vmem:[#allocation1 + $0x1b] sm:$0xff]  ;;  %v3749_v46 = vmul.f32 %v3532_v52, %v3260_v55  ;;  %v3750_v15 = vmul.f32 %v3533_v11, %v3261_v14  ;;  %v3751_v29 = vmul.f32 %v3534_v51, %v3262_v37  ;;  %v3268_v49 = vperm.slane %v3086_v44, 0 }
 0x390   : > { %v3752_v53 = vmul.f32 %v3535_v27, %v3263_v39  ;;  %3536 = vst [vmem:[#allocation1] ss:$9 sm:$0xff] %v7255_v3  ;;  %v3269_v34 = vperm.slane %v3086_v44, 1  ;;  %v3270_v19 = vperm.slane %v3086_v44, 2  ;;  %v3271_v9 = vperm.slane %v3086_v44, 3 }
 0x391   : > { %3833 = vst [vmem:[%s6884_s16 + $0x1a0] sm:$0x7f] %v3749_v46  ;;  %v3272_v52 = vperm.slane %v6699_v7, 0  ;;  %v3273_v11 = vperm.slane %v6699_v7, 1  ;;  %v3274_v51 = vperm.slane %v6699_v7, 2  ;;  %v3275_v27 = vperm.slane %v6699_v7, 3 }
 0x392   : > { %3834 = vst [vmem:[%s6884_s16 + $0x1a8] sm:$0x7f] %v3750_v15  ;;  %v3276_v7 = vperm.slane %v3093_v58, 0  ;;  %v3277_v23 = vperm.slane %v3093_v58, 1  ;;  %v3278_v33 = vperm.slane %v3093_v58, 2  ;;  %v3279_v10 = vperm.slane %v3093_v58, 3 }
 0x393   : > { %3835 = vst [vmem:[%s6884_s16 + $0x1b0] sm:$0x7f] %v3751_v29  ;;  %v3282_v2 = vperm.slane %v3097_v31, 2 }
 0x394   : > { %3836 = vst [vmem:[%s6884_s16 + $0x1b8] sm:$0x7f] %v3752_v53 }
 0x395   : > { %3537 = vst [vmem:[#allocation1 + $0x1] ss:$9 sm:$0xff] %v7272_v0 }
 0x396   : > { %3538 = vst [vmem:[#allocation1 + $0x2] ss:$9 sm:$0xff] %v7280_v26 }
 0x397   : > { %3539 = vst [vmem:[#allocation1 + $0x3] ss:$9 sm:$0xff] %v7282_v42 }
 0x398   : > { %3540 = vst [vmem:[#allocation1 + $0x4] ss:$9 sm:$0xff] %v7285_v60 }
 0x399   : > { %3541 = vst [vmem:[#allocation1 + $0x5] ss:$9 sm:$0xff] %v7288_v32 }
 0x39a   : > { %3542 = vst [vmem:[#allocation1 + $0x6] ss:$9 sm:$0xff] %v7291_v25 }
 0x3a1   : > { %v3543_v24 = vld [vmem:[#allocation1] sm:$0xff]  ;;  %v3544_v40 = vld [vmem:[#allocation1 + $0x9] sm:$0xff]  ;;  %v3545_v1 = vld [vmem:[#allocation1 + $0x12] sm:$0xff] }
 0x3a2   : > { %v3546_v12 = vld [vmem:[#allocation1 + $0x1b] sm:$0xff]  ;;  %v3753_v30 = vmul.f32 %v3543_v24, %v3264_v8  ;;  %v3754_v17 = vmul.f32 %v3544_v40, %v3265_v21  ;;  %v3755_v62 = vmul.f32 %v3545_v1, %v3266_v50  ;;  %v3280_v1 = vperm.slane %v3097_v31, 0 }
 0x3a3   : > { %3547 = vst [vmem:[#allocation1] ss:$9 sm:$0xff] %v7255_v3  ;;  %v3756_v43 = vmul.f32 %v3546_v12, %v3267_v5  ;;  %v3281_v12 = vperm.slane %v3097_v31, 1  ;;  %v3283_v8 = vperm.slane %v3097_v31, 3 }
 0x3a4   : > { %3548 = vst [vmem:[#allocation1 + $0x1] ss:$9 sm:$0xff] %v7272_v0 }
 0x3a5   : > { %3549 = vst [vmem:[#allocation1 + $0x2] ss:$9 sm:$0xff] %v7280_v26 }
 0x3a6   : > { %3550 = vst [vmem:[#allocation1 + $0x3] ss:$9 sm:$0xff] %v7282_v42 }
 0x3a7   : > { %3551 = vst [vmem:[#allocation1 + $0x4] ss:$9 sm:$0xff] %v7285_v60 }
 0x3a8   : > { %3552 = vst [vmem:[#allocation1 + $0x5] ss:$9 sm:$0xff] %v7288_v32 }
 0x3a9   : > { %3553 = vst [vmem:[#allocation1 + $0x6] ss:$9 sm:$0xff] %v7291_v25 }
 0x3aa   : > { %3837 = vst [vmem:[%s6884_s16 + $0x1c0] sm:$0x7f] %v3753_v30 }
 0x3ab   : > { %3838 = vst [vmem:[%s6884_s16 + $0x1c8] sm:$0x7f] %v3754_v17  ;;  %v3101_v17 = vrot.slane %v6708_v6, 3 }
 0x3ac   : > { %3839 = vst [vmem:[%s6884_s16 + $0x1d0] sm:$0x7f] %v3755_v62 }
 0x3ad   : > { %3840 = vst [vmem:[%s6884_s16 + $0x1d8] sm:$0x7f] %v3756_v43  ;;  %v3286_v5 = vperm.slane %v3101_v17, 2 }
 0x3b0   : > { %v3554_v41 = vld [vmem:[#allocation1] sm:$0xff]  ;;  %v3555_v56 = vld [vmem:[#allocation1 + $0x9] sm:$0xff]  ;;  %v3556_v35 = vld [vmem:[#allocation1 + $0x12] sm:$0xff] }
 0x3b1   : > { %v3557_v13 = vld [vmem:[#allocation1 + $0x1b] sm:$0xff]  ;;  %v3757_v4 = vmul.f32 %v3554_v41, %v3268_v49  ;;  %v3758_v16 = vmul.f32 %v3555_v56, %v3269_v34  ;;  %v3759_v59 = vmul.f32 %v3556_v35, %v3270_v19  ;;  %v3284_v35 = vperm.slane %v3101_v17, 0 }
 0x3b2   : > { %3558 = vst [vmem:[#allocation1] ss:$9 sm:$0xff] %v7255_v3  ;;  %v3760_v47 = vmul.f32 %v3557_v13, %v3271_v9  ;;  %v3285_v13 = vperm.slane %v3101_v17, 1  ;;  %v3287_v49 = vperm.slane %v3101_v17, 3 }
 0x3b3   : > { %3559 = vst [vmem:[#allocation1 + $0x1] ss:$9 sm:$0xff] %v7272_v0 }
 0x3b4   : > { %3560 = vst [vmem:[#allocation1 + $0x2] ss:$9 sm:$0xff] %v7280_v26 }
 0x3b5   : > { %3561 = vst [vmem:[#allocation1 + $0x3] ss:$9 sm:$0xff] %v7282_v42 }
 0x3b6   : > { %3562 = vst [vmem:[#allocation1 + $0x4] ss:$9 sm:$0xff] %v7285_v60 }
 0x3b7   : > { %3563 = vst [vmem:[#allocation1 + $0x5] ss:$9 sm:$0xff] %v7288_v32 }
 0x3b8   : > { %3564 = vst [vmem:[#allocation1 + $0x6] ss:$9 sm:$0xff] %v7291_v25 }
 0x3b9   : > { %3841 = vst [vmem:[%s6884_s16 + $0x1e0] sm:$0x7f] %v3757_v4 }
 0x3ba   : > { %3842 = vst [vmem:[%s6884_s16 + $0x1e8] sm:$0x7f] %v3758_v16 }
 0x3bb   : > { %3843 = vst [vmem:[%s6884_s16 + $0x1f0] sm:$0x7f] %v3759_v59 }
 0x3bc   : > { %3844 = vst [vmem:[%s6884_s16 + $0x1f8] sm:$0x7f] %v3760_v47 }
 0x3bf   : > { %v3565_v55 = vld [vmem:[#allocation1] sm:$0xff]  ;;  %v3566_v14 = vld [vmem:[#allocation1 + $0x9] sm:$0xff]  ;;  %v3567_v37 = vld [vmem:[#allocation1 + $0x12] sm:$0xff] }
 0x3c0   : > { %v3568_v39 = vld [vmem:[#allocation1 + $0x1b] sm:$0xff]  ;;  %v3761_v18 = vmul.f32 %v3565_v55, %v3272_v52  ;;  %v3762_v46 = vmul.f32 %v3566_v14, %v3273_v11  ;;  %v3763_v15 = vmul.f32 %v3567_v37, %v3274_v51 }
 0x3c1   : > { %3569 = vst [vmem:[#allocation1] ss:$9 sm:$0xff] %v7255_v3  ;;  %v3764_v29 = vmul.f32 %v3568_v39, %v3275_v27 }
 0x3c2   : > { %3570 = vst [vmem:[#allocation1 + $0x1] ss:$9 sm:$0xff] %v7272_v0 }
 0x3c3   : > { %3571 = vst [vmem:[#allocation1 + $0x2] ss:$9 sm:$0xff] %v7280_v26 }
 0x3c4   : > { %3572 = vst [vmem:[#allocation1 + $0x3] ss:$9 sm:$0xff] %v7282_v42 }
 0x3c5   : > { %3573 = vst [vmem:[#allocation1 + $0x4] ss:$9 sm:$0xff] %v7285_v60 }
 0x3c6   : > { %3574 = vst [vmem:[#allocation1 + $0x5] ss:$9 sm:$0xff] %v7288_v32 }
 0x3c7   : > { %3575 = vst [vmem:[#allocation1 + $0x6] ss:$9 sm:$0xff] %v7291_v25 }
 0x3c8   : > { %3845 = vst [vmem:[%s6884_s16 + $0x200] sm:$0x7f] %v3761_v18 }
 0x3c9   : > { %3846 = vst [vmem:[%s6884_s16 + $0x208] sm:$0x7f] %v3762_v46 }
 0x3ca   : > { %3847 = vst [vmem:[%s6884_s16 + $0x210] sm:$0x7f] %v3763_v15 }
 0x3cb   : > { %3848 = vst [vmem:[%s6884_s16 + $0x218] sm:$0x7f] %v3764_v29 }
 0x3ce   : > { %v3576_v53 = vld [vmem:[#allocation1] sm:$0xff]  ;;  %v3577_v36 = vld [vmem:[#allocation1 + $0x9] sm:$0xff]  ;;  %v3578_v63 = vld [vmem:[#allocation1 + $0x12] sm:$0xff] }
 0x3cf   : > { %v3579_v54 = vld [vmem:[#allocation1 + $0x1b] sm:$0xff]  ;;  %v3765_v45 = vmul.f32 %v3576_v53, %v3276_v7  ;;  %v3766_v22 = vmul.f32 %v3577_v36, %v3277_v23  ;;  %v3767_v48 = vmul.f32 %v3578_v63, %v3278_v33 }
 0x3d0   : > { %3580 = vst [vmem:[#allocation1] ss:$9 sm:$0xff] %v7255_v3  ;;  %v3768_v38 = vmul.f32 %v3579_v54, %v3279_v10 }
 0x3d1   : > { %3581 = vst [vmem:[#allocation1 + $0x1] ss:$9 sm:$0xff] %v7272_v0 }
 0x3d2   : > { %3582 = vst [vmem:[#allocation1 + $0x2] ss:$9 sm:$0xff] %v7280_v26 }
 0x3d3   : > { %3583 = vst [vmem:[#allocation1 + $0x3] ss:$9 sm:$0xff] %v7282_v42 }
 0x3d4   : > { %3584 = vst [vmem:[#allocation1 + $0x4] ss:$9 sm:$0xff] %v7285_v60 }
 0x3d5   : > { %3585 = vst [vmem:[#allocation1 + $0x5] ss:$9 sm:$0xff] %v7288_v32 }
 0x3d6   : > { %3586 = vst [vmem:[#allocation1 + $0x6] ss:$9 sm:$0xff] %v7291_v25 }
 0x3d7   : > { %3849 = vst [vmem:[%s6884_s16 + $0x220] sm:$0x7f] %v3765_v45 }
 0x3d8   : > { %3850 = vst [vmem:[%s6884_s16 + $0x228] sm:$0x7f] %v3766_v22 }
 0x3d9   : > { %3851 = vst [vmem:[%s6884_s16 + $0x230] sm:$0x7f] %v3767_v48 }
 0x3da   : > { %3852 = vst [vmem:[%s6884_s16 + $0x238] sm:$0x7f] %v3768_v38 }
 0x3dd   : > { %v3587_v57 = vld [vmem:[#allocation1] sm:$0xff]  ;;  %v3588_v28 = vld [vmem:[#allocation1 + $0x9] sm:$0xff]  ;;  %v3589_v24 = vld [vmem:[#allocation1 + $0x12] sm:$0xff] }
 0x3de   : > { %v3590_v40 = vld [vmem:[#allocation1 + $0x1b] sm:$0xff]  ;;  %v3769_v20 = vmul.f32 %v3587_v57, %v3280_v1  ;;  %v3770_v21 = vmul.f32 %v3588_v28, %v3281_v12  ;;  %v3771_v50 = vmul.f32 %v3589_v24, %v3282_v2 }
 0x3df   : > { %3591 = vst [vmem:[#allocation1] ss:$9 sm:$0xff] %v7255_v3  ;;  %v3772_v30 = vmul.f32 %v3590_v40, %v3283_v8 }
 0x3e0   : > { %3592 = vst [vmem:[#allocation1 + $0x1] ss:$9 sm:$0xff] %v7272_v0 }
 0x3e1   : > { %3593 = vst [vmem:[#allocation1 + $0x2] ss:$9 sm:$0xff] %v7280_v26 }
 0x3e2   : > { %3594 = vst [vmem:[#allocation1 + $0x3] ss:$9 sm:$0xff] %v7282_v42 }
 0x3e3   : > { %3595 = vst [vmem:[#allocation1 + $0x4] ss:$9 sm:$0xff] %v7285_v60 }
 0x3e4   : > { %3596 = vst [vmem:[#allocation1 + $0x5] ss:$9 sm:$0xff] %v7288_v32 }
 0x3e5   : > { %3597 = vst [vmem:[#allocation1 + $0x6] ss:$9 sm:$0xff] %v7291_v25 }
 0x3e6   : > { %3853 = vst [vmem:[%s6884_s16 + $0x240] sm:$0x7f] %v3769_v20 }
 0x3e7   : > { %3854 = vst [vmem:[%s6884_s16 + $0x248] sm:$0x7f] %v3770_v21 }
 0x3e8   : > { %3855 = vst [vmem:[%s6884_s16 + $0x250] sm:$0x7f] %v3771_v50 }
 0x3e9   : > { %3856 = vst [vmem:[%s6884_s16 + $0x258] sm:$0x7f] %v3772_v30 }
 0x3ec   : > { %v3598_v62 = vld [vmem:[#allocation1] sm:$0xff]  ;;  %v3599_v44 = vld [vmem:[#allocation1 + $0x9] sm:$0xff]  ;;  %v3600_v41 = vld [vmem:[#allocation1 + $0x12] sm:$0xff] }
 0x3ed   : > { %v3601_v56 = vld [vmem:[#allocation1 + $0x1b] sm:$0xff]  ;;  %v3773_v6 = vmul.f32 %v3598_v62, %v3284_v35  ;;  %v3774_v34 = vmul.f32 %v3599_v44, %v3285_v13 }
 0x3ee   : > { %3602 = vst [vmem:[#allocation1] ss:$9 sm:$0xff] %v7255_v3  ;;  %v3775_v3 = vmul.f32 %v3600_v41, %v3286_v5  ;;  %v3776_v43 = vmul.f32 %v3601_v56, %v3287_v49 }
 0x3ef   : > { %3603 = vst [vmem:[#allocation1 + $0x1] ss:$9 sm:$0xff] %v7272_v0  ;;  %v3105_v0 = vrot.slane %v6712_v61, 4 }
 0x3f0   : > { %3604 = vst [vmem:[#allocation1 + $0x2] ss:$9 sm:$0xff] %v7280_v26 }
 0x3f1   : > { %3605 = vst [vmem:[#allocation1 + $0x3] ss:$9 sm:$0xff] %v7282_v42  ;;  %v3288_v26 = vperm.slane %v3105_v0, 0  ;;  %v3289_v42 = vperm.slane %v3105_v0, 1  ;;  %v3291_v19 = vperm.slane %v3105_v0, 3 }
 0x3f2   : > { %3606 = vst [vmem:[#allocation1 + $0x4] ss:$9 sm:$0xff] %v7285_v60  ;;  %v3290_v60 = vperm.slane %v3105_v0, 2 }
 0x3f3   : > { %3607 = vst [vmem:[#allocation1 + $0x5] ss:$9 sm:$0xff] %v7288_v32 }
 0x3f4   : > { %3608 = vst [vmem:[#allocation1 + $0x6] ss:$9 sm:$0xff] %v7291_v25 }
 0x3f5   : > { %3857 = vst [vmem:[%s6884_s16 + $0x260] sm:$0x7f] %v3773_v6 }
 0x3f6   : > { %3858 = vst [vmem:[%s6884_s16 + $0x268] sm:$0x7f] %v3774_v34 }
 0x3f7   : > { %3859 = vst [vmem:[%s6884_s16 + $0x270] sm:$0x7f] %v3775_v3 }
 0x3f8   : > { %3860 = vst [vmem:[%s6884_s16 + $0x278] sm:$0x7f] %v3776_v43 }
 0x3fb   : > { %v3609_v32 = vld [vmem:[#allocation1] sm:$0xff]  ;;  %v3610_v4 = vld [vmem:[#allocation1 + $0x9] sm:$0xff]  ;;  %v3611_v9 = vld [vmem:[#allocation1 + $0x12] sm:$0xff] }
 0x3fc   : > { %v3612_v25 = vld [vmem:[#allocation1 + $0x1b] sm:$0xff]  ;;  %v3777_v16 = vmul.f32 %v3609_v32, %v3288_v26  ;;  %v3778_v59 = vmul.f32 %v3610_v4, %v3289_v42  ;;  %v3779_v47 = vmul.f32 %v3611_v9, %v3290_v60 }
 0x3fd   : > { %v3780_v61 = vmul.f32 %v3612_v25, %v3291_v19  ;;  %3872 = sbr.rel (!%p5078_p11) target bundleno = 1062 (0x426), region = 104 }
 0x3fe   : > { %3861 = vst [vmem:[%s6884_s16 + $0x280] sm:$0x7f] %v3777_v16 }
 0x3ff   : > { %3862 = vst [vmem:[%s6884_s16 + $0x288] sm:$0x7f] %v3778_v59 }
 0x400   : > { %3863 = vst [vmem:[%s6884_s16 + $0x290] sm:$0x7f] %v3779_v47 }
 0x401   : > { %3864 = vst [vmem:[%s6884_s16 + $0x298] sm:$0x7f] %v3780_v61 }
 0x402   : > { %s7714_s5 = smov (!%p3875_p0, %s3874_s5), 3 }
 0x403   : > { %s4336_s14 = smul.u32 224, %s7714_s5 }
 0x405   : > { %s3880_s25 = ssub.s32 672, %s4336_s14 }
 0x406   : > { %s3881_s17 = sshll.u32 %s3880_s25, 4 }
 0x407   : > { %3882 = vsyncadd %s3866_s26, %s3881_s17  ;;  %p7382_p3 = scmp.ne.s32.totalorder %s4336_s14, 0  ;;  %s4427_s11 = smul.u32 672, %s5047_s21 }
 0x408   : > { %s3889_s24 = sshll.u32 %s6884_s16, 4  ;;  %s7388_s22 = smul.u32 3584, %s7714_s5  ;;  %s7393_s24 = int_to_ptr.vmem [resolvable:$true] %s3889_s24 }
 0x409   : > { %s7699_s28 = sld [smem:[#allocation57_spill]]  ;;  %s4853_s27 = sshra.s32 %s7393_s24, 4  ;;  %s4854_s27 = int_to_ptr.vmem [resolvable:$true] %s4853_s27 }
 0x40a   : > { %s4855_s3 = sshrl.u32 %s7388_s22, 4  ;;  %s4963_s5 = smov [#allocation17]  }
 0x40b   : > { %s4891_s21 = sshll.u32 %s4855_s3, 4  ;;  %s4858_s16 = sadd.s32 1, %s4855_s3 }
 0x40c   : > { %p4857_p11 = scmp.ne.s32.totalorder %s4891_s21, %s7388_s22  ;;  %s4864_s14 = scalar_lea.vmem %s4963_s5, 1344 }
 0x40e   : > { %s7716_s16 = smov (!%p4857_p11, %s4858_s16), %s4855_s3 }
 0x40f   : > { %s3886_s12 = scalar_lea.hbm %s7699_s28, %s4427_s11  ;;  %s4860_s29 = scalar_lea.vmem %s4854_s27, %s7716_s16 }
 0x410   : > { %s3891_s15 = sshll.u32 %s3886_s12, 4  ;;  %p4861_p5 = scmp.ne.s32.totalorder %s4854_s27, %s4860_s29  ;;  %s7395_s15 = int_to_ptr.hbm [resolvable:$true] %s3891_s15 }
 0x411   : > { %p4866_p4 = scmp.lt.s32.totalorder %s4864_s14, %s4860_s29 }
 0x412   : > { %p4862_p8 = pnand %p4861_p5, %p7382_p3 }
 0x414   : > { %p4863_p9 = pneg %p4862_p8 }
 0x416   : > { %p4868_p12 = pnand %p4866_p4, %p4863_p9 }
 0x418   : > { %4871 = shalt.err (!%p4868_p12)
}
 0x419   : > { %s4872_s25 = sshra.s32 %s7395_s15, 4  ;;  %s4883_s1 = scalar_lea.hbm %s7699_s28, 1120  ;;  %s4873_s25 = int_to_ptr.hbm [resolvable:$true] %s4872_s25 }
 0x41a   : > { %s4879_s17 = scalar_lea.hbm %s4873_s25, %s7716_s16  ;;  %p4884_p10 = scmp.lt.s32.totalorder %s4873_s25, %s7699_s28 }
 0x41b   : > { %p4880_p13 = scmp.ne.s32.totalorder %s4873_s25, %s4879_s17  ;;  %p4885_p6 = scmp.lt.s32.totalorder %s4883_s1, %s4879_s17 }
 0x41d   : > { %p4881_p2 = pnand %p4880_p13, %p7382_p3  ;;  %p4886_p1 = por %p4885_p6, %p4884_p10 }
 0x41f   : > { %p4882_p7 = pneg %p4881_p2 }
 0x421   : > { %p4887_p0 = pnand %p4886_p1, %p4882_p7 }
 0x423   : > { %4890 = shalt.err (!%p4887_p0)
}
 0x424   : > { %s4964_s3 = smov 512   ;;  %s4965_s21 = smov 32  }
 0x425   : > { %3897 = dma.vmem_to_hbm [thread:$0]  (%p7382_p3), %s7393_s24, %s7388_s22, %s7395_s15, %s3866_s26, %s4964_s3, %s4964_s3, %s4965_s21  }
 0x426 PF: > { %s7700_s16 = sld [smem:[#allocation24_spill]]  ;;  %p7703_p5 = scmp.ge.s32.totalorder %s4946_s20, 2 }
 0x427   : > { %s7701_s29 = sld [smem:[#allocation28_spill]] }
 0x42c   : > { %s3906_s5 = sand.u32 1, %s7700_s16  }
 0x42d   : > { %p7702_p11 = scmp.ne.s32.totalorder %s7701_s29, 0  ;;  %s3907_s14 = scalar_lea.sflag [#allocation4], %s3906_s5 }
 0x42f   : > { %p4407_p8 = pnand %p7703_p5, %p7702_p11 }
 0x431   : > { %p4408_p9 = pneg %p4407_p8 }
 0x433   : > { %4929 = dma.done.wait (%p4408_p9), %s3907_s14, 10752  }
 0x434   : > { %4931 = vsyncadd (%p4408_p9), %s3907_s14, 4294956544  ;;  %s7704_s20 = sld [smem:[#allocation25_spill]]  ;;  %s7706_s17 = smov %s4938_s18 }
 0x435   : > { %s7705_s25 = sld [smem:[#allocation26_spill]]  ;;  %s7707_s18 = smov %s4942_s19 }
 0x43a   : > { %p28_p4 = scmp.ge.s32.totalorder %s7704_s20, 4  }
 0x43b   : > { %s7708_s19 = smov %s7705_s25 }
 0x43c   :  { %30 = sbr.rel (!%p28_p4) target bundleno = 14 (0xe), region = 306 }
 0x441   :  { %3913 = vsyncpa [#allocation3], 1 }
 0x442   :  { %3915 = vsyncpa [#allocation3 + $0x1], 1 }
 0x443   :  { %3916 = vsyncpa [#allocation6], 1 }
 0x444   :  { %3917 = vsyncpa [#allocation9], 1 }
 0x445   :  { %3918 = vsyncpa [#allocation12], 1 }
 0x446   :  { %3919 = vsyncpa [#allocation15], 1 }
 0x447   :  { %3920 = vsyncpa [#allocation4], 1 }
 0x448   :  { %3922 = vsyncpa [#allocation4 + $0x1], 1 }

</bundles_post_ra>
